<compile_context>
chip_gen: v5e
topology: v5e:2x2
jax: 0.10.0
libtpu: 0.0.40
codegen_flags: <defaults>
</compile_context>

<pallas_src>
import functools

import jax
import jax.numpy as jnp
from jax import lax
from jax.experimental import pallas as pl
from jax.experimental.pallas import tpu as pltpu


def _round_up(x, m):
    return ((x + m - 1) // m) * m


# ----------------------------------------------------------------------------
# Kernel 1: GRU recurrence (time-major, fused gates, in-kernel time loop).
# ----------------------------------------------------------------------------
def _gru_kernel(
    emb_ref,   # (Tb, Bp, Ep)  embedded tokens for this time chunk
    h0_ref,    # (Bp, Hp)      initial hidden state
    wih_ref,   # (Ep, 3*Hp)    fused input->hidden weights [r|z|n]
    whh_ref,   # (Hp, 3*Hp)    fused hidden->hidden weights [r|z|n]
    bih_ref,   # (1, 3*Hp)     fused input bias
    bhh_ref,   # (1, 3*Hp)     fused hidden bias
    hs_ref,    # (Tb, Bp, Hp)  out: per-step hidden states for this chunk
    h_scr,     # (Bp, Hp)      VMEM scratch: hidden state carried across chunks
):
    c = pl.program_id(0)

    @pl.when(c == 0)
    def _():
        h_scr[...] = h0_ref[...]

    Hp = whh_ref.shape[0]
    bih = bih_ref[...]    # (1, 3Hp), loop-invariant
    bhh = bhh_ref[...]    # (1, 3Hp)

    def step(i, h):
        x = emb_ref[i]                                       # (Bp, Ep)
        gi = jnp.dot(x, wih_ref[...],
                     preferred_element_type=jnp.float32) + bih   # (Bp, 3Hp)
        gh = jnp.dot(h, whh_ref[...],
                     preferred_element_type=jnp.float32) + bhh   # (Bp, 3Hp)
        r = jax.nn.sigmoid(gi[:, :Hp] + gh[:, :Hp])
        z = jax.nn.sigmoid(gi[:, Hp:2 * Hp] + gh[:, Hp:2 * Hp])
        n = jnp.tanh(gi[:, 2 * Hp:] + r * gh[:, 2 * Hp:])
        h_new = n + z * (h - n)                              # == (1-z)*n + z*h
        hs_ref[i] = h_new
        return h_new

    h_last = lax.fori_loop(0, emb_ref.shape[0], step, h_scr[...], unroll=True)
    h_scr[...] = h_last


def _gru_pallas(emb_p, h0_p, wih_f, whh_f, bih_f, bhh_f, *, time_block):
    Tp, Bp, Ep = emb_p.shape
    Hp = whh_f.shape[0]
    n_chunks = Tp // time_block

    grid_spec = pltpu.PrefetchScalarGridSpec(
        num_scalar_prefetch=0,
        grid=(n_chunks,),
        in_specs=[
            pl.BlockSpec((time_block, Bp, Ep), lambda c: (c, 0, 0)),  # emb chunk
            pl.BlockSpec((Bp, Hp), lambda c: (0, 0)),                 # h0
            pl.BlockSpec((Ep, 3 * Hp), lambda c: (0, 0)),             # W_ih fused
            pl.BlockSpec((Hp, 3 * Hp), lambda c: (0, 0)),             # W_hh fused
            pl.BlockSpec((1, 3 * Hp), lambda c: (0, 0)),              # b_ih fused
            pl.BlockSpec((1, 3 * Hp), lambda c: (0, 0)),              # b_hh fused
        ],
        out_specs=pl.BlockSpec((time_block, Bp, Hp), lambda c: (c, 0, 0)),
        scratch_shapes=[pltpu.VMEM((Bp, Hp), jnp.float32)],
    )
    return pl.pallas_call(
        _gru_kernel,
        grid_spec=grid_spec,
        out_shape=jax.ShapeDtypeStruct((Tp, Bp, Hp), jnp.float32),
        compiler_params=pltpu.CompilerParams(
            dimension_semantics=("arbitrary",)  # sequential recurrence over time
        ),
    )(emb_p, h0_p, wih_f, whh_f, bih_f, bhh_f)


# ----------------------------------------------------------------------------
# Kernel 2: output projection as one big lane-dense matmul over (T*B, Hp).
# ----------------------------------------------------------------------------
def _fc_kernel(hs_ref, w_ref, b_ref, out_ref):
    out_ref[...] = (
        jnp.dot(hs_ref[...], w_ref[...], preferred_element_type=jnp.float32)
        + b_ref[...]
    )


def _fc_pallas(hs_2d, wfc_p, bfc_p, *, m_block):
    Mp, Hp = hs_2d.shape
    Vp = wfc_p.shape[1]
    if Vp <= 512:
        v_block = Vp
    elif Vp % 256 == 0:
        v_block = 256
    else:
        v_block = 128

    grid_spec = pltpu.PrefetchScalarGridSpec(
        num_scalar_prefetch=0,
        grid=(Mp // m_block, Vp // v_block),
        in_specs=[
            pl.BlockSpec((m_block, Hp), lambda mi, vi: (mi, 0)),
            pl.BlockSpec((Hp, v_block), lambda mi, vi: (0, vi)),
            pl.BlockSpec((1, v_block), lambda mi, vi: (0, vi)),
        ],
        out_specs=pl.BlockSpec((m_block, v_block), lambda mi, vi: (mi, vi)),
    )
    return pl.pallas_call(
        _fc_kernel,
        grid_spec=grid_spec,
        out_shape=jax.ShapeDtypeStruct((Mp, Vp), jnp.float32),
        compiler_params=pltpu.CompilerParams(
            dimension_semantics=("parallel", "parallel")  # shards across TCs (v7x)
        ),
    )(hs_2d, wfc_p, bfc_p)


# ----------------------------------------------------------------------------
# Parameter fusing / padding helpers (zero padding is numerically inert).
# ----------------------------------------------------------------------------
def _fuse_gate_weight(w3, in_pad, out_pad):
    # w3: (3, In, H) stacked [r, z, n]  ->  (in_pad, 3*out_pad)
    _, In, H = w3.shape
    w3p = jnp.pad(w3.astype(jnp.float32), ((0, 0), (0, in_pad - In), (0, out_pad - H)))
    return jnp.transpose(w3p, (1, 0, 2)).reshape(in_pad, 3 * out_pad)


def _fuse_gate_bias(b3, out_pad):
    # b3: (3, H) stacked [r, z, n]  ->  (1, 3*out_pad)
    _, H = b3.shape
    b3p = jnp.pad(b3.astype(jnp.float32), ((0, 0), (0, out_pad - H)))
    return b3p.reshape(1, 3 * out_pad)


# ----------------------------------------------------------------------------
# Module wrapper (glue: embedding gather, padding, layout transposes).
# ----------------------------------------------------------------------------
def smiles_generator_forward(x_tokens, params, hidden=None, *, time_block=8):
    """x_tokens: int32 (B, T). Returns (logits (B, T, V), hidden (1, B, H))."""
    B, T = x_tokens.shape
    E = params["embedding"].shape[1]
    H = params["whh"].shape[-1]
    V = params["wfc"].shape[-1]

    Bp = _round_up(B, 8)
    Ep = _round_up(E, 128)
    Hp = _round_up(H, 128)
    Vp = _round_up(V, 128)
    Tb = min(time_block, T)
    n_chunks = -(-T // Tb)
    Tp = n_chunks * Tb

    # Embedding gather (glue) + time-major + padding.
    emb = jnp.take(params["embedding"], x_tokens, axis=0).astype(jnp.float32)  # (B,T,E)
    emb_tm = jnp.transpose(emb, (1, 0, 2))                                     # (T,B,E)
    emb_p = jnp.pad(emb_tm, ((0, Tp - T), (0, Bp - B), (0, Ep - E)))

    wih_f = _fuse_gate_weight(params["wih"], Ep, Hp)   # (Ep, 3Hp)
    whh_f = _fuse_gate_weight(params["whh"], Hp, Hp)   # (Hp, 3Hp)
    bih_f = _fuse_gate_bias(params["bih"], Hp)         # (1, 3Hp)
    bhh_f = _fuse_gate_bias(params["bhh"], Hp)         # (1, 3Hp)
    wfc_p = jnp.pad(params["wfc"].astype(jnp.float32), ((0, Hp - H), (0, Vp - V)))
    bfc_p = jnp.pad(params["bfc"].astype(jnp.float32), (0, Vp - V)).reshape(1, Vp)

    if hidden is None:
        h0 = jnp.zeros((Bp, Hp), jnp.float32)
    else:
        h0 = jnp.pad(hidden.reshape(B, H).astype(jnp.float32),
                     ((0, Bp - B), (0, Hp - H)))

    # 1) GRU recurrence -> per-step hidden states (time-major, padded).
    hs = _gru_pallas(emb_p, h0, wih_f, whh_f, bih_f, bhh_f, time_block=Tb)  # (Tp,Bp,Hp)

    # 2) Vocab projection as one big matmul over the flattened (Tp*Bp, Hp).
    logits_2d = _fc_pallas(hs.reshape(Tp * Bp, Hp), wfc_p, bfc_p,
                           m_block=Bp * Tb)                                  # (Tp*Bp,Vp)

    logits_tm = logits_2d.reshape(Tp, Bp, Vp)[:T, :B, :V]   # strip padding
    logits = jnp.transpose(logits_tm, (1, 0, 2))             # batch_first (B, T, V)
    h_final = hs[T - 1, :B, :H][None]                        # (1, B, H) like nn.GRU
    return logits, h_final


# ----------------------------------------------------------------------------
# Pure-JAX reference (for correctness check).
# ----------------------------------------------------------------------------
def _ref_forward(x_tokens, params, hidden=None):
    dot = functools.partial(jnp.dot, precision="highest")
    emb = params["embedding"][x_tokens].astype(jnp.float32)
    B, T, _ = emb.shape
    H = params["whh"].shape[-1]
    h = jnp.zeros((B, H), jnp.float32) if hidden is None else hidden.reshape(B, H)
    outs = []
    for t in range(T):
        x = emb[:, t]
        gi = [dot(x, params["wih"][g]) + params["bih"][g] for g in range(3)]
        gh = [dot(h, params["whh"][g]) + params["bhh"][g] for g in range(3)]
        r = jax.nn.sigmoid(gi[0] + gh[0])
        z = jax.nn.sigmoid(gi[1] + gh[1])
        n = jnp.tanh(gi[2] + r * gh[2])
        h = (1.0 - z) * n + z * h
        outs.append(dot(h, params["wfc"]) + params["bfc"])
    return jnp.stack(outs, axis=1), h[None]


# ----------------------------------------------------------------------------
# Deterministic parameter init (shapes from SMILESGenerator.__init__).
# GRU weights stacked by gate [r, z, n], stored transposed (in_dim, out_dim).
# ----------------------------------------------------------------------------
def init_params(key, vocab_size, emb_dim, hidden_dim):
    ks = jax.random.split(key, 7)
    bound = 1.0 / jnp.sqrt(hidden_dim)
    return {
        "embedding": jax.random.normal(ks[0], (vocab_size, emb_dim), jnp.float32),
        "wih": jax.random.uniform(ks[1], (3, emb_dim, hidden_dim), jnp.float32,
                                  -bound, bound),
        "whh": jax.random.uniform(ks[2], (3, hidden_dim, hidden_dim), jnp.float32,
                                  -bound, bound),
        "bih": jax.random.uniform(ks[3], (3, hidden_dim), jnp.float32, -bound, bound),
        "bhh": jax.random.uniform(ks[4], (3, hidden_dim), jnp.float32, -bound, bound),
        "wfc": jax.random.uniform(ks[5], (hidden_dim, vocab_size), jnp.float32,
                                  -bound, bound),
        "bfc": jax.random.uniform(ks[6], (vocab_size,), jnp.float32, -bound, bound),
    }


if __name__ == "__main__":
    VOCAB, EMB, HID = 32, 32, 32
    B, T = 2, 8

    key = jax.random.PRNGKey(0)
    pkey, xkey = jax.random.split(key)
    params = init_params(pkey, VOCAB, EMB, HID)
    x_tokens = jax.random.randint(xkey, (B, T), 0, VOCAB, dtype=jnp.int32)

    logits, hidden = smiles_generator_forward(x_tokens, params)
    logits = jax.block_until_ready(logits)
    hidden = jax.block_until_ready(hidden)

    assert logits.shape == (B, T, VOCAB), logits.shape
    assert hidden.shape == (1, B, HID), hidden.shape

    ref_logits, ref_hidden = _ref_forward(x_tokens, params)
    assert jnp.allclose(logits, ref_logits, atol=1e-3, rtol=1e-3)
    assert jnp.allclose(hidden, ref_hidden, atol=1e-3, rtol=1e-3)

    # TODO(synk): sample() (autoregressive multinomial decoding) is host-side
    # control flow around forward(); not implemented as a kernel.
    print("KERNEL_OK")
</pallas_src>

<mosaic_0001>
module attributes {stable_mosaic.version = 11 : i64} {
  func.func @_gru_kernel(%arg0: i32, %arg1: memref<8x8x128xf32, #tpu.memory_space<vmem>>, %arg2: memref<8x128xf32, #tpu.memory_space<vmem>>, %arg3: memref<128x384xf32, #tpu.memory_space<vmem>>, %arg4: memref<128x384xf32, #tpu.memory_space<vmem>>, %arg5: memref<1x384xf32, #tpu.memory_space<vmem>>, %arg6: memref<1x384xf32, #tpu.memory_space<vmem>>, %arg7: memref<8x8x128xf32, #tpu.memory_space<vmem>>, %arg8: memref<8x128xf32, #tpu.memory_space<vmem>>) attributes {dimension_semantics = [#tpu.dimension_semantics<arbitrary>], iteration_bounds = array<i64: 1>, scalar_prefetch = 0 : i64, scratch_operands = 1 : i64, tpu.core_type = #tpu.core_type<tc>, window_params = [{transform_indices = @transform_0, window_bounds = array<i64: 8, 8, 128>}, {pipeline_mode = #tpu.pipeline_mode<synchronous>, transform_indices = @transform_1, window_bounds = array<i64: 8, 128>}, {pipeline_mode = #tpu.pipeline_mode<synchronous>, transform_indices = @transform_2, window_bounds = array<i64: 128, 384>}, {pipeline_mode = #tpu.pipeline_mode<synchronous>, transform_indices = @transform_3, window_bounds = array<i64: 128, 384>}, {pipeline_mode = #tpu.pipeline_mode<synchronous>, transform_indices = @transform_4, window_bounds = array<i64: 1, 384>}, {pipeline_mode = #tpu.pipeline_mode<synchronous>, transform_indices = @transform_5, window_bounds = array<i64: 1, 384>}, {transform_indices = @transform_6, window_bounds = array<i64: 8, 8, 128>}]} {
    %c0_i32 = arith.constant 0 : i32
    %0 = arith.cmpi eq, %arg0, %c0_i32 : i32
    %1 = arith.extui %0 : i1 to i32
    %c0_i32_0 = arith.constant 0 : i32
    %2 = arith.cmpi ne, %1, %c0_i32_0 : i32
    scf.if %2 {
      %c0_104 = arith.constant 0 : index
      %c0_105 = arith.constant 0 : index
      %319 = vector.load %arg2[%c0_104, %c0_105] : memref<8x128xf32, #tpu.memory_space<vmem>>, vector<8x128xf32>
      %c0_106 = arith.constant 0 : index
      %c0_107 = arith.constant 0 : index
      %320 = vector.load %arg8[%c0_106, %c0_107] : memref<8x128xf32, #tpu.memory_space<vmem>>, vector<8x128xf32>
      tpu.vector_store %arg8[%c0_106, %c0_107], %319 {strides = array<i32>} : memref<8x128xf32, #tpu.memory_space<vmem>>, vector<8x128xf32>,
    } else {
    }
    %c0 = arith.constant 0 : index
    %c0_1 = arith.constant 0 : index
    %3 = vector.load %arg5[%c0, %c0_1] : memref<1x384xf32, #tpu.memory_space<vmem>>, vector<1x384xf32>
    %c0_2 = arith.constant 0 : index
    %c0_3 = arith.constant 0 : index
    %4 = vector.load %arg6[%c0_2, %c0_3] : memref<1x384xf32, #tpu.memory_space<vmem>>, vector<1x384xf32>
    %c0_4 = arith.constant 0 : index
    %c0_5 = arith.constant 0 : index
    %5 = vector.load %arg8[%c0_4, %c0_5] : memref<8x128xf32, #tpu.memory_space<vmem>>, vector<8x128xf32>
    %c0_i32_6 = arith.constant 0 : i32
    %6 = arith.index_cast %c0_i32_6 : i32 to index
    %c0_7 = arith.constant 0 : index
    %c0_8 = arith.constant 0 : index
    %7 = vector.load %arg1[%6, %c0_7, %c0_8] : memref<8x8x128xf32, #tpu.memory_space<vmem>>, vector<1x8x128xf32>
    %8 = vector.shape_cast %7 : vector<1x8x128xf32> to vector<8x128xf32>
    %c0_9 = arith.constant 0 : index
    %c0_10 = arith.constant 0 : index
    %9 = vector.load %arg3[%c0_9, %c0_10] : memref<128x384xf32, #tpu.memory_space<vmem>>, vector<128x384xf32>
    %cst = arith.constant dense<0.000000e+00> : vector<8x384xf32>
    %10 = tpu.matmul %8, %9, %cst {dimension_numbers = #tpu.dot_dimension_numbers<[1], [0], [0], [1], [0, 0, 1, 1], [], []>} : vector<8x128xf32>, vector<128x384xf32>, vector<8x384xf32> -> vector<8x384xf32>
    %11 = vector.broadcast %3 : vector<1x384xf32> to vector<8x384xf32>
    %12 = arith.addf %10, %11 : vector<8x384xf32>
    %c0_11 = arith.constant 0 : index
    %c0_12 = arith.constant 0 : index
    %13 = vector.load %arg4[%c0_11, %c0_12] : memref<128x384xf32, #tpu.memory_space<vmem>>, vector<128x384xf32>
    %cst_13 = arith.constant dense<0.000000e+00> : vector<8x384xf32>
    %14 = tpu.matmul %5, %13, %cst_13 {dimension_numbers = #tpu.dot_dimension_numbers<[1], [0], [0], [1], [0, 0, 1, 1], [], []>} : vector<8x128xf32>, vector<128x384xf32>, vector<8x384xf32> -> vector<8x384xf32>
    %15 = vector.broadcast %4 : vector<1x384xf32> to vector<8x384xf32>
    %16 = arith.addf %14, %15 : vector<8x384xf32>
    %17 = vector.extract_strided_slice %12 {offsets = [0, 0], sizes = [8, 128], strides = [1, 1]} : vector<8x384xf32> to vector<8x128xf32>
    %18 = vector.extract_strided_slice %16 {offsets = [0, 0], sizes = [8, 128], strides = [1, 1]} : vector<8x384xf32> to vector<8x128xf32>
    %19 = arith.addf %17, %18 : vector<8x128xf32>
    %20 = arith.negf %19 : vector<8x128xf32>
    %21 = math.exp %20 : vector<8x128xf32>
    %cst_14 = arith.constant 1.000000e+00 : f32
    %22 = vector.broadcast %cst_14 : f32 to vector<8x128xf32>
    %23 = arith.addf %22, %21 : vector<8x128xf32>
    %24 = arith.divf %22, %23 : vector<8x128xf32>
    %25 = vector.extract_strided_slice %12 {offsets = [0, 128], sizes = [8, 128], strides = [1, 1]} : vector<8x384xf32> to vector<8x128xf32>
    %26 = vector.extract_strided_slice %16 {offsets = [0, 128], sizes = [8, 128], strides = [1, 1]} : vector<8x384xf32> to vector<8x128xf32>
    %27 = arith.addf %25, %26 : vector<8x128xf32>
    %28 = arith.negf %27 : vector<8x128xf32>
    %29 = math.exp %28 : vector<8x128xf32>
    %cst_15 = arith.constant 1.000000e+00 : f32
    %30 = vector.broadcast %cst_15 : f32 to vector<8x128xf32>
    %31 = arith.addf %30, %29 : vector<8x128xf32>
    %32 = arith.divf %30, %31 : vector<8x128xf32>
    %33 = vector.extract_strided_slice %12 {offsets = [0, 256], sizes = [8, 128], strides = [1, 1]} : vector<8x384xf32> to vector<8x128xf32>
    %34 = vector.extract_strided_slice %16 {offsets = [0, 256], sizes = [8, 128], strides = [1, 1]} : vector<8x384xf32> to vector<8x128xf32>
    %35 = arith.mulf %24, %34 : vector<8x128xf32>
    %36 = arith.addf %33, %35 : vector<8x128xf32>
    %37 = math.tanh %36 : vector<8x128xf32>
    %38 = arith.subf %5, %37 : vector<8x128xf32>
    %39 = arith.mulf %32, %38 : vector<8x128xf32>
    %40 = arith.addf %37, %39 : vector<8x128xf32>
    %41 = arith.index_cast %c0_i32_6 : i32 to index
    %c0_16 = arith.constant 0 : index
    %c0_17 = arith.constant 0 : index
    %42 = vector.load %arg7[%41, %c0_16, %c0_17] : memref<8x8x128xf32, #tpu.memory_space<vmem>>, vector<1x8x128xf32>
    %43 = vector.shape_cast %42 : vector<1x8x128xf32> to vector<8x128xf32>
    %44 = vector.shape_cast %40 : vector<8x128xf32> to vector<1x8x128xf32>
    tpu.vector_store %arg7[%41, %c0_16, %c0_17], %44 {strides = array<i32>} : memref<8x8x128xf32, #tpu.memory_space<vmem>>, vector<1x8x128xf32>,
    %c1_i32 = arith.constant 1 : i32
    %45 = arith.index_cast %c1_i32 : i32 to index
    %c0_18 = arith.constant 0 : index
    %c0_19 = arith.constant 0 : index
    %46 = vector.load %arg1[%45, %c0_18, %c0_19] : memref<8x8x128xf32, #tpu.memory_space<vmem>>, vector<1x8x128xf32>
    %47 = vector.shape_cast %46 : vector<1x8x128xf32> to vector<8x128xf32>
    %c0_20 = arith.constant 0 : index
    %c0_21 = arith.constant 0 : index
    %48 = vector.load %arg3[%c0_20, %c0_21] : memref<128x384xf32, #tpu.memory_space<vmem>>, vector<128x384xf32>
    %cst_22 = arith.constant dense<0.000000e+00> : vector<8x384xf32>
    %49 = tpu.matmul %47, %48, %cst_22 {dimension_numbers = #tpu.dot_dimension_numbers<[1], [0], [0], [1], [0, 0, 1, 1], [], []>} : vector<8x128xf32>, vector<128x384xf32>, vector<8x384xf32> -> vector<8x384xf32>
    %50 = vector.broadcast %3 : vector<1x384xf32> to vector<8x384xf32>
    %51 = arith.addf %49, %50 : vector<8x384xf32>
    %c0_23 = arith.constant 0 : index
    %c0_24 = arith.constant 0 : index
    %52 = vector.load %arg4[%c0_23, %c0_24] : memref<128x384xf32, #tpu.memory_space<vmem>>, vector<128x384xf32>
    %cst_25 = arith.constant dense<0.000000e+00> : vector<8x384xf32>
    %53 = tpu.matmul %40, %52, %cst_25 {dimension_numbers = #tpu.dot_dimension_numbers<[1], [0], [0], [1], [0, 0, 1, 1], [], []>} : vector<8x128xf32>, vector<128x384xf32>, vector<8x384xf32> -> vector<8x384xf32>
    %54 = vector.broadcast %4 : vector<1x384xf32> to vector<8x384xf32>
    %55 = arith.addf %53, %54 : vector<8x384xf32>
    %56 = vector.extract_strided_slice %51 {offsets = [0, 0], sizes = [8, 128], strides = [1, 1]} : vector<8x384xf32> to vector<8x128xf32>
    %57 = vector.extract_strided_slice %55 {offsets = [0, 0], sizes = [8, 128], strides = [1, 1]} : vector<8x384xf32> to vector<8x128xf32>
    %58 = arith.addf %56, %57 : vector<8x128xf32>
    %59 = arith.negf %58 : vector<8x128xf32>
    %60 = math.exp %59 : vector<8x128xf32>
    %cst_26 = arith.constant 1.000000e+00 : f32
    %61 = vector.broadcast %cst_26 : f32 to vector<8x128xf32>
    %62 = arith.addf %61, %60 : vector<8x128xf32>
    %63 = arith.divf %61, %62 : vector<8x128xf32>
    %64 = vector.extract_strided_slice %51 {offsets = [0, 128], sizes = [8, 128], strides = [1, 1]} : vector<8x384xf32> to vector<8x128xf32>
    %65 = vector.extract_strided_slice %55 {offsets = [0, 128], sizes = [8, 128], strides = [1, 1]} : vector<8x384xf32> to vector<8x128xf32>
    %66 = arith.addf %64, %65 : vector<8x128xf32>
    %67 = arith.negf %66 : vector<8x128xf32>
    %68 = math.exp %67 : vector<8x128xf32>
    %cst_27 = arith.constant 1.000000e+00 : f32
    %69 = vector.broadcast %cst_27 : f32 to vector<8x128xf32>
    %70 = arith.addf %69, %68 : vector<8x128xf32>
    %71 = arith.divf %69, %70 : vector<8x128xf32>
    %72 = vector.extract_strided_slice %51 {offsets = [0, 256], sizes = [8, 128], strides = [1, 1]} : vector<8x384xf32> to vector<8x128xf32>
    %73 = vector.extract_strided_slice %55 {offsets = [0, 256], sizes = [8, 128], strides = [1, 1]} : vector<8x384xf32> to vector<8x128xf32>
    %74 = arith.mulf %63, %73 : vector<8x128xf32>
    %75 = arith.addf %72, %74 : vector<8x128xf32>
    %76 = math.tanh %75 : vector<8x128xf32>
    %77 = arith.subf %40, %76 : vector<8x128xf32>
    %78 = arith.mulf %71, %77 : vector<8x128xf32>
    %79 = arith.addf %76, %78 : vector<8x128xf32>
    %80 = arith.index_cast %c1_i32 : i32 to index
    %c0_28 = arith.constant 0 : index
    %c0_29 = arith.constant 0 : index
    %81 = vector.load %arg7[%80, %c0_28, %c0_29] : memref<8x8x128xf32, #tpu.memory_space<vmem>>, vector<1x8x128xf32>
    %82 = vector.shape_cast %81 : vector<1x8x128xf32> to vector<8x128xf32>
    %83 = vector.shape_cast %79 : vector<8x128xf32> to vector<1x8x128xf32>
    tpu.vector_store %arg7[%80, %c0_28, %c0_29], %83 {strides = array<i32>} : memref<8x8x128xf32, #tpu.memory_space<vmem>>, vector<1x8x128xf32>,
    %c2_i32 = arith.constant 2 : i32
    %84 = arith.index_cast %c2_i32 : i32 to index
    %c0_30 = arith.constant 0 : index
    %c0_31 = arith.constant 0 : index
    %85 = vector.load %arg1[%84, %c0_30, %c0_31] : memref<8x8x128xf32, #tpu.memory_space<vmem>>, vector<1x8x128xf32>
    %86 = vector.shape_cast %85 : vector<1x8x128xf32> to vector<8x128xf32>
    %c0_32 = arith.constant 0 : index
    %c0_33 = arith.constant 0 : index
    %87 = vector.load %arg3[%c0_32, %c0_33] : memref<128x384xf32, #tpu.memory_space<vmem>>, vector<128x384xf32>
    %cst_34 = arith.constant dense<0.000000e+00> : vector<8x384xf32>
    %88 = tpu.matmul %86, %87, %cst_34 {dimension_numbers = #tpu.dot_dimension_numbers<[1], [0], [0], [1], [0, 0, 1, 1], [], []>} : vector<8x128xf32>, vector<128x384xf32>, vector<8x384xf32> -> vector<8x384xf32>
    %89 = vector.broadcast %3 : vector<1x384xf32> to vector<8x384xf32>
    %90 = arith.addf %88, %89 : vector<8x384xf32>
    %c0_35 = arith.constant 0 : index
    %c0_36 = arith.constant 0 : index
    %91 = vector.load %arg4[%c0_35, %c0_36] : memref<128x384xf32, #tpu.memory_space<vmem>>, vector<128x384xf32>
    %cst_37 = arith.constant dense<0.000000e+00> : vector<8x384xf32>
    %92 = tpu.matmul %79, %91, %cst_37 {dimension_numbers = #tpu.dot_dimension_numbers<[1], [0], [0], [1], [0, 0, 1, 1], [], []>} : vector<8x128xf32>, vector<128x384xf32>, vector<8x384xf32> -> vector<8x384xf32>
    %93 = vector.broadcast %4 : vector<1x384xf32> to vector<8x384xf32>
    %94 = arith.addf %92, %93 : vector<8x384xf32>
    %95 = vector.extract_strided_slice %90 {offsets = [0, 0], sizes = [8, 128], strides = [1, 1]} : vector<8x384xf32> to vector<8x128xf32>
    %96 = vector.extract_strided_slice %94 {offsets = [0, 0], sizes = [8, 128], strides = [1, 1]} : vector<8x384xf32> to vector<8x128xf32>
    %97 = arith.addf %95, %96 : vector<8x128xf32>
    %98 = arith.negf %97 : vector<8x128xf32>
    %99 = math.exp %98 : vector<8x128xf32>
    %cst_38 = arith.constant 1.000000e+00 : f32
    %100 = vector.broadcast %cst_38 : f32 to vector<8x128xf32>
    %101 = arith.addf %100, %99 : vector<8x128xf32>
    %102 = arith.divf %100, %101 : vector<8x128xf32>
    %103 = vector.extract_strided_slice %90 {offsets = [0, 128], sizes = [8, 128], strides = [1, 1]} : vector<8x384xf32> to vector<8x128xf32>
    %104 = vector.extract_strided_slice %94 {offsets = [0, 128], sizes = [8, 128], strides = [1, 1]} : vector<8x384xf32> to vector<8x128xf32>
    %105 = arith.addf %103, %104 : vector<8x128xf32>
    %106 = arith.negf %105 : vector<8x128xf32>
    %107 = math.exp %106 : vector<8x128xf32>
    %cst_39 = arith.constant 1.000000e+00 : f32
    %108 = vector.broadcast %cst_39 : f32 to vector<8x128xf32>
    %109 = arith.addf %108, %107 : vector<8x128xf32>
    %110 = arith.divf %108, %109 : vector<8x128xf32>
    %111 = vector.extract_strided_slice %90 {offsets = [0, 256], sizes = [8, 128], strides = [1, 1]} : vector<8x384xf32> to vector<8x128xf32>
    %112 = vector.extract_strided_slice %94 {offsets = [0, 256], sizes = [8, 128], strides = [1, 1]} : vector<8x384xf32> to vector<8x128xf32>
    %113 = arith.mulf %102, %112 : vector<8x128xf32>
    %114 = arith.addf %111, %113 : vector<8x128xf32>
    %115 = math.tanh %114 : vector<8x128xf32>
    %116 = arith.subf %79, %115 : vector<8x128xf32>
    %117 = arith.mulf %110, %116 : vector<8x128xf32>
    %118 = arith.addf %115, %117 : vector<8x128xf32>
    %119 = arith.index_cast %c2_i32 : i32 to index
    %c0_40 = arith.constant 0 : index
    %c0_41 = arith.constant 0 : index
    %120 = vector.load %arg7[%119, %c0_40, %c0_41] : memref<8x8x128xf32, #tpu.memory_space<vmem>>, vector<1x8x128xf32>
    %121 = vector.shape_cast %120 : vector<1x8x128xf32> to vector<8x128xf32>
    %122 = vector.shape_cast %118 : vector<8x128xf32> to vector<1x8x128xf32>
    tpu.vector_store %arg7[%119, %c0_40, %c0_41], %122 {strides = array<i32>} : memref<8x8x128xf32, #tpu.memory_space<vmem>>, vector<1x8x128xf32>,
    %c3_i32 = arith.constant 3 : i32
    %123 = arith.index_cast %c3_i32 : i32 to index
    %c0_42 = arith.constant 0 : index
    %c0_43 = arith.constant 0 : index
    %124 = vector.load %arg1[%123, %c0_42, %c0_43] : memref<8x8x128xf32, #tpu.memory_space<vmem>>, vector<1x8x128xf32>
    %125 = vector.shape_cast %124 : vector<1x8x128xf32> to vector<8x128xf32>
    %c0_44 = arith.constant 0 : index
    %c0_45 = arith.constant 0 : index
    %126 = vector.load %arg3[%c0_44, %c0_45] : memref<128x384xf32, #tpu.memory_space<vmem>>, vector<128x384xf32>
    %cst_46 = arith.constant dense<0.000000e+00> : vector<8x384xf32>
    %127 = tpu.matmul %125, %126, %cst_46 {dimension_numbers = #tpu.dot_dimension_numbers<[1], [0], [0], [1], [0, 0, 1, 1], [], []>} : vector<8x128xf32>, vector<128x384xf32>, vector<8x384xf32> -> vector<8x384xf32>
    %128 = vector.broadcast %3 : vector<1x384xf32> to vector<8x384xf32>
    %129 = arith.addf %127, %128 : vector<8x384xf32>
    %c0_47 = arith.constant 0 : index
    %c0_48 = arith.constant 0 : index
    %130 = vector.load %arg4[%c0_47, %c0_48] : memref<128x384xf32, #tpu.memory_space<vmem>>, vector<128x384xf32>
    %cst_49 = arith.constant dense<0.000000e+00> : vector<8x384xf32>
    %131 = tpu.matmul %118, %130, %cst_49 {dimension_numbers = #tpu.dot_dimension_numbers<[1], [0], [0], [1], [0, 0, 1, 1], [], []>} : vector<8x128xf32>, vector<128x384xf32>, vector<8x384xf32> -> vector<8x384xf32>
    %132 = vector.broadcast %4 : vector<1x384xf32> to vector<8x384xf32>
    %133 = arith.addf %131, %132 : vector<8x384xf32>
    %134 = vector.extract_strided_slice %129 {offsets = [0, 0], sizes = [8, 128], strides = [1, 1]} : vector<8x384xf32> to vector<8x128xf32>
    %135 = vector.extract_strided_slice %133 {offsets = [0, 0], sizes = [8, 128], strides = [1, 1]} : vector<8x384xf32> to vector<8x128xf32>
    %136 = arith.addf %134, %135 : vector<8x128xf32>
    %137 = arith.negf %136 : vector<8x128xf32>
    %138 = math.exp %137 : vector<8x128xf32>
    %cst_50 = arith.constant 1.000000e+00 : f32
    %139 = vector.broadcast %cst_50 : f32 to vector<8x128xf32>
    %140 = arith.addf %139, %138 : vector<8x128xf32>
    %141 = arith.divf %139, %140 : vector<8x128xf32>
    %142 = vector.extract_strided_slice %129 {offsets = [0, 128], sizes = [8, 128], strides = [1, 1]} : vector<8x384xf32> to vector<8x128xf32>
    %143 = vector.extract_strided_slice %133 {offsets = [0, 128], sizes = [8, 128], strides = [1, 1]} : vector<8x384xf32> to vector<8x128xf32>
    %144 = arith.addf %142, %143 : vector<8x128xf32>
    %145 = arith.negf %144 : vector<8x128xf32>
    %146 = math.exp %145 : vector<8x128xf32>
    %cst_51 = arith.constant 1.000000e+00 : f32
    %147 = vector.broadcast %cst_51 : f32 to vector<8x128xf32>
    %148 = arith.addf %147, %146 : vector<8x128xf32>
    %149 = arith.divf %147, %148 : vector<8x128xf32>
    %150 = vector.extract_strided_slice %129 {offsets = [0, 256], sizes = [8, 128], strides = [1, 1]} : vector<8x384xf32> to vector<8x128xf32>
    %151 = vector.extract_strided_slice %133 {offsets = [0, 256], sizes = [8, 128], strides = [1, 1]} : vector<8x384xf32> to vector<8x128xf32>
    %152 = arith.mulf %141, %151 : vector<8x128xf32>
    %153 = arith.addf %150, %152 : vector<8x128xf32>
    %154 = math.tanh %153 : vector<8x128xf32>
    %155 = arith.subf %118, %154 : vector<8x128xf32>
    %156 = arith.mulf %149, %155 : vector<8x128xf32>
    %157 = arith.addf %154, %156 : vector<8x128xf32>
    %158 = arith.index_cast %c3_i32 : i32 to index
    %c0_52 = arith.constant 0 : index
    %c0_53 = arith.constant 0 : index
    %159 = vector.load %arg7[%158, %c0_52, %c0_53] : memref<8x8x128xf32, #tpu.memory_space<vmem>>, vector<1x8x128xf32>
    %160 = vector.shape_cast %159 : vector<1x8x128xf32> to vector<8x128xf32>
    %161 = vector.shape_cast %157 : vector<8x128xf32> to vector<1x8x128xf32>
    tpu.vector_store %arg7[%158, %c0_52, %c0_53], %161 {strides = array<i32>} : memref<8x8x128xf32, #tpu.memory_space<vmem>>, vector<1x8x128xf32>,
    %c4_i32 = arith.constant 4 : i32
    %162 = arith.index_cast %c4_i32 : i32 to index
    %c0_54 = arith.constant 0 : index
    %c0_55 = arith.constant 0 : index
    %163 = vector.load %arg1[%162, %c0_54, %c0_55] : memref<8x8x128xf32, #tpu.memory_space<vmem>>, vector<1x8x128xf32>
    %164 = vector.shape_cast %163 : vector<1x8x128xf32> to vector<8x128xf32>
    %c0_56 = arith.constant 0 : index
    %c0_57 = arith.constant 0 : index
    %165 = vector.load %arg3[%c0_56, %c0_57] : memref<128x384xf32, #tpu.memory_space<vmem>>, vector<128x384xf32>
    %cst_58 = arith.constant dense<0.000000e+00> : vector<8x384xf32>
    %166 = tpu.matmul %164, %165, %cst_58 {dimension_numbers = #tpu.dot_dimension_numbers<[1], [0], [0], [1], [0, 0, 1, 1], [], []>} : vector<8x128xf32>, vector<128x384xf32>, vector<8x384xf32> -> vector<8x384xf32>
    %167 = vector.broadcast %3 : vector<1x384xf32> to vector<8x384xf32>
    %168 = arith.addf %166, %167 : vector<8x384xf32>
    %c0_59 = arith.constant 0 : index
    %c0_60 = arith.constant 0 : index
    %169 = vector.load %arg4[%c0_59, %c0_60] : memref<128x384xf32, #tpu.memory_space<vmem>>, vector<128x384xf32>
    %cst_61 = arith.constant dense<0.000000e+00> : vector<8x384xf32>
    %170 = tpu.matmul %157, %169, %cst_61 {dimension_numbers = #tpu.dot_dimension_numbers<[1], [0], [0], [1], [0, 0, 1, 1], [], []>} : vector<8x128xf32>, vector<128x384xf32>, vector<8x384xf32> -> vector<8x384xf32>
    %171 = vector.broadcast %4 : vector<1x384xf32> to vector<8x384xf32>
    %172 = arith.addf %170, %171 : vector<8x384xf32>
    %173 = vector.extract_strided_slice %168 {offsets = [0, 0], sizes = [8, 128], strides = [1, 1]} : vector<8x384xf32> to vector<8x128xf32>
    %174 = vector.extract_strided_slice %172 {offsets = [0, 0], sizes = [8, 128], strides = [1, 1]} : vector<8x384xf32> to vector<8x128xf32>
    %175 = arith.addf %173, %174 : vector<8x128xf32>
    %176 = arith.negf %175 : vector<8x128xf32>
    %177 = math.exp %176 : vector<8x128xf32>
    %cst_62 = arith.constant 1.000000e+00 : f32
    %178 = vector.broadcast %cst_62 : f32 to vector<8x128xf32>
    %179 = arith.addf %178, %177 : vector<8x128xf32>
    %180 = arith.divf %178, %179 : vector<8x128xf32>
    %181 = vector.extract_strided_slice %168 {offsets = [0, 128], sizes = [8, 128], strides = [1, 1]} : vector<8x384xf32> to vector<8x128xf32>
    %182 = vector.extract_strided_slice %172 {offsets = [0, 128], sizes = [8, 128], strides = [1, 1]} : vector<8x384xf32> to vector<8x128xf32>
    %183 = arith.addf %181, %182 : vector<8x128xf32>
    %184 = arith.negf %183 : vector<8x128xf32>
    %185 = math.exp %184 : vector<8x128xf32>
    %cst_63 = arith.constant 1.000000e+00 : f32
    %186 = vector.broadcast %cst_63 : f32 to vector<8x128xf32>
    %187 = arith.addf %186, %185 : vector<8x128xf32>
    %188 = arith.divf %186, %187 : vector<8x128xf32>
    %189 = vector.extract_strided_slice %168 {offsets = [0, 256], sizes = [8, 128], strides = [1, 1]} : vector<8x384xf32> to vector<8x128xf32>
    %190 = vector.extract_strided_slice %172 {offsets = [0, 256], sizes = [8, 128], strides = [1, 1]} : vector<8x384xf32> to vector<8x128xf32>
    %191 = arith.mulf %180, %190 : vector<8x128xf32>
    %192 = arith.addf %189, %191 : vector<8x128xf32>
    %193 = math.tanh %192 : vector<8x128xf32>
    %194 = arith.subf %157, %193 : vector<8x128xf32>
    %195 = arith.mulf %188, %194 : vector<8x128xf32>
    %196 = arith.addf %193, %195 : vector<8x128xf32>
    %197 = arith.index_cast %c4_i32 : i32 to index
    %c0_64 = arith.constant 0 : index
    %c0_65 = arith.constant 0 : index
    %198 = vector.load %arg7[%197, %c0_64, %c0_65] : memref<8x8x128xf32, #tpu.memory_space<vmem>>, vector<1x8x128xf32>
    %199 = vector.shape_cast %198 : vector<1x8x128xf32> to vector<8x128xf32>
    %200 = vector.shape_cast %196 : vector<8x128xf32> to vector<1x8x128xf32>
    tpu.vector_store %arg7[%197, %c0_64, %c0_65], %200 {strides = array<i32>} : memref<8x8x128xf32, #tpu.memory_space<vmem>>, vector<1x8x128xf32>,
    %c5_i32 = arith.constant 5 : i32
    %201 = arith.index_cast %c5_i32 : i32 to index
    %c0_66 = arith.constant 0 : index
    %c0_67 = arith.constant 0 : index
    %202 = vector.load %arg1[%201, %c0_66, %c0_67] : memref<8x8x128xf32, #tpu.memory_space<vmem>>, vector<1x8x128xf32>
    %203 = vector.shape_cast %202 : vector<1x8x128xf32> to vector<8x128xf32>
    %c0_68 = arith.constant 0 : index
    %c0_69 = arith.constant 0 : index
    %204 = vector.load %arg3[%c0_68, %c0_69] : memref<128x384xf32, #tpu.memory_space<vmem>>, vector<128x384xf32>
    %cst_70 = arith.constant dense<0.000000e+00> : vector<8x384xf32>
    %205 = tpu.matmul %203, %204, %cst_70 {dimension_numbers = #tpu.dot_dimension_numbers<[1], [0], [0], [1], [0, 0, 1, 1], [], []>} : vector<8x128xf32>, vector<128x384xf32>, vector<8x384xf32> -> vector<8x384xf32>
    %206 = vector.broadcast %3 : vector<1x384xf32> to vector<8x384xf32>
    %207 = arith.addf %205, %206 : vector<8x384xf32>
    %c0_71 = arith.constant 0 : index
    %c0_72 = arith.constant 0 : index
    %208 = vector.load %arg4[%c0_71, %c0_72] : memref<128x384xf32, #tpu.memory_space<vmem>>, vector<128x384xf32>
    %cst_73 = arith.constant dense<0.000000e+00> : vector<8x384xf32>
    %209 = tpu.matmul %196, %208, %cst_73 {dimension_numbers = #tpu.dot_dimension_numbers<[1], [0], [0], [1], [0, 0, 1, 1], [], []>} : vector<8x128xf32>, vector<128x384xf32>, vector<8x384xf32> -> vector<8x384xf32>
    %210 = vector.broadcast %4 : vector<1x384xf32> to vector<8x384xf32>
    %211 = arith.addf %209, %210 : vector<8x384xf32>
    %212 = vector.extract_strided_slice %207 {offsets = [0, 0], sizes = [8, 128], strides = [1, 1]} : vector<8x384xf32> to vector<8x128xf32>
    %213 = vector.extract_strided_slice %211 {offsets = [0, 0], sizes = [8, 128], strides = [1, 1]} : vector<8x384xf32> to vector<8x128xf32>
    %214 = arith.addf %212, %213 : vector<8x128xf32>
    %215 = arith.negf %214 : vector<8x128xf32>
    %216 = math.exp %215 : vector<8x128xf32>
    %cst_74 = arith.constant 1.000000e+00 : f32
    %217 = vector.broadcast %cst_74 : f32 to vector<8x128xf32>
    %218 = arith.addf %217, %216 : vector<8x128xf32>
    %219 = arith.divf %217, %218 : vector<8x128xf32>
    %220 = vector.extract_strided_slice %207 {offsets = [0, 128], sizes = [8, 128], strides = [1, 1]} : vector<8x384xf32> to vector<8x128xf32>
    %221 = vector.extract_strided_slice %211 {offsets = [0, 128], sizes = [8, 128], strides = [1, 1]} : vector<8x384xf32> to vector<8x128xf32>
    %222 = arith.addf %220, %221 : vector<8x128xf32>
    %223 = arith.negf %222 : vector<8x128xf32>
    %224 = math.exp %223 : vector<8x128xf32>
    %cst_75 = arith.constant 1.000000e+00 : f32
    %225 = vector.broadcast %cst_75 : f32 to vector<8x128xf32>
    %226 = arith.addf %225, %224 : vector<8x128xf32>
    %227 = arith.divf %225, %226 : vector<8x128xf32>
    %228 = vector.extract_strided_slice %207 {offsets = [0, 256], sizes = [8, 128], strides = [1, 1]} : vector<8x384xf32> to vector<8x128xf32>
    %229 = vector.extract_strided_slice %211 {offsets = [0, 256], sizes = [8, 128], strides = [1, 1]} : vector<8x384xf32> to vector<8x128xf32>
    %230 = arith.mulf %219, %229 : vector<8x128xf32>
    %231 = arith.addf %228, %230 : vector<8x128xf32>
    %232 = math.tanh %231 : vector<8x128xf32>
    %233 = arith.subf %196, %232 : vector<8x128xf32>
    %234 = arith.mulf %227, %233 : vector<8x128xf32>
    %235 = arith.addf %232, %234 : vector<8x128xf32>
    %236 = arith.index_cast %c5_i32 : i32 to index
    %c0_76 = arith.constant 0 : index
    %c0_77 = arith.constant 0 : index
    %237 = vector.load %arg7[%236, %c0_76, %c0_77] : memref<8x8x128xf32, #tpu.memory_space<vmem>>, vector<1x8x128xf32>
    %238 = vector.shape_cast %237 : vector<1x8x128xf32> to vector<8x128xf32>
    %239 = vector.shape_cast %235 : vector<8x128xf32> to vector<1x8x128xf32>
    tpu.vector_store %arg7[%236, %c0_76, %c0_77], %239 {strides = array<i32>} : memref<8x8x128xf32, #tpu.memory_space<vmem>>, vector<1x8x128xf32>,
    %c6_i32 = arith.constant 6 : i32
    %240 = arith.index_cast %c6_i32 : i32 to index
    %c0_78 = arith.constant 0 : index
    %c0_79 = arith.constant 0 : index
    %241 = vector.load %arg1[%240, %c0_78, %c0_79] : memref<8x8x128xf32, #tpu.memory_space<vmem>>, vector<1x8x128xf32>
    %242 = vector.shape_cast %241 : vector<1x8x128xf32> to vector<8x128xf32>
    %c0_80 = arith.constant 0 : index
    %c0_81 = arith.constant 0 : index
    %243 = vector.load %arg3[%c0_80, %c0_81] : memref<128x384xf32, #tpu.memory_space<vmem>>, vector<128x384xf32>
    %cst_82 = arith.constant dense<0.000000e+00> : vector<8x384xf32>
    %244 = tpu.matmul %242, %243, %cst_82 {dimension_numbers = #tpu.dot_dimension_numbers<[1], [0], [0], [1], [0, 0, 1, 1], [], []>} : vector<8x128xf32>, vector<128x384xf32>, vector<8x384xf32> -> vector<8x384xf32>
    %245 = vector.broadcast %3 : vector<1x384xf32> to vector<8x384xf32>
    %246 = arith.addf %244, %245 : vector<8x384xf32>
    %c0_83 = arith.constant 0 : index
    %c0_84 = arith.constant 0 : index
    %247 = vector.load %arg4[%c0_83, %c0_84] : memref<128x384xf32, #tpu.memory_space<vmem>>, vector<128x384xf32>
    %cst_85 = arith.constant dense<0.000000e+00> : vector<8x384xf32>
    %248 = tpu.matmul %235, %247, %cst_85 {dimension_numbers = #tpu.dot_dimension_numbers<[1], [0], [0], [1], [0, 0, 1, 1], [], []>} : vector<8x128xf32>, vector<128x384xf32>, vector<8x384xf32> -> vector<8x384xf32>
    %249 = vector.broadcast %4 : vector<1x384xf32> to vector<8x384xf32>
    %250 = arith.addf %248, %249 : vector<8x384xf32>
    %251 = vector.extract_strided_slice %246 {offsets = [0, 0], sizes = [8, 128], strides = [1, 1]} : vector<8x384xf32> to vector<8x128xf32>
    %252 = vector.extract_strided_slice %250 {offsets = [0, 0], sizes = [8, 128], strides = [1, 1]} : vector<8x384xf32> to vector<8x128xf32>
    %253 = arith.addf %251, %252 : vector<8x128xf32>
    %254 = arith.negf %253 : vector<8x128xf32>
    %255 = math.exp %254 : vector<8x128xf32>
    %cst_86 = arith.constant 1.000000e+00 : f32
    %256 = vector.broadcast %cst_86 : f32 to vector<8x128xf32>
    %257 = arith.addf %256, %255 : vector<8x128xf32>
    %258 = arith.divf %256, %257 : vector<8x128xf32>
    %259 = vector.extract_strided_slice %246 {offsets = [0, 128], sizes = [8, 128], strides = [1, 1]} : vector<8x384xf32> to vector<8x128xf32>
    %260 = vector.extract_strided_slice %250 {offsets = [0, 128], sizes = [8, 128], strides = [1, 1]} : vector<8x384xf32> to vector<8x128xf32>
    %261 = arith.addf %259, %260 : vector<8x128xf32>
    %262 = arith.negf %261 : vector<8x128xf32>
    %263 = math.exp %262 : vector<8x128xf32>
    %cst_87 = arith.constant 1.000000e+00 : f32
    %264 = vector.broadcast %cst_87 : f32 to vector<8x128xf32>
    %265 = arith.addf %264, %263 : vector<8x128xf32>
    %266 = arith.divf %264, %265 : vector<8x128xf32>
    %267 = vector.extract_strided_slice %246 {offsets = [0, 256], sizes = [8, 128], strides = [1, 1]} : vector<8x384xf32> to vector<8x128xf32>
    %268 = vector.extract_strided_slice %250 {offsets = [0, 256], sizes = [8, 128], strides = [1, 1]} : vector<8x384xf32> to vector<8x128xf32>
    %269 = arith.mulf %258, %268 : vector<8x128xf32>
    %270 = arith.addf %267, %269 : vector<8x128xf32>
    %271 = math.tanh %270 : vector<8x128xf32>
    %272 = arith.subf %235, %271 : vector<8x128xf32>
    %273 = arith.mulf %266, %272 : vector<8x128xf32>
    %274 = arith.addf %271, %273 : vector<8x128xf32>
    %275 = arith.index_cast %c6_i32 : i32 to index
    %c0_88 = arith.constant 0 : index
    %c0_89 = arith.constant 0 : index
    %276 = vector.load %arg7[%275, %c0_88, %c0_89] : memref<8x8x128xf32, #tpu.memory_space<vmem>>, vector<1x8x128xf32>
    %277 = vector.shape_cast %276 : vector<1x8x128xf32> to vector<8x128xf32>
    %278 = vector.shape_cast %274 : vector<8x128xf32> to vector<1x8x128xf32>
    tpu.vector_store %arg7[%275, %c0_88, %c0_89], %278 {strides = array<i32>} : memref<8x8x128xf32, #tpu.memory_space<vmem>>, vector<1x8x128xf32>,
    %c7_i32 = arith.constant 7 : i32
    %279 = arith.index_cast %c7_i32 : i32 to index
    %c0_90 = arith.constant 0 : index
    %c0_91 = arith.constant 0 : index
    %280 = vector.load %arg1[%279, %c0_90, %c0_91] : memref<8x8x128xf32, #tpu.memory_space<vmem>>, vector<1x8x128xf32>
    %281 = vector.shape_cast %280 : vector<1x8x128xf32> to vector<8x128xf32>
    %c0_92 = arith.constant 0 : index
    %c0_93 = arith.constant 0 : index
    %282 = vector.load %arg3[%c0_92, %c0_93] : memref<128x384xf32, #tpu.memory_space<vmem>>, vector<128x384xf32>
    %cst_94 = arith.constant dense<0.000000e+00> : vector<8x384xf32>
    %283 = tpu.matmul %281, %282, %cst_94 {dimension_numbers = #tpu.dot_dimension_numbers<[1], [0], [0], [1], [0, 0, 1, 1], [], []>} : vector<8x128xf32>, vector<128x384xf32>, vector<8x384xf32> -> vector<8x384xf32>
    %284 = vector.broadcast %3 : vector<1x384xf32> to vector<8x384xf32>
    %285 = arith.addf %283, %284 : vector<8x384xf32>
    %c0_95 = arith.constant 0 : index
    %c0_96 = arith.constant 0 : index
    %286 = vector.load %arg4[%c0_95, %c0_96] : memref<128x384xf32, #tpu.memory_space<vmem>>, vector<128x384xf32>
    %cst_97 = arith.constant dense<0.000000e+00> : vector<8x384xf32>
    %287 = tpu.matmul %274, %286, %cst_97 {dimension_numbers = #tpu.dot_dimension_numbers<[1], [0], [0], [1], [0, 0, 1, 1], [], []>} : vector<8x128xf32>, vector<128x384xf32>, vector<8x384xf32> -> vector<8x384xf32>
    %288 = vector.broadcast %4 : vector<1x384xf32> to vector<8x384xf32>
    %289 = arith.addf %287, %288 : vector<8x384xf32>
    %290 = vector.extract_strided_slice %285 {offsets = [0, 0], sizes = [8, 128], strides = [1, 1]} : vector<8x384xf32> to vector<8x128xf32>
    %291 = vector.extract_strided_slice %289 {offsets = [0, 0], sizes = [8, 128], strides = [1, 1]} : vector<8x384xf32> to vector<8x128xf32>
    %292 = arith.addf %290, %291 : vector<8x128xf32>
    %293 = arith.negf %292 : vector<8x128xf32>
    %294 = math.exp %293 : vector<8x128xf32>
    %cst_98 = arith.constant 1.000000e+00 : f32
    %295 = vector.broadcast %cst_98 : f32 to vector<8x128xf32>
    %296 = arith.addf %295, %294 : vector<8x128xf32>
    %297 = arith.divf %295, %296 : vector<8x128xf32>
    %298 = vector.extract_strided_slice %285 {offsets = [0, 128], sizes = [8, 128], strides = [1, 1]} : vector<8x384xf32> to vector<8x128xf32>
    %299 = vector.extract_strided_slice %289 {offsets = [0, 128], sizes = [8, 128], strides = [1, 1]} : vector<8x384xf32> to vector<8x128xf32>
    %300 = arith.addf %298, %299 : vector<8x128xf32>
    %301 = arith.negf %300 : vector<8x128xf32>
    %302 = math.exp %301 : vector<8x128xf32>
    %cst_99 = arith.constant 1.000000e+00 : f32
    %303 = vector.broadcast %cst_99 : f32 to vector<8x128xf32>
    %304 = arith.addf %303, %302 : vector<8x128xf32>
    %305 = arith.divf %303, %304 : vector<8x128xf32>
    %306 = vector.extract_strided_slice %285 {offsets = [0, 256], sizes = [8, 128], strides = [1, 1]} : vector<8x384xf32> to vector<8x128xf32>
    %307 = vector.extract_strided_slice %289 {offsets = [0, 256], sizes = [8, 128], strides = [1, 1]} : vector<8x384xf32> to vector<8x128xf32>
    %308 = arith.mulf %297, %307 : vector<8x128xf32>
    %309 = arith.addf %306, %308 : vector<8x128xf32>
    %310 = math.tanh %309 : vector<8x128xf32>
    %311 = arith.subf %274, %310 : vector<8x128xf32>
    %312 = arith.mulf %305, %311 : vector<8x128xf32>
    %313 = arith.addf %310, %312 : vector<8x128xf32>
    %314 = arith.index_cast %c7_i32 : i32 to index
    %c0_100 = arith.constant 0 : index
    %c0_101 = arith.constant 0 : index
    %315 = vector.load %arg7[%314, %c0_100, %c0_101] : memref<8x8x128xf32, #tpu.memory_space<vmem>>, vector<1x8x128xf32>
    %316 = vector.shape_cast %315 : vector<1x8x128xf32> to vector<8x128xf32>
    %317 = vector.shape_cast %313 : vector<8x128xf32> to vector<1x8x128xf32>
    tpu.vector_store %arg7[%314, %c0_100, %c0_101], %317 {strides = array<i32>} : memref<8x8x128xf32, #tpu.memory_space<vmem>>, vector<1x8x128xf32>,
    %c8_i32 = arith.constant 8 : i32
    %c0_102 = arith.constant 0 : index
    %c0_103 = arith.constant 0 : index
    %318 = vector.load %arg8[%c0_102, %c0_103] : memref<8x128xf32, #tpu.memory_space<vmem>>, vector<8x128xf32>
    tpu.vector_store %arg8[%c0_102, %c0_103], %313 {strides = array<i32>} : memref<8x128xf32, #tpu.memory_space<vmem>>, vector<8x128xf32>,
    return
  }
  func.func @transform_0(%arg0: i32) -> (i32, i32, i32) {
    %c0_i32 = arith.constant 0 : i32
    %c0_i32_0 = arith.constant 0 : i32
    %c0_i32_1 = arith.constant 0 : i32
    return %arg0, %c0_i32, %c0_i32_0 : i32, i32, i32
  }
  func.func @transform_1(%arg0: i32) -> (i32, i32) {
    %c0_i32 = arith.constant 0 : i32
    %c0_i32_0 = arith.constant 0 : i32
    %c0_i32_1 = arith.constant 0 : i32
    return %c0_i32, %c0_i32_0 : i32, i32
  }
  func.func @transform_2(%arg0: i32) -> (i32, i32) {
    %c0_i32 = arith.constant 0 : i32
    %c0_i32_0 = arith.constant 0 : i32
    %c0_i32_1 = arith.constant 0 : i32
    return %c0_i32, %c0_i32_0 : i32, i32
  }
  func.func @transform_3(%arg0: i32) -> (i32, i32) {
    %c0_i32 = arith.constant 0 : i32
    %c0_i32_0 = arith.constant 0 : i32
    %c0_i32_1 = arith.constant 0 : i32
    return %c0_i32, %c0_i32_0 : i32, i32
  }
  func.func @transform_4(%arg0: i32) -> (i32, i32) {
    %c0_i32 = arith.constant 0 : i32
    %c0_i32_0 = arith.constant 0 : i32
    %c0_i32_1 = arith.constant 0 : i32
    return %c0_i32, %c0_i32_0 : i32, i32
  }
  func.func @transform_5(%arg0: i32) -> (i32, i32) {
    %c0_i32 = arith.constant 0 : i32
    %c0_i32_0 = arith.constant 0 : i32
    %c0_i32_1 = arith.constant 0 : i32
    return %c0_i32, %c0_i32_0 : i32, i32
  }
  func.func @transform_6(%arg0: i32) -> (i32, i32, i32) {
    %c0_i32 = arith.constant 0 : i32
    %c0_i32_0 = arith.constant 0 : i32
    %c0_i32_1 = arith.constant 0 : i32
    return %arg0, %c0_i32, %c0_i32_0 : i32, i32, i32
  }
}

</mosaic_0001>

<bundles_post_ra>
// kernel: tpu_custom_call.1
= control target key start
LH: loop header
LB: loop body
LE: loop exit
PB: predicated region body
PF: predicated region fallthrough
CT: control target
= control target key end

     0   :  { %11 = vsyncpa [#allocation4], 0  ;;  %s4015_s0 = inlined_call_operand.hbm [shape: f32[8,8,128], index: 0, kind: input, shape index: {}]   ;;  %s4016_s1 = inlined_call_operand.hbm [shape: f32[8,128], index: 1, kind: input, shape index: {}]   ;;  %s4017_s2 = inlined_call_operand.hbm [shape: f32[128,384], index: 2, kind: input, shape index: {}]   ;;  %s4018_s3 = inlined_call_operand.hbm [shape: f32[128,384], index: 3, kind: input, shape index: {}]   ;;  %s4019_s4 = inlined_call_operand.vmem [shape: f32[1,384], index: 4, kind: input, shape index: {}]   ;;  %s4020_s5 = inlined_call_operand.hbm [shape: f32[1,384], index: 5, kind: input, shape index: {}]   ;;  %s4021_s6 = inlined_call_operand.hbm [shape: f32[8,8,128], index: 6, kind: output, shape index: {}]  }
   0x1   :  { %12 = vsyncpa [#allocation7], 0 }
   0x2   :  { %13 = vsyncpa [#allocation10], 0  ;;  %s33_s23 = sshll.u32 %s4016_s1, 4  ;;  %s34_s23 = int_to_ptr.hbm [resolvable:$true] %s33_s23 }
   0x3   :  { %14 = vsyncpa [#allocation5], 0  ;;  %s2527_s24 = smov [#allocation6]   ;;  %s56_s28 = sshll.u32 %s4018_s3, 4  ;;  %s57_s28 = int_to_ptr.hbm [resolvable:$true] %s56_s28 }
   0x4   :  { %s35_s25 = sshll.u32 %s2527_s24, 4  ;;  %s2528_s29 = smov [#allocation9]   ;;  %s36_s25 = int_to_ptr.vmem [resolvable:$true] %s35_s25 }
   0x5   :  { %38 = dma.hbm_to_vmem [thread:$0]  %s34_s23, 128, %s36_s25, [#allocation7]  }
   0x6   :  { %s58_s30 = sshll.u32 %s2528_s29, 4  ;;  %s19_s9 = sshll.u32 %s4015_s0, 4  ;;  %s59_s30 = int_to_ptr.vmem [resolvable:$true] %s58_s30  ;;  %s20_s9 = int_to_ptr.hbm [resolvable:$true] %s19_s9 }
   0x7   :  { %s2529_s1 = smov 384   ;;  %s2530_s10 = smov 24  }
   0x8   :  { %64 = dma.hbm_to_vmem [thread:$0]  %s57_s28, 6144, %s59_s30, [#allocation10], %s2529_s1, %s2529_s1, %s2530_s10  }
   0x9   :  { %s2531_s11 = smov [#allocation3]   ;;  %s43_s15 = sshll.u32 %s4017_s2, 4  ;;  %s44_s15 = int_to_ptr.hbm [resolvable:$true] %s43_s15 }
   0xa   :  { %s21_s12 = sshll.u32 %s2531_s11, 4  ;;  %s2532_s3 = smov 128   ;;  %s22_s12 = int_to_ptr.vmem [resolvable:$true] %s21_s12 }
   0xb   :  { %s2533_s16 = smov 8   ;;  %s2534_s0 = smov [#allocation8]  }
   0xc   :  { %27 = dma.hbm_to_vmem [thread:$0]  %s20_s9, 1024, %s22_s12, [#allocation4], %s2532_s3, %s2532_s3, %s2533_s16  }
   0xd   :  { %s45_s17 = sshll.u32 %s2534_s0, 4  ;;  %s72_s20 = sshll.u32 %s4020_s5, 4  ;;  %s46_s17 = int_to_ptr.vmem [resolvable:$true] %s45_s17  ;;  %s73_s20 = int_to_ptr.hbm [resolvable:$true] %s72_s20 }
   0xe   :  { %51 = dma.hbm_to_vmem [thread:$0]  %s44_s15, 6144, %s46_s17, [#allocation7], %s2529_s1, %s2529_s1, %s2530_s10  }
   0xf   :  { %s2535_s21 = smov [#allocation11]  }
  0x10   :  { %s74_s22 = sshll.u32 %s2535_s21, 4  ;;  %s75_s22 = int_to_ptr.vmem [resolvable:$true] %s74_s22 }
  0x11   :  { %77 = dma.hbm_to_vmem [thread:$0]  %s73_s20, 48, %s75_s22, [#allocation10]  }
  0x12   :  { %2519 = dma.done.wait [#allocation4], 1024  }
  0x13   :  { %2520 = vsyncadd [#allocation4], 4294966272 }
  0x14   :  { %2521 = dma.done.wait [#allocation7], 6272  }
  0x15   :  { %2522 = vsyncadd [#allocation7], 4294961024 }
  0x16   :  { %2523 = dma.done.wait [#allocation10], 6192  }
  0x17   :  { %2524 = vsyncadd [#allocation10], 4294961104  ;;  %v2590_v0 = vld [vmem:[#allocation8 + $0x168] sm:$0xff]  ;;  %v2594_v2 = vld [vmem:[#allocation8 + $0x150] sm:$0xff]  ;;  %s2254_s26 = sshll.u32 %s4021_s6, 4  ;;  %s2255_s26 = int_to_ptr.hbm [resolvable:$true] %s2254_s26 }
  0x18   :  { %v2592_v1 = vld [vmem:[#allocation9 + $0x168] sm:$0xff]  ;;  %163 = vmatpush.msra.mxu0 %v2590_v0  ;;  %v2598_v3 = vld [vmem:[#allocation9 + $0x150] sm:$0xff]  ;;  %v2600_v4 = vld [vmem:[#allocation8 + $0x138] sm:$0xff] }
  0x19   :  { %278 = vmatpush.msra.mxu3 %v2592_v1  ;;  %v2602_v5 = vld [vmem:[#allocation9 + $0x138] sm:$0xff]  ;;  %v2604_v6 = vld [vmem:[#allocation8 + $0x170] sm:$0xff]  ;;  %v2611_v8 = vld [vmem:[#allocation8 + $0x120] sm:$0xff] }
  0x1a   :  { %4134 = vst [vmem:[#allocation17_spill] sm:$0xff] %v2604_v6  ;;  %164 = vmatpush.msra.mxu0 %v2594_v2  ;;  %v2608_v7 = vld [vmem:[#allocation8 + $0x158] sm:$0xff]  ;;  %183 = vmatpush.msra.mxu1 %v2604_v6  ;;  %v2613_v9 = vld [vmem:[#allocation9 + $0x120] sm:$0xff]  ;;  %v2620_v11 = vld [vmem:[#allocation8 + $0x108] sm:$0xff] }
  0x1b   :  { %279 = vmatpush.msra.mxu3 %v2598_v3  ;;  %4135 = vst [vmem:[#allocation18_spill] sm:$0xff] %v2608_v7  ;;  %v2617_v10 = vld [vmem:[#allocation8 + $0x140] sm:$0xff]  ;;  %v2622_v12 = vld [vmem:[#allocation9 + $0x108] sm:$0xff]  ;;  %v2629_v14 = vld [vmem:[#allocation8 + $0xf0] sm:$0xff] }
  0x1c   :  { %165 = vmatpush.msra.mxu0 %v2600_v4  ;;  %4136 = vst [vmem:[#allocation19_spill] sm:$0xff] %v2617_v10  ;;  %184 = vmatpush.msra.mxu1 %v2608_v7  ;;  %v2626_v13 = vld [vmem:[#allocation8 + $0x128] sm:$0xff]  ;;  %v2631_v15 = vld [vmem:[#allocation9 + $0xf0] sm:$0xff]  ;;  %v2638_v17 = vld [vmem:[#allocation8 + $0xd8] sm:$0xff] }
  0x1d   :  { %280 = vmatpush.msra.mxu3 %v2602_v5  ;;  %4137 = vst [vmem:[#allocation20_spill] sm:$0xff] %v2626_v13  ;;  %v2635_v16 = vld [vmem:[#allocation8 + $0x110] sm:$0xff]  ;;  %v2640_v18 = vld [vmem:[#allocation9 + $0xd8] sm:$0xff]  ;;  %v2647_v20 = vld [vmem:[#allocation8 + $0xc0] sm:$0xff] }
  0x1e   :  { %166 = vmatpush.msra.mxu0 %v2611_v8  ;;  %185 = vmatpush.msra.mxu1 %v2617_v10  ;;  %4138 = vst [vmem:[#allocation21_spill] sm:$0xff] %v2635_v16  ;;  %v2644_v19 = vld [vmem:[#allocation8 + $0xf8] sm:$0xff]  ;;  %v2649_v21 = vld [vmem:[#allocation9 + $0xc0] sm:$0xff]  ;;  %v2656_v23 = vld [vmem:[#allocation8 + $0xa8] sm:$0xff] }
  0x1f   :  { %281 = vmatpush.msra.mxu3 %v2613_v9  ;;  %4139 = vst [vmem:[#allocation22_spill] sm:$0xff] %v2644_v19  ;;  %v2653_v22 = vld [vmem:[#allocation8 + $0xe0] sm:$0xff]  ;;  %v2658_v24 = vld [vmem:[#allocation9 + $0xa8] sm:$0xff]  ;;  %v2665_v26 = vld [vmem:[#allocation8 + $0x90] sm:$0xff] }
  0x20   :  { %167 = vmatpush.msra.mxu0 %v2620_v11  ;;  %186 = vmatpush.msra.mxu1 %v2626_v13  ;;  %4140 = vst [vmem:[#allocation23_spill] sm:$0xff] %v2653_v22  ;;  %v2662_v25 = vld [vmem:[#allocation8 + $0xc8] sm:$0xff]  ;;  %v2667_v27 = vld [vmem:[#allocation9 + $0x90] sm:$0xff]  ;;  %v2669_v28 = vld [vmem:[#allocation8 + $0x178] sm:$0xff] }
  0x21   :  { %282 = vmatpush.msra.mxu3 %v2622_v12  ;;  %4141 = vst [vmem:[#allocation24_spill] sm:$0xff] %v2662_v25  ;;  %v2673_v29 = vld [vmem:[#allocation8 + $0xb0] sm:$0xff]  ;;  %v2675_v30 = vld [vmem:[#allocation8 + $0x160] sm:$0xff]  ;;  %v2678_v31 = vld [vmem:[#allocation8 + $0x78] sm:$0xff]  ;;  %203 = vmatpush.msra.mxu2 %v2669_v28 }
  0x22   :  { %168 = vmatpush.msra.mxu0 %v2629_v14  ;;  %187 = vmatpush.msra.mxu1 %v2635_v16  ;;  %4142 = vst [vmem:[#allocation25_spill] sm:$0xff] %v2673_v29  ;;  %v2680_v32 = vld [vmem:[#allocation9 + $0x78] sm:$0xff]  ;;  %v2687_v34 = vld [vmem:[#allocation8 + $0x148] sm:$0xff]  ;;  %v2690_v35 = vld [vmem:[#allocation8 + $0x60] sm:$0xff] }
  0x23   :  { %283 = vmatpush.msra.mxu3 %v2631_v15  ;;  %4143 = vst [vmem:[#allocation26_spill] sm:$0xff] %v2680_v32  ;;  %v2685_v33 = vld [vmem:[#allocation8 + $0x98] sm:$0xff]  ;;  %v2692_v36 = vld [vmem:[#allocation9 + $0x60] sm:$0xff]  ;;  %204 = vmatpush.msra.mxu2 %v2675_v30  ;;  %v2699_v38 = vld [vmem:[#allocation8 + $0x130] sm:$0xff] }
  0x24   :  { %169 = vmatpush.msra.mxu0 %v2638_v17  ;;  %188 = vmatpush.msra.mxu1 %v2644_v19  ;;  %4144 = vst [vmem:[#allocation27_spill] sm:$0xff] %v2685_v33  ;;  %v2697_v37 = vld [vmem:[#allocation8 + $0x80] sm:$0xff]  ;;  %v2702_v39 = vld [vmem:[#allocation8 + $0x48] sm:$0xff]  ;;  %v2711_v42 = vld [vmem:[#allocation8 + $0x118] sm:$0xff] }
  0x25   :  { %284 = vmatpush.msra.mxu3 %v2640_v18  ;;  %4145 = vst [vmem:[#allocation28_spill] sm:$0xff] %v2692_v36  ;;  %v2704_v40 = vld [vmem:[#allocation9 + $0x48] sm:$0xff]  ;;  %205 = vmatpush.msra.mxu2 %v2687_v34  ;;  %v2714_v43 = vld [vmem:[#allocation8 + $0x30] sm:$0xff]  ;;  %v2723_v46 = vld [vmem:[#allocation8 + $0x100] sm:$0xff] }
  0x26   :  { %170 = vmatpush.msra.mxu0 %v2647_v20  ;;  %189 = vmatpush.msra.mxu1 %v2653_v22  ;;  %4146 = vst [vmem:[#allocation29_spill] sm:$0xff] %v2697_v37  ;;  %v2709_v41 = vld [vmem:[#allocation8 + $0x68] sm:$0xff]  ;;  %v2716_v44 = vld [vmem:[#allocation9 + $0x30] sm:$0xff]  ;;  %v2726_v47 = vld [vmem:[#allocation8 + $0x18] sm:$0xff] }
  0x27   :  { %285 = vmatpush.msra.mxu3 %v2649_v21  ;;  %4147 = vst [vmem:[#allocation30_spill] sm:$0xff] %v2704_v40  ;;  %206 = vmatpush.msra.mxu2 %v2699_v38  ;;  %v2721_v45 = vld [vmem:[#allocation8 + $0x50] sm:$0xff]  ;;  %v2728_v48 = vld [vmem:[#allocation9 + $0x18] sm:$0xff]  ;;  %v2735_v50 = vld [vmem:[#allocation8 + $0xe8] sm:$0xff] }
  0x28   :  { %171 = vmatpush.msra.mxu0 %v2656_v23  ;;  %190 = vmatpush.msra.mxu1 %v2662_v25  ;;  %4148 = vst [vmem:[#allocation31_spill] sm:$0xff] %v2716_v44  ;;  %v2733_v49 = vld [vmem:[#allocation8 + $0x38] sm:$0xff]  ;;  %v2738_v51 = vld [vmem:[#allocation8] sm:$0xff]  ;;  %v2747_v54 = vld [vmem:[#allocation9 + $0x170] sm:$0xff] }
  0x29   :  { %286 = vmatpush.msra.mxu3 %v2658_v24  ;;  %4149 = vst [vmem:[#allocation32_spill] sm:$0xff] %v2728_v48  ;;  %207 = vmatpush.msra.mxu2 %v2711_v42  ;;  %v2740_v52 = vld [vmem:[#allocation9] sm:$0xff]  ;;  %v2745_v53 = vld [vmem:[#allocation6] sm:$0xff]  ;;  %v2759_v58 = vld [vmem:[#allocation8 + $0xd0] sm:$0xff] }
  0x2a   :  { %172 = vmatpush.msra.mxu0 %v2665_v26  ;;  %191 = vmatpush.msra.mxu1 %v2673_v29  ;;  %4150 = vst [vmem:[#allocation33_spill] sm:$0xff] %v2740_v52  ;;  %v2750_v55 = vld [vmem:[#allocation8 + $0x20] sm:$0xff]  ;;  %v2752_v56 = vld [vmem:[#allocation3] sm:$0xff]  ;;  %v2763_v59 = vld [vmem:[#allocation8 + $0x8] sm:$0xff] }
  0x2b   :  { %287 = vmatpush.msra.mxu3 %v2667_v27  ;;  %208 = vmatpush.msra.mxu2 %v2723_v46  ;;  %v2757_v57 = vld [vmem:[#allocation9 + $0x158] sm:$0xff]  ;;  %v2766_v60 = vld [vmem:[#allocation9 + $0x140] sm:$0xff]  ;;  %v2776_v63 = vld [vmem:[#allocation9 + $0x128] sm:$0xff] }
  0x2c   :  { %173 = vmatpush.msra.mxu0 %v2678_v31  ;;  %192 = vmatpush.msra.mxu1 %v2685_v33  ;;  %4151 = vst [vmem:[#allocation34_spill] sm:$0xff] %v2757_v57  ;;  %v2768_v61 = vld [vmem:[#allocation9 + $0x178] sm:$0xff] }
  0x2d   :  { %288 = vmatpush.msra.mxu3 %v2680_v32  ;;  %209 = vmatpush.msra.mxu2 %v2735_v50  ;;  %4152 = vst [vmem:[#allocation35_spill] sm:$0xff] %v2766_v60  ;;  %v2773_v62 = vld [vmem:[#allocation8 + $0xb8] sm:$0xff]  ;;  %v2803_v32 = vld [vmem:[#allocation8 + $0x70] sm:$0xff] }
  0x2e   :  { %174 = vmatpush.msra.mxu0 %v2690_v35  ;;  %193 = vmatpush.msra.mxu1 %v2697_v37  ;;  %4153 = vst [vmem:[#allocation36_spill] sm:$0xff] %v2776_v63 }
  0x2f   :  { %289 = vmatpush.msra.mxu3 %v2692_v36  ;;  %210 = vmatpush.msra.mxu2 %v2759_v58  ;;  %v2793_v36 = vld [vmem:[#allocation8 + $0x88] sm:$0xff]  ;;  %4158 = vst [vmem:[#allocation41_spill] sm:$0xff] %v2803_v32 }
  0x30   :  { %175 = vmatpush.msra.mxu0 %v2702_v39  ;;  %194 = vmatpush.msra.mxu1 %v2709_v41  ;;  %4156 = vst [vmem:[#allocation39_spill] sm:$0xff] %v2793_v36 }
  0x31   :  { %290 = vmatpush.msra.mxu3 %v2704_v40  ;;  %v2787_v40 = vld [vmem:[#allocation9 + $0x148] sm:$0xff]  ;;  %211 = vmatpush.msra.mxu2 %v2773_v62 }
  0x32   :  { %176 = vmatpush.msra.mxu0 %v2714_v43  ;;  %195 = vmatpush.msra.mxu1 %v2721_v45 }
  0x33   :  { %291 = vmatpush.msra.mxu3 %v2716_v44  ;;  %v2785_v44 = vld [vmem:[#allocation9 + $0x110] sm:$0xff] }
  0x34   :  { %177 = vmatpush.msra.mxu0 %v2726_v47  ;;  %196 = vmatpush.msra.mxu1 %v2733_v49  ;;  %4155 = vst [vmem:[#allocation38_spill] sm:$0xff] %v2785_v44 }
  0x35   :  { %292 = vmatpush.msra.mxu3 %v2728_v48  ;;  %v2783_v48 = vld [vmem:[#allocation8 + $0xa0] sm:$0xff] }
  0x36   :  { %178 = vmatpush.msra.mxu0 %v2738_v51  ;;  %197 = vmatpush.msra.mxu1 %v2750_v55  ;;  %4154 = vst [vmem:[#allocation37_spill] sm:$0xff] %v2783_v48 }
  0x37   :  { %293 = vmatpush.msra.mxu3 %v2740_v52  ;;  %179 = vmatmul.f32.vlgmr.msra.gmra.mxu0 %v2752_v56  ;;  %v2778_v52 = vld [vmem:[#allocation9 + $0x160] sm:$0xff] }
  0x38   :  { %294 = vmatmul.f32.vlgmr.msra.gmra.mxu3 %v2745_v53  ;;  %298 = vmatpush.msrb.mxu0 %v2747_v54 }
  0x39   :  { %198 = vmatpush.msra.mxu1 %v2763_v59  ;;  %455 = vmatpush.msrb.mxu3 %v2604_v6  ;;  %v2795_v6 = vld [vmem:[#allocation9 + $0xf8] sm:$0xff] }
  0x3a   :  { %299 = vmatpush.msrb.mxu0 %v2757_v57  ;;  %199 = vmatmul.f32.vlgmr.msra.gmra.mxu1 %v2752_v56  ;;  %4157 = vst [vmem:[#allocation40_spill] sm:$0xff] %v2795_v6  ;;  %v2805_v57 = vld [vmem:[#allocation9 + $0xe0] sm:$0xff] }
  0x3b   :  { %318 = vmatpush.msrb.mxu1 %v2768_v61  ;;  %212 = vmatpush.msra.mxu2 %v2783_v48  ;;  %4159 = vst [vmem:[#allocation42_spill] sm:$0xff] %v2805_v57  ;;  %v2813_v48 = vld [vmem:[#allocation8 + $0x58] sm:$0xff] }
  0x3c   :  { %300 = vmatpush.msrb.mxu0 %v2766_v60  ;;  %v2797_v60 = vld [vmem:[#allocation9 + $0x130] sm:$0xff]  ;;  %456 = vmatpush.msrb.mxu3 %v2608_v7  ;;  %4160 = vst [vmem:[#allocation43_spill] sm:$0xff] %v2813_v48  ;;  %v2815_v7 = vld [vmem:[#allocation9 + $0xc8] sm:$0xff] }
  0x3d   :  { %319 = vmatpush.msrb.mxu1 %v2778_v52  ;;  %213 = vmatpush.msra.mxu2 %v2793_v36  ;;  %4161 = vst [vmem:[#allocation44_spill] sm:$0xff] %v2815_v7  ;;  %v2823_v36 = vld [vmem:[#allocation8 + $0x40] sm:$0xff] }
  0x3e   :  { %301 = vmatpush.msrb.mxu0 %v2776_v63  ;;  %v2807_v63 = vld [vmem:[#allocation9 + $0x118] sm:$0xff]  ;;  %457 = vmatpush.msrb.mxu3 %v2617_v10  ;;  %4162 = vst [vmem:[#allocation45_spill] sm:$0xff] %v2823_v36  ;;  %v2825_v10 = vld [vmem:[#allocation9 + $0xb0] sm:$0xff] }
  0x3f   :  { %320 = vmatpush.msrb.mxu1 %v2787_v40  ;;  %214 = vmatpush.msra.mxu2 %v2803_v32  ;;  %4163 = vst [vmem:[#allocation46_spill] sm:$0xff] %v2825_v10  ;;  %v2833_v32 = vld [vmem:[#allocation8 + $0x28] sm:$0xff] }
  0x40   :  { %302 = vmatpush.msrb.mxu0 %v2785_v44  ;;  %v2817_v44 = vld [vmem:[#allocation9 + $0x100] sm:$0xff]  ;;  %458 = vmatpush.msrb.mxu3 %v2626_v13  ;;  %4164 = vst [vmem:[#allocation47_spill] sm:$0xff] %v2833_v32  ;;  %v2835_v13 = vld [vmem:[#allocation9 + $0x98] sm:$0xff] }
  0x41   :  { %321 = vmatpush.msrb.mxu1 %v2797_v60  ;;  %215 = vmatpush.msra.mxu2 %v2813_v48  ;;  %4165 = vst [vmem:[#allocation48_spill] sm:$0xff] %v2835_v13  ;;  %v2843_v48 = vld [vmem:[#allocation8 + $0x10] sm:$0xff] }
  0x42   :  { %303 = vmatpush.msrb.mxu0 %v2795_v6  ;;  %v2827_v6 = vld [vmem:[#allocation9 + $0xe8] sm:$0xff]  ;;  %459 = vmatpush.msrb.mxu3 %v2635_v16  ;;  %v2845_v16 = vld [vmem:[#allocation9 + $0x80] sm:$0xff] }
  0x43   :  { %322 = vmatpush.msrb.mxu1 %v2807_v63  ;;  %216 = vmatpush.msra.mxu2 %v2823_v36  ;;  %v2853_v36 = vld [vmem:[#allocation9 + $0x68] sm:$0xff] }
  0x44   :  { %304 = vmatpush.msrb.mxu0 %v2805_v57  ;;  %v2837_v57 = vld [vmem:[#allocation9 + $0xd0] sm:$0xff]  ;;  %460 = vmatpush.msrb.mxu3 %v2644_v19  ;;  %4166 = vst [vmem:[#allocation49_spill] sm:$0xff] %v2853_v36  ;;  %v2855_v19 = vld [vmem:[#allocation9 + $0xa0] sm:$0xff] }
  0x45   :  { %323 = vmatpush.msrb.mxu1 %v2817_v44  ;;  %217 = vmatpush.msra.mxu2 %v2833_v32  ;;  %v2863_v32 = vld [vmem:[#allocation9 + $0x88] sm:$0xff] }
  0x46   :  { %305 = vmatpush.msrb.mxu0 %v2815_v7  ;;  %v2847_v7 = vld [vmem:[#allocation9 + $0xb8] sm:$0xff]  ;;  %461 = vmatpush.msrb.mxu3 %v2653_v22 }
  0x47   :  { %324 = vmatpush.msrb.mxu1 %v2827_v6  ;;  %218 = vmatpush.msra.mxu2 %v2843_v48  ;;  %v2869_v22 = vld [vmem:[#allocation9 + $0x38] sm:$0xff] }
  0x48   :  { %306 = vmatpush.msrb.mxu0 %v2825_v10  ;;  %462 = vmatpush.msrb.mxu3 %v2662_v25  ;;  %v2861_v10 = vld [vmem:[#allocation9 + $0x50] sm:$0xff]  ;;  %v2877_v25 = vld [vmem:[#allocation9 + $0x20] sm:$0xff] }
  0x49   :  { %325 = vmatpush.msrb.mxu1 %v2837_v57  ;;  %219 = vmatmul.f32.vlgmr.msra.gmra.mxu2 %v2752_v56  ;;  %v2879_v56 = vld [vmem:[#allocation9 + $0x58] sm:$0xff] }
  0x4a   :  { %307 = vmatpush.msrb.mxu0 %v2835_v13  ;;  %463 = vmatpush.msrb.mxu3 %v2673_v29  ;;  %v2871_v13 = vld [vmem:[#allocation9 + $0x70] sm:$0xff]  ;;  %v2885_v29 = vld [vmem:[#allocation9 + $0x8] sm:$0xff] }
  0x4b   :  { %326 = vmatpush.msrb.mxu1 %v2847_v7  ;;  %435 = vmatpush.msrb.mxu2 %v2590_v0 }
  0x4c   :  { %308 = vmatpush.msrb.mxu0 %v2845_v16  ;;  %464 = vmatpush.msrb.mxu3 %v2685_v33  ;;  %v2893_v33 = vld [vmem:[#allocation9 + $0x28] sm:$0xff] }
  0x4d   :  { %327 = vmatpush.msrb.mxu1 %v2855_v19  ;;  %436 = vmatpush.msrb.mxu2 %v2594_v2 }
  0x4e   :  { %309 = vmatpush.msrb.mxu0 %v2853_v36  ;;  %465 = vmatpush.msrb.mxu3 %v2697_v37  ;;  %v2887_v36 = vld [vmem:[#allocation9 + $0x40] sm:$0xff]  ;;  %v2900_v37 = vld [vmem:[#allocation9 + $0x10] sm:$0xff] }
  0x4f   :  { %328 = vmatpush.msrb.mxu1 %v2863_v32  ;;  %437 = vmatpush.msrb.mxu2 %v2600_v4 }
  0x50   :  { %310 = vmatpush.msrb.mxu0 %v2861_v10  ;;  %466 = vmatpush.msrb.mxu3 %v2709_v41 }
  0x51   :  { %329 = vmatpush.msrb.mxu1 %v2871_v13  ;;  %438 = vmatpush.msrb.mxu2 %v2611_v8 }
  0x52   :  { %311 = vmatpush.msrb.mxu0 %v2869_v22  ;;  %467 = vmatpush.msrb.mxu3 %v2721_v45 }
  0x53   :  { %330 = vmatpush.msrb.mxu1 %v2879_v56  ;;  %439 = vmatpush.msrb.mxu2 %v2620_v11 }
  0x54   :  { %312 = vmatpush.msrb.mxu0 %v2877_v25  ;;  %468 = vmatpush.msrb.mxu3 %v2733_v49 }
  0x55   :  { %331 = vmatpush.msrb.mxu1 %v2887_v36  ;;  %440 = vmatpush.msrb.mxu2 %v2629_v14 }
  0x56   :  { %313 = vmatpush.msrb.mxu0 %v2885_v29  ;;  %469 = vmatpush.msrb.mxu3 %v2750_v55 }
  0x57   :  { %314 = vmatmul.f32.vlgmr.msrb.gmra.mxu0 %v2745_v53  ;;  %332 = vmatpush.msrb.mxu1 %v2893_v33 }
  0x58   :  { %475 = vmatpush.msra.mxu0 %v2669_v28  ;;  %441 = vmatpush.msrb.mxu2 %v2638_v17  ;;  %v4177_v28 = vld [vmem:[#allocation38_spill] sm:$0xff] }
  0x59   :  { %333 = vmatpush.msrb.mxu1 %v2900_v37  ;;  %470 = vmatpush.msrb.mxu3 %v2763_v59 }
  0x5a   :  { %334 = vmatmul.f32.vlgmr.msrb.gmra.mxu1 %v2745_v53  ;;  %442 = vmatpush.msrb.mxu2 %v2647_v20 }
  0x5b   :  { %543 = vmatpush.msra.mxu1 %v2592_v1  ;;  %583 = vmatpush.msra.mxu3 %v2768_v61  ;;  %v4167_v1 = vld [vmem:[#allocation37_spill] sm:$0xff] }
  0x5c   :  { %476 = vmatpush.msra.mxu0 %v2675_v30  ;;  %443 = vmatpush.msrb.mxu2 %v2656_v23  ;;  %v4178_v30 = vld [vmem:[#allocation31_spill] sm:$0xff] }
  0x5d   :  { %544 = vmatpush.msra.mxu1 %v2598_v3  ;;  %584 = vmatpush.msra.mxu3 %v2778_v52  ;;  %v4168_v3 = vld [vmem:[#allocation34_spill] sm:$0xff] }
  0x5e   :  { %477 = vmatpush.msra.mxu0 %v2687_v34  ;;  %444 = vmatpush.msrb.mxu2 %v2665_v26  ;;  %v4179_v34 = vld [vmem:[#allocation45_spill] sm:$0xff] }
  0x5f   :  { %545 = vmatpush.msra.mxu1 %v2602_v5  ;;  %585 = vmatpush.msra.mxu3 %v2787_v40  ;;  %v4169_v5 = vld [vmem:[#allocation26_spill] sm:$0xff] }
  0x60   :  { %478 = vmatpush.msra.mxu0 %v2699_v38  ;;  %445 = vmatpush.msrb.mxu2 %v2678_v31  ;;  %v4180_v38 = vld [vmem:[#allocation40_spill] sm:$0xff] }
  0x61   :  { %546 = vmatpush.msra.mxu1 %v2613_v9  ;;  %586 = vmatpush.msra.mxu3 %v2797_v60  ;;  %v4170_v9 = vld [vmem:[#allocation39_spill] sm:$0xff] }
  0x62   :  { %479 = vmatpush.msra.mxu0 %v2711_v42  ;;  %446 = vmatpush.msrb.mxu2 %v2690_v35  ;;  %v4181_v42 = vld [vmem:[#allocation32_spill] sm:$0xff] }
  0x63   :  { %547 = vmatpush.msra.mxu1 %v2622_v12  ;;  %587 = vmatpush.msra.mxu3 %v2807_v63  ;;  %v4171_v12 = vld [vmem:[#allocation35_spill] sm:$0xff] }
  0x64   :  { %480 = vmatpush.msra.mxu0 %v2723_v46  ;;  %447 = vmatpush.msrb.mxu2 %v2702_v39  ;;  %v4182_v46 = vld [vmem:[#allocation47_spill] sm:$0xff] }
  0x65   :  { %548 = vmatpush.msra.mxu1 %v2631_v15  ;;  %588 = vmatpush.msra.mxu3 %v2817_v44  ;;  %v4172_v15 = vld [vmem:[#allocation28_spill] sm:$0xff] }
  0x66   :  { %481 = vmatpush.msra.mxu0 %v2735_v50  ;;  %448 = vmatpush.msrb.mxu2 %v2714_v43  ;;  %v4183_v50 = vld [vmem:[#allocation42_spill] sm:$0xff] }
  0x67   :  { %549 = vmatpush.msra.mxu1 %v2640_v18  ;;  %589 = vmatpush.msra.mxu3 %v2827_v6  ;;  %v4173_v18 = vld [vmem:[#allocation41_spill] sm:$0xff] }
  0x68   :  { %482 = vmatpush.msra.mxu0 %v2759_v58  ;;  %449 = vmatpush.msrb.mxu2 %v2726_v47  ;;  %v4184_v58 = vld [vmem:[#allocation33_spill] sm:$0xff] }
  0x69   :  { %550 = vmatpush.msra.mxu1 %v2649_v21  ;;  %590 = vmatpush.msra.mxu3 %v2837_v57  ;;  %v4174_v21 = vld [vmem:[#allocation36_spill] sm:$0xff] }
  0x6a   :  { %483 = vmatpush.msra.mxu0 %v2773_v62  ;;  %450 = vmatpush.msrb.mxu2 %v2738_v51  ;;  %v4185_v62 = vld [vmem:[#allocation44_spill] sm:$0xff] }
  0x6b   :  { %551 = vmatpush.msra.mxu1 %v2658_v24  ;;  %591 = vmatpush.msra.mxu3 %v2847_v7  ;;  %v4175_v24 = vld [vmem:[#allocation30_spill] sm:$0xff] }
  0x6c   :  { %563 = vmatpush.msra.mxu2 %v2747_v54  ;;  %484 = vmatpush.msra.mxu0 %v4167_v1  ;;  %v4186_v1 = vld [vmem:[#allocation17_spill] sm:$0xff] }
  0x6d   :  { %552 = vmatpush.msra.mxu1 %v2667_v27  ;;  %592 = vmatpush.msra.mxu3 %v2855_v19  ;;  %v4176_v27 = vld [vmem:[#allocation43_spill] sm:$0xff] }
  0x6e   :  { %564 = vmatpush.msra.mxu2 %v4168_v3  ;;  %485 = vmatpush.msra.mxu0 %v4170_v9  ;;  %v4188_v9 = vld [vmem:[#allocation18_spill] sm:$0xff] }
  0x6f   :  { %553 = vmatpush.msra.mxu1 %v4169_v5  ;;  %593 = vmatpush.msra.mxu3 %v2863_v32  ;;  %v4187_v5 = vld [vmem:[#allocation46_spill] sm:$0xff] }
  0x70   :  { %565 = vmatpush.msra.mxu2 %v4171_v12  ;;  %486 = vmatpush.msra.mxu0 %v4173_v18  ;;  %v4190_v18 = vld [vmem:[#allocation19_spill] sm:$0xff] }
  0x71   :  { %554 = vmatpush.msra.mxu1 %v4172_v15  ;;  %594 = vmatpush.msra.mxu3 %v2871_v13  ;;  %v4189_v15 = vld [vmem:[#allocation48_spill] sm:$0xff] }
  0x72   :  { %566 = vmatpush.msra.mxu2 %v4174_v21  ;;  %487 = vmatpush.msra.mxu0 %v4176_v27 }
  0x73   :  { %555 = vmatpush.msra.mxu1 %v4175_v24  ;;  %595 = vmatpush.msra.mxu3 %v2879_v56  ;;  %v4193_v24 = vld [vmem:[#allocation21_spill] sm:$0xff] }
  0x74   :  { %567 = vmatpush.msra.mxu2 %v4177_v28  ;;  %488 = vmatpush.msra.mxu0 %v4179_v34 }
  0x75   :  { %556 = vmatpush.msra.mxu1 %v4178_v30  ;;  %596 = vmatpush.msra.mxu3 %v2887_v36 }
  0x76   :  { %568 = vmatpush.msra.mxu2 %v4180_v38  ;;  %489 = vmatpush.msra.mxu0 %v4182_v46 }
  0x77   :  { %557 = vmatpush.msra.mxu1 %v4181_v42  ;;  %597 = vmatpush.msra.mxu3 %v2893_v33 }
  0x78   :  { %569 = vmatpush.msra.mxu2 %v4183_v50  ;;  %490 = vmatpush.msra.mxu0 %v2843_v48  ;;  %v4191_v48 = vld [vmem:[#allocation20_spill] sm:$0xff] }
  0x79   :  { %558 = vmatpush.msra.mxu1 %v4184_v58  ;;  %598 = vmatpush.msra.mxu3 %v2900_v37 }
  0x7a   :  { %570 = vmatpush.msra.mxu2 %v4185_v62  ;;  %701 = vmatpush.msrb.mxu0 %v2590_v0  ;;  %v4192_v0 = vld [vmem:[#allocation49_spill] sm:$0xff] }
  0x7b   :  { %721 = vmatpush.msrb.mxu1 %v4186_v1 }
  0x7c   :  { %571 = vmatpush.msra.mxu2 %v4187_v5  ;;  %702 = vmatpush.msrb.mxu0 %v2594_v2  ;;  %v4194_v2 = vld [vmem:[#allocation22_spill] sm:$0xff] }
  0x7d   :  { %722 = vmatpush.msrb.mxu1 %v4188_v9 }
  0x7e   :  { %572 = vmatpush.msra.mxu2 %v4189_v15  ;;  %703 = vmatpush.msrb.mxu0 %v2600_v4  ;;  %v4195_v4 = vld [vmem:[#allocation23_spill] sm:$0xff] }
  0x7f   :  { %723 = vmatpush.msrb.mxu1 %v4190_v18 }
  0x80   :  { %573 = vmatpush.msra.mxu2 %v2845_v16  ;;  %704 = vmatpush.msrb.mxu0 %v2611_v8  ;;  %v4196_v8 = vld [vmem:[#allocation24_spill] sm:$0xff] }
  0x81   :  { %724 = vmatpush.msrb.mxu1 %v4191_v48 }
  0x82   :  { %574 = vmatpush.msra.mxu2 %v4192_v0  ;;  %705 = vmatpush.msrb.mxu0 %v2620_v11  ;;  %v4197_v11 = vld [vmem:[#allocation25_spill] sm:$0xff] }
  0x83   :  { %725 = vmatpush.msrb.mxu1 %v4193_v24 }
  0x84   :  { %575 = vmatpush.msra.mxu2 %v2861_v10  ;;  %706 = vmatpush.msrb.mxu0 %v2629_v14  ;;  %v4198_v14 = vld [vmem:[#allocation27_spill] sm:$0xff] }
  0x85   :  { %726 = vmatpush.msrb.mxu1 %v4194_v2 }
  0x86   :  { %576 = vmatpush.msra.mxu2 %v2869_v22  ;;  %707 = vmatpush.msrb.mxu0 %v2638_v17  ;;  %v4199_v17 = vld [vmem:[#allocation29_spill] sm:$0xff] }
  0x87   :  { %727 = vmatpush.msrb.mxu1 %v4195_v4 }
  0x88   :  { %577 = vmatpush.msra.mxu2 %v2877_v25  ;;  %708 = vmatpush.msrb.mxu0 %v2647_v20  ;;  %v104_v20 = vld [vmem:[%s4019_s4] sm:$0x7]  ;;  %s2536_s4 = smov [#allocation12]  }
  0x89   :  { %728 = vmatpush.msrb.mxu1 %v4196_v8  ;;  %s2252_s23 = sshll.u32 %s2536_s4, 4  ;;  %s2253_s23 = int_to_ptr.vmem [resolvable:$true] %s2252_s23 }
  0x8a   :  { %578 = vmatpush.msra.mxu2 %v2885_v29  ;;  %709 = vmatpush.msrb.mxu0 %v2656_v23  ;;  %v105_v23 = vld [vmem:[#allocation11] sm:$0x7] }
  0x8b   :  { %729 = vmatpush.msrb.mxu1 %v4197_v11  ;;  %v3027_v34 = vperm.slane %v105_v23, 1 }
  0x8c   :  { %710 = vmatpush.msrb.mxu0 %v2665_v26  ;;  %v3019_v26 = vperm.slane %v104_v20, 0 }
  0x8d   :  { %730 = vmatpush.msrb.mxu1 %v4198_v14  ;;  %4203 = vst [vmem:[#allocation39_spill] sm:$0xff] %v3027_v34 }
  0x8e   :  { %711 = vmatpush.msrb.mxu0 %v2678_v31  ;;  %4200 = vst [vmem:[#allocation37_spill] sm:$0xff] %v3019_v26 }
  0x8f   :  { %731 = vmatpush.msrb.mxu1 %v4199_v17 }
  0x90   :  { %712 = vmatpush.msrb.mxu0 %v2690_v35  ;;  %v3021_v35 = vperm.slane %v105_v23, 0 }
  0x91   :  { %732 = vmatpush.msrb.mxu1 %v2709_v41 }
  0x92   :  { %713 = vmatpush.msrb.mxu0 %v2702_v39  ;;  %4201 = vst [vmem:[#allocation34_spill] sm:$0xff] %v3021_v35 }
  0x93   :  { %733 = vmatpush.msrb.mxu1 %v2721_v45 }
  0x94   :  { %714 = vmatpush.msrb.mxu0 %v2714_v43 }
  0x95   :  { %734 = vmatpush.msrb.mxu1 %v2733_v49 }
  0x96   :  { %715 = vmatpush.msrb.mxu0 %v2726_v47 }
  0x97   :  { %735 = vmatpush.msrb.mxu1 %v2750_v55  ;;  %v3025_v55 = vperm.slane %v104_v20, 1 }
  0x98   :  { %716 = vmatpush.msrb.mxu0 %v2738_v51 }
  0x99   :  { %736 = vmatpush.msrb.mxu1 %v2763_v59  ;;  %4202 = vst [vmem:[#allocation26_spill] sm:$0xff] %v3025_v55  ;;  %v386_v59 = vld [vmem:[#allocation3 + $0x8] sm:$0xff] }
  0x9a   :  { %451 = vmatmul.f32.vlgmr.msrb.gmra.mxu2 %v386_v59  ;;  %471 = vmatmul.f32.vlgmr.msrb.gmra.mxu3 %v386_v59 }
  0x9b   :  { %491 = vmatmul.f32.vlgmr.msra.gmra.mxu0 %v386_v59 }
  0x9c   :  { %829 = vmatpush.msra.mxu0 %v2747_v54  ;;  %v3035_v54 = vperm.slane %v105_v23, 2 }
  0x9e   :  { %830 = vmatpush.msra.mxu0 %v4168_v3 }
  0xa0   :  { %831 = vmatpush.msra.mxu0 %v4171_v12  ;;  %v3040_v12 = vperm.slane %v104_v20, 2 }
  0xa2   :  { %832 = vmatpush.msra.mxu0 %v4174_v21 }
  0xa4   :  { %833 = vmatpush.msra.mxu0 %v4177_v28 }
  0xa6   :  { %834 = vmatpush.msra.mxu0 %v4180_v38 }
  0xa8   :  { %835 = vmatpush.msra.mxu0 %v4183_v50 }
  0xaa   :  { %836 = vmatpush.msra.mxu0 %v4185_v62 }
  0xac   :  { %837 = vmatpush.msra.mxu0 %v4187_v5 }
  0xae   :  { %838 = vmatpush.msra.mxu0 %v4189_v15 }
  0xb0   :  { %839 = vmatpush.msra.mxu0 %v2845_v16 }
  0xb2   :  { %840 = vmatpush.msra.mxu0 %v4192_v0 }
  0xb4   :  { %v180_v31 = vpop.f32.mrf.mxu0  ;;  %841 = vmatpush.msra.mxu0 %v2861_v10 }
  0xb5   :  { %v181_v39 = vadd.f32 %v180_v31, %v3019_v26 }
  0xb6   :  { %842 = vmatpush.msra.mxu0 %v2869_v22 }
  0xb7   :  { %v200_v30 = vpop.f32.mrf.mxu1 }
  0xb8   :  { %v201_v46 = vadd.f32 %v200_v30, %v3025_v55  ;;  %843 = vmatpush.msra.mxu0 %v2877_v25  ;;  %v3076_v25 = vld [vmem:[#allocation9 + $0x168] sm:$0xff] }
  0xb9   :  { %809 = vmatpush.msrb.mxu3 %v3076_v25 }
  0xba   :  { %844 = vmatpush.msra.mxu0 %v2885_v29 }
  0xbb   :  { %v295_v41 = vpop.f32.mrf.mxu3 }
  0xbc   :  { %v296_v43 = vadd.f32 %v295_v41, %v3021_v35 }
  0xbe   :  { %v338_v45 = vadd.f32 %v296_v43, %v181_v39 }
  0xc0   :  { %v2269_v47 = vmul.f32 -1.442695, %v338_v45 }
  0xc2   :  { %2295 = vpow2.f32 %v2269_v47 }
  0xc8   :  { %v2296_v49 = vpop.eup %2295 }
  0xc9   :  { %v342_v51 = vadd.f32 1.0, %v2296_v49 }
  0xcb   :  { %2297 = vrcp.f32 %v342_v51  ;;  %vm348_vm0 = vweird.f32 %v342_v51  ;;  %v354_v24 = vand.u32 2147483648, %v342_v51  ;;  %v352_v4 = vand.u32 2147483647, %v342_v51 }
  0xcc   :  { %v220_v39 = vpop.f32.mrf.mxu2 }
  0xcd   :  { %v355_v14 = vor.u32 1.1754944e-38, %v354_v24  ;;  %vm353_vm3 = vcmp.eq.f32.partialorder %v352_v4, 8.507059e+37  ;;  %v221_v43 = vadd.f32 %v220_v39, %v3040_v12  ;;  %v3128_v24 = vld [vmem:[#allocation9 + $0x18] sm:$0xff]  ;;  %v3150_v39 = vld [vmem:[#allocation8 + $0x130] sm:$0xff] }
  0xd1   :  { %v2298_v27 = vpop.eup %2297 }
  0xd2   :  { %v344_v42 = vmul.f32 %v2298_v27, %v342_v51  ;;  %vm349_vm1 = vweird.f32 %v2298_v27 }
  0xd3   :  { %vm350_vm2 = vmor %vm348_vm0, %vm349_vm1 }
  0xd4   :  { %v315_v58 = vpop.f32.mrf.mxu0  ;;  %v345_v1 = vsub.f32 1.0, %v344_v42  ;;  %v3113_v42 = vld [vmem:[#allocation9 + $0x60] sm:$0xff] }
  0xd5   :  { %v316_v9 = vadd.f32 %v315_v58, %v3027_v34 }
  0xd6   :  { %v346_v18 = vmul.f32 %v2298_v27, %v345_v1  ;;  %v3120_v1 = vld [vmem:[#allocation9 + $0x48] sm:$0xff] }
  0xd7   :  { %v358_v48 = vadd.f32 %v316_v9, %v201_v46  ;;  %v335_v11 = vpop.f32.mrf.mxu1  ;;  %v3116_v46 = vld [vmem:[#allocation3 + $0x10] sm:$0xff] }
  0xd8   :  { %v347_v2 = vadd.f32 %v2298_v27, %v346_v18  ;;  %v336_v17 = vadd.f32 %v335_v11, %v3035_v54  ;;  %717 = vmatmul.f32.vlgmr.msrb.gmra.mxu0 %v3116_v46  ;;  %v3124_v18 = vld [vmem:[#allocation9 + $0x30] sm:$0xff]  ;;  %v3138_v11 = vld [vmem:[#allocation8 + $0x160] sm:$0xff] }
  0xd9   :  { %v2270_v8 = vmul.f32 -1.442695, %v358_v48 }
  0xda   :  { %v351_v3 = vsel %vm350_vm2, %v2298_v27, %v347_v2  ;;  %v3110_v27 = vld [vmem:[#allocation9 + $0x78] sm:$0xff]  ;;  %v3132_v2 = vld [vmem:[#allocation9] sm:$0xff] }
  0xdb   :  { %2299 = vpow2.f32 %v2270_v8  ;;  %v356_v31 = vsel %vm353_vm3, %v355_v14, %v351_v3  ;;  %v3136_v8 = vld [vmem:[#allocation8 + $0x178] sm:$0xff]  ;;  %v3144_v3 = vld [vmem:[#allocation8 + $0x148] sm:$0xff] }
  0xdc   :  { %v378_v41 = vmul.f32 %v356_v31, %v336_v17  ;;  %741 = vmatpush.msrb.mxu2 %v3136_v8  ;;  %1007 = vmatpush.msrb.mxu0 %v3136_v8 }
  0xde   :  { %v379_v28 = vadd.f32 %v378_v41, %v221_v43  ;;  %742 = vmatpush.msrb.mxu2 %v3138_v11  ;;  %1008 = vmatpush.msrb.mxu0 %v3138_v11 }
  0xe0   :  { %743 = vmatpush.msrb.mxu2 %v3144_v3  ;;  %1009 = vmatpush.msrb.mxu0 %v3144_v3 }
  0xe1   :  { %v2300_v21 = vpop.eup %2299 }
  0xe2   :  { %v362_v23 = vadd.f32 1.0, %v2300_v21  ;;  %744 = vmatpush.msrb.mxu2 %v3150_v39  ;;  %1010 = vmatpush.msrb.mxu0 %v3150_v39 }
  0xe4   :  { %2301 = vrcp.f32 %v362_v23  ;;  %v374_v20 = vand.u32 2147483648, %v362_v23  ;;  %v372_v5 = vand.u32 2147483647, %v362_v23  ;;  %vm368_vm5 = vweird.f32 %v362_v23 }
  0xe5   :  { %2303 = vtanh.f32 %v379_v28 }
  0xe6   :  { %v375_v16 = vor.u32 1.1754944e-38, %v374_v20  ;;  %vm373_vm7 = vcmp.eq.f32.partialorder %v372_v5, 8.507059e+37 }
  0xea   :  { %v2302_v38 = vpop.eup %2301 }
  0xeb   :  { %v364_v50 = vmul.f32 %v2302_v38, %v362_v23  ;;  %vm369_vm4 = vweird.f32 %v2302_v38  ;;  %v2304_v15 = vpop.eup %2303  ;;  %v3155_v23 = vld [vmem:[#allocation8 + $0x118] sm:$0xff] }
  0xec   :  { %vm370_vm6 = vmor %vm368_vm5, %vm369_vm4  ;;  %v381_v10 = vsub.f32 %v2745_v53, %v2304_v15  ;;  %v3102_v53 = vld [vmem:[#allocation9 + $0xa8] sm:$0xff]  ;;  %745 = vmatpush.msrb.mxu2 %v3155_v23  ;;  %1011 = vmatpush.msrb.mxu0 %v3155_v23 }
  0xed   :  { %v365_v62 = vsub.f32 1.0, %v364_v50  ;;  %v3160_v50 = vld [vmem:[#allocation8 + $0x100] sm:$0xff] }
  0xee   :  { %746 = vmatpush.msrb.mxu2 %v3160_v50  ;;  %1012 = vmatpush.msrb.mxu0 %v3160_v50 }
  0xef   :  { %v366_v45 = vmul.f32 %v2302_v38, %v365_v62 }
  0xf1   :  { %v367_v47 = vadd.f32 %v2302_v38, %v366_v45 }
  0xf3   :  { %v371_v0 = vsel %vm370_vm6, %v2302_v38, %v367_v47 }
  0xf4   :  { %v376_v49 = vsel %vm373_vm7, %v375_v16, %v371_v0 }
  0xf5   :  { %v382_v51 = vmul.f32 %v381_v10, %v376_v49 }
  0xf7   :  { %v3054_v22 = vadd.f32 %v2304_v15, %v382_v51  ;;  %v3169_v15 = vld [vmem:[#allocation8 + $0xe8] sm:$0xff]  ;;  %v3176_v51 = vld [vmem:[#allocation8 + $0xd0] sm:$0xff] }
  0xf8   :  { %747 = vmatpush.msrb.mxu2 %v3169_v15  ;;  %1013 = vmatpush.msrb.mxu0 %v3169_v15 }
  0xf9   :  { %384 = vst [vmem:[#allocation12] sm:$0xff] %v3054_v22  ;;  %559 = vmatmul.f32.vlgmr.msra.gmra.mxu1 %v3054_v22  ;;  %579 = vmatmul.f32.vlgmr.msra.gmra.mxu2 %v3054_v22 }
  0xfa   :  { %599 = vmatmul.f32.vlgmr.msra.gmra.mxu3 %v3054_v22  ;;  %849 = vmatpush.msra.mxu1 %v2768_v61 }
  0xfb   :  { %748 = vmatpush.msrb.mxu2 %v3176_v51  ;;  %1014 = vmatpush.msrb.mxu0 %v3176_v51 }
  0xfc   :  { %850 = vmatpush.msra.mxu1 %v2778_v52 }
  0xfe   :  { %851 = vmatpush.msra.mxu1 %v2787_v40 }
 0x100   :  { %852 = vmatpush.msra.mxu1 %v2797_v60 }
 0x101   :  { %737 = vmatmul.f32.vlgmr.msrb.gmra.mxu1 %v3116_v46 }
 0x102   :  { %853 = vmatpush.msra.mxu1 %v2807_v63  ;;  %v3106_v63 = vld [vmem:[#allocation9 + $0x90] sm:$0xff] }
 0x104   :  { %854 = vmatpush.msra.mxu1 %v2817_v44  ;;  %v3099_v44 = vld [vmem:[#allocation9 + $0xc0] sm:$0xff] }
 0x106   :  { %855 = vmatpush.msra.mxu1 %v2827_v6  ;;  %v3079_v6 = vld [vmem:[#allocation9 + $0x150] sm:$0xff] }
 0x107   :  { %810 = vmatpush.msrb.mxu3 %v3079_v6 }
 0x108   :  { %856 = vmatpush.msra.mxu1 %v2837_v57 }
 0x10a   :  { %857 = vmatpush.msra.mxu1 %v2847_v7  ;;  %v3082_v7 = vld [vmem:[#allocation9 + $0x138] sm:$0xff] }
 0x10b   :  { %811 = vmatpush.msrb.mxu3 %v3082_v7 }
 0x10c   :  { %858 = vmatpush.msra.mxu1 %v2855_v19  ;;  %v3088_v19 = vld [vmem:[#allocation9 + $0x108] sm:$0xff] }
 0x10e   :  { %859 = vmatpush.msra.mxu1 %v2863_v32  ;;  %v3091_v32 = vld [vmem:[#allocation9 + $0xf0] sm:$0xff] }
 0x110   :  { %860 = vmatpush.msra.mxu1 %v2871_v13  ;;  %v3085_v13 = vld [vmem:[#allocation9 + $0x120] sm:$0xff] }
 0x111   :  { %812 = vmatpush.msrb.mxu3 %v3085_v13 }
 0x112   :  { %861 = vmatpush.msra.mxu1 %v2879_v56 }
 0x113   :  { %813 = vmatpush.msrb.mxu3 %v3088_v19 }
 0x114   :  { %862 = vmatpush.msra.mxu1 %v2887_v36  ;;  %v3095_v36 = vld [vmem:[#allocation9 + $0xd8] sm:$0xff] }
 0x115   :  { %814 = vmatpush.msrb.mxu3 %v3091_v32 }
 0x116   :  { %863 = vmatpush.msra.mxu1 %v2893_v33 }
 0x117   :  { %815 = vmatpush.msrb.mxu3 %v3095_v36 }
 0x118   :  { %864 = vmatpush.msra.mxu1 %v2900_v37  ;;  %v492_v38 = vpop.f32.mrf.mxu0 }
 0x119   :  { %816 = vmatpush.msrb.mxu3 %v3099_v44  ;;  %v493_v16 = vadd.f32 %v492_v38, %v3040_v12  ;;  %v3238_v38 = vld [vmem:[#allocation8 + $0x170] sm:$0xff] }
 0x11a   :  { %1075 = vmatpush.msrb.mxu1 %v3076_v25 }
 0x11b   :  { %817 = vmatpush.msrb.mxu3 %v3102_v53 }
 0x11c   :  { %1076 = vmatpush.msrb.mxu1 %v3079_v6 }
 0x11d   :  { %v452_v29 = vpop.f32.mrf.mxu2  ;;  %v472_v57 = vpop.f32.mrf.mxu3  ;;  %818 = vmatpush.msrb.mxu3 %v3106_v63 }
 0x11e   :  { %v453_v33 = vadd.f32 %v452_v29, %v3019_v26  ;;  %v473_v60 = vadd.f32 %v472_v57, %v3025_v55  ;;  %1077 = vmatpush.msrb.mxu1 %v3082_v7  ;;  %v3187_v57 = vld [vmem:[#allocation8 + $0xa0] sm:$0xff] }
 0x11f   :  { %819 = vmatpush.msrb.mxu3 %v3110_v27 }
 0x120   :  { %1078 = vmatpush.msrb.mxu1 %v3085_v13 }
 0x121   :  { %820 = vmatpush.msrb.mxu3 %v3113_v42 }
 0x122   :  { %1079 = vmatpush.msrb.mxu1 %v3088_v19 }
 0x123   :  { %821 = vmatpush.msrb.mxu3 %v3120_v1 }
 0x124   :  { %1080 = vmatpush.msrb.mxu1 %v3091_v32 }
 0x125   :  { %822 = vmatpush.msrb.mxu3 %v3124_v18 }
 0x126   :  { %1081 = vmatpush.msrb.mxu1 %v3095_v36 }
 0x127   :  { %823 = vmatpush.msrb.mxu3 %v3128_v24 }
 0x128   :  { %1082 = vmatpush.msrb.mxu1 %v3099_v44 }
 0x129   :  { %824 = vmatpush.msrb.mxu3 %v3132_v2 }
 0x12a   :  { %1083 = vmatpush.msrb.mxu1 %v3102_v53 }
 0x12b   :  { %987 = vmatpush.msra.mxu3 %v3238_v38 }
 0x12c   :  { %1084 = vmatpush.msrb.mxu1 %v3106_v63 }
 0x12e   :  { %1085 = vmatpush.msrb.mxu1 %v3110_v27 }
 0x130   :  { %1086 = vmatpush.msrb.mxu1 %v3113_v42 }
 0x132   :  { %1087 = vmatpush.msrb.mxu1 %v3120_v1 }
 0x134   :  { %1088 = vmatpush.msrb.mxu1 %v3124_v18 }
 0x136   :  { %1089 = vmatpush.msrb.mxu1 %v3128_v24 }
 0x138   :  { %1090 = vmatpush.msrb.mxu1 %v3132_v2 }
 0x176   :  { %v560_v37 = vpop.f32.mrf.mxu1 }
 0x177   :  { %v561_v40 = vadd.f32 %v560_v37, %v3021_v35  ;;  %v3181_v37 = vld [vmem:[#allocation8 + $0xb8] sm:$0xff] }
 0x178   :  { %749 = vmatpush.msrb.mxu2 %v3181_v37  ;;  %1015 = vmatpush.msrb.mxu0 %v3181_v37 }
 0x179   :  { %v603_v52 = vadd.f32 %v561_v40, %v453_v33 }
 0x17a   :  { %750 = vmatpush.msrb.mxu2 %v3187_v57  ;;  %1016 = vmatpush.msrb.mxu0 %v3187_v57 }
 0x17b   :  { %v2271_v61 = vmul.f32 -1.442695, %v603_v52 }
 0x17c   :  { %v580_v56 = vpop.f32.mrf.mxu2 }
 0x17d   :  { %2305 = vpow2.f32 %v2271_v61  ;;  %v581_v59 = vadd.f32 %v580_v56, %v3027_v34  ;;  %v600_v20 = vpop.f32.mrf.mxu3 }
 0x17e   :  { %v601_v10 = vadd.f32 %v600_v20, %v3035_v54  ;;  %v3244_v20 = vld [vmem:[#allocation8 + $0x158] sm:$0xff] }
 0x17f   :  { %v623_v30 = vadd.f32 %v581_v59, %v473_v60  ;;  %v3192_v60 = vld [vmem:[#allocation8 + $0x88] sm:$0xff]  ;;  %v3200_v59 = vld [vmem:[#allocation8 + $0x70] sm:$0xff]  ;;  %988 = vmatpush.msra.mxu3 %v3244_v20 }
 0x180   :  { %751 = vmatpush.msrb.mxu2 %v3192_v60  ;;  %1017 = vmatpush.msrb.mxu0 %v3192_v60 }
 0x181   :  { %v2272_v58 = vmul.f32 -1.442695, %v623_v30 }
 0x182   :  { %752 = vmatpush.msrb.mxu2 %v3200_v59  ;;  %1018 = vmatpush.msrb.mxu0 %v3200_v59 }
 0x183   :  { %v2306_v9 = vpop.eup %2305  ;;  %2307 = vpow2.f32 %v2272_v58  ;;  %v3207_v58 = vld [vmem:[#allocation8 + $0x58] sm:$0xff] }
 0x184   :  { %v607_v48 = vadd.f32 1.0, %v2306_v9  ;;  %753 = vmatpush.msrb.mxu2 %v3207_v58  ;;  %1019 = vmatpush.msrb.mxu0 %v3207_v58 }
 0x186   :  { %2309 = vrcp.f32 %v607_v48  ;;  %v619_v41 = vand.u32 2147483648, %v607_v48  ;;  %v617_v28 = vand.u32 2147483647, %v607_v48  ;;  %vm613_vm9 = vweird.f32 %v607_v48 }
 0x188   :  { %v620_v47 = vor.u32 1.1754944e-38, %v619_v41  ;;  %vm618_vm11 = vcmp.eq.f32.partialorder %v617_v28, 8.507059e+37  ;;  %v3226_v28 = vld [vmem:[#allocation8 + $0x10] sm:$0xff] }
 0x189   :  { %v2308_v4 = vpop.eup %2307 }
 0x18a   :  { %v3140_v14 = vadd.f32 1.0, %v2308_v4 }
 0x18c   :  { %v2310_v17 = vpop.eup %2309  ;;  %2311 = vrcp.f32 %v3140_v14  ;;  %v639_v56 = vand.u32 2147483648, %v3140_v14  ;;  %vm633_vm13 = vweird.f32 %v3140_v14  ;;  %v637_v30 = vand.u32 2147483647, %v3140_v14 }
 0x18d   :  { %v609_v31 = vmul.f32 %v2310_v17, %v607_v48  ;;  %vm614_vm8 = vweird.f32 %v2310_v17 }
 0x18e   :  { %vm615_vm10 = vmor %vm613_vm9, %vm614_vm8  ;;  %v640_v4 = vor.u32 1.1754944e-38, %v639_v56  ;;  %vm638_vm15 = vcmp.eq.f32.partialorder %v637_v30, 8.507059e+37  ;;  %v3300_v56 = vld [vmem:[#allocation8 + $0xb0] sm:$0xff] }
 0x18f   :  { %v610_v21 = vsub.f32 1.0, %v609_v31  ;;  %4218 = vst [vmem:[#allocation44_spill] sm:$0xff] %v3300_v56  ;;  %v3306_v30 = vld [vmem:[#allocation8 + $0x90] sm:$0xff] }
 0x190   :  { %4219 = vst [vmem:[#allocation17_spill] sm:$0xff] %v3306_v30 }
 0x191   :  { %v611_v43 = vmul.f32 %v2310_v17, %v610_v21  ;;  %v3218_v21 = vld [vmem:[#allocation8 + $0x28] sm:$0xff] }
 0x192   :  { %v3163_v62 = vpop.eup %2311 }
 0x193   :  { %v629_v45 = vmul.f32 %v3163_v62, %v3140_v14  ;;  %v612_v5 = vadd.f32 %v2310_v17, %v611_v43  ;;  %vm634_vm12 = vweird.f32 %v3163_v62 }
 0x194   :  { %vm635_vm14 = vmor %vm633_vm13, %vm634_vm12 }
 0x195   :  { %v630_v0 = vsub.f32 1.0, %v629_v45  ;;  %v616_v49 = vsel %vm615_vm10, %v2310_v17, %v612_v5  ;;  %v3213_v17 = vld [vmem:[#allocation8 + $0x40] sm:$0xff]  ;;  %v3246_v45 = vld [vmem:[#allocation8 + $0x138] sm:$0xff] }
 0x196   :  { %v621_v29 = vsel %vm618_vm11, %v620_v47, %v616_v49  ;;  %754 = vmatpush.msrb.mxu2 %v3213_v17  ;;  %1020 = vmatpush.msrb.mxu0 %v3213_v17  ;;  %4205 = vst [vmem:[#allocation28_spill] sm:$0xff] %v3246_v45  ;;  %v3248_v5 = vld [vmem:[#allocation8 + $0x140] sm:$0xff]  ;;  %v3262_v47 = vld [vmem:[#allocation8 + $0x128] sm:$0xff]  ;;  %v3276_v49 = vld [vmem:[#allocation8 + $0xf8] sm:$0xff] }
 0x197   :  { %v643_v33 = vmul.f32 %v621_v29, %v601_v10  ;;  %v631_v40 = vmul.f32 %v3163_v62, %v630_v0  ;;  %4206 = vst [vmem:[#allocation41_spill] sm:$0xff] %v3248_v5  ;;  %989 = vmatpush.msra.mxu3 %v3248_v5  ;;  %v3268_v0 = vld [vmem:[#allocation8 + $0x110] sm:$0xff]  ;;  %v3282_v29 = vld [vmem:[#allocation8 + $0xd8] sm:$0xff] }
 0x198   :  { %755 = vmatpush.msrb.mxu2 %v3218_v21  ;;  %1021 = vmatpush.msrb.mxu0 %v3218_v21  ;;  %4208 = vst [vmem:[#allocation30_spill] sm:$0xff] %v3262_v47  ;;  %v3274_v10 = vld [vmem:[#allocation8 + $0xf0] sm:$0xff] }
 0x199   :  { %v644_v52 = vadd.f32 %v643_v33, %v493_v16  ;;  %v632_v61 = vadd.f32 %v3163_v62, %v631_v40  ;;  %990 = vmatpush.msra.mxu3 %v3262_v47  ;;  %v3266_v16 = vld [vmem:[#allocation8 + $0x108] sm:$0xff]  ;;  %4210 = vst [vmem:[#allocation38_spill] sm:$0xff] %v3268_v0  ;;  %v3284_v33 = vld [vmem:[#allocation8 + $0xe0] sm:$0xff] }
 0x19a   :  { %756 = vmatpush.msrb.mxu2 %v3226_v28  ;;  %1022 = vmatpush.msrb.mxu0 %v3226_v28  ;;  %4209 = vst [vmem:[#allocation43_spill] sm:$0xff] %v3266_v16  ;;  %v3290_v40 = vld [vmem:[#allocation8 + $0xc0] sm:$0xff] }
 0x19b   :  { %2313 = vtanh.f32 %v644_v52  ;;  %v636_v9 = vsel %vm635_vm14, %v3163_v62, %v632_v61  ;;  %757 = vmatmul.f32.vlgmr.msrb.gmra.mxu2 %v3116_v46  ;;  %v3240_v62 = vld [vmem:[#allocation8 + $0x150] sm:$0xff]  ;;  %v3260_v46 = vld [vmem:[#allocation8 + $0x120] sm:$0xff]  ;;  %991 = vmatpush.msra.mxu3 %v3268_v0  ;;  %4211 = vst [vmem:[#allocation31_spill] sm:$0xff] %v3274_v10  ;;  %v3292_v52 = vld [vmem:[#allocation8 + $0xc8] sm:$0xff] }
 0x19c   :  { %v641_v31 = vsel %vm638_vm15, %v640_v4, %v636_v9  ;;  %4204 = vst [vmem:[#allocation35_spill] sm:$0xff] %v3240_v62  ;;  %v3298_v61 = vld [vmem:[#allocation8 + $0xa8] sm:$0xff]  ;;  %v3308_v9 = vld [vmem:[#allocation8 + $0x98] sm:$0xff]  ;;  %v3316_v4 = vld [vmem:[#allocation8 + $0x80] sm:$0xff] }
 0x19d   :  { %4207 = vst [vmem:[#allocation36_spill] sm:$0xff] %v3260_v46  ;;  %992 = vmatpush.msra.mxu3 %v3276_v49 }
 0x19e   :  { %4212 = vst [vmem:[#allocation45_spill] sm:$0xff] %v3276_v49 }
 0x19f   :  { %4213 = vst [vmem:[#allocation40_spill] sm:$0xff] %v3282_v29  ;;  %993 = vmatpush.msra.mxu3 %v3284_v33 }
 0x1a0   :  { %4214 = vst [vmem:[#allocation32_spill] sm:$0xff] %v3284_v33 }
 0x1a1   :  { %v2314_v48 = vpop.eup %2313  ;;  %4215 = vst [vmem:[#allocation47_spill] sm:$0xff] %v3290_v40  ;;  %994 = vmatpush.msra.mxu3 %v3292_v52 }
 0x1a2   :  { %v646_v14 = vsub.f32 %v3054_v22, %v2314_v48  ;;  %v3236_v22 = vld [vmem:[#allocation8 + $0x168] sm:$0xff]  ;;  %4216 = vst [vmem:[#allocation42_spill] sm:$0xff] %v3292_v52 }
 0x1a3   :  { %967 = vmatpush.msra.mxu2 %v3236_v22  ;;  %4217 = vst [vmem:[#allocation33_spill] sm:$0xff] %v3298_v61  ;;  %995 = vmatpush.msra.mxu3 %v3300_v56 }
 0x1a4   :  { %v647_v41 = vmul.f32 %v646_v14, %v641_v31  ;;  %4220 = vst [vmem:[#allocation46_spill] sm:$0xff] %v3308_v9  ;;  %v3322_v14 = vld [vmem:[#allocation8 + $0x60] sm:$0xff]  ;;  %v3324_v31 = vld [vmem:[#allocation8 + $0x68] sm:$0xff] }
 0x1a5   :  { %968 = vmatpush.msra.mxu2 %v3240_v62  ;;  %996 = vmatpush.msra.mxu3 %v3308_v9  ;;  %4222 = vst [vmem:[#allocation48_spill] sm:$0xff] %v3316_v4 }
 0x1a6   :  { %v3223_v43 = vadd.f32 %v2314_v48, %v647_v41  ;;  %v3314_v48 = vld [vmem:[#allocation8 + $0x78] sm:$0xff]  ;;  %4223 = vst [vmem:[#allocation19_spill] sm:$0xff] %v3322_v14  ;;  %v3330_v41 = vld [vmem:[#allocation8 + $0x48] sm:$0xff] }
 0x1a7   :  { %969 = vmatpush.msra.mxu2 %v3246_v45  ;;  %4221 = vst [vmem:[#allocation18_spill] sm:$0xff] %v3314_v48  ;;  %997 = vmatpush.msra.mxu3 %v3316_v4 }
 0x1a8   :  { %650 = vst [vmem:[#allocation12 + $0x8] sm:$0xff] %v3223_v43  ;;  %825 = vmatmul.f32.vlgmr.msrb.gmra.mxu3 %v3223_v43  ;;  %845 = vmatmul.f32.vlgmr.msra.gmra.mxu0 %v3223_v43 }
 0x1a9   :  { %865 = vmatmul.f32.vlgmr.msra.gmra.mxu1 %v3223_v43  ;;  %1233 = vmatpush.msra.mxu0 %v3236_v22  ;;  %4224 = vst [vmem:[#allocation20_spill] sm:$0xff] %v3324_v31 }
 0x1aa   :  { %1253 = vmatpush.msra.mxu1 %v3238_v38  ;;  %970 = vmatpush.msra.mxu2 %v3260_v46  ;;  %4225 = vst [vmem:[#allocation49_spill] sm:$0xff] %v3330_v41 }
 0x1ab   :  { %1234 = vmatpush.msra.mxu0 %v3240_v62  ;;  %998 = vmatpush.msra.mxu3 %v3324_v31  ;;  %v3456_v62 = vld [vmem:[#allocation9 + $0x28] sm:$0xff] }
 0x1ac   :  { %1254 = vmatpush.msra.mxu1 %v3244_v20  ;;  %971 = vmatpush.msra.mxu2 %v3266_v16 }
 0x1ad   :  { %1235 = vmatpush.msra.mxu0 %v3246_v45 }
 0x1ae   :  { %1255 = vmatpush.msra.mxu1 %v3248_v5  ;;  %972 = vmatpush.msra.mxu2 %v3274_v10  ;;  %v3454_v5 = vld [vmem:[#allocation9 + $0x20] sm:$0xff] }
 0x1af   :  { %1236 = vmatpush.msra.mxu0 %v3260_v46  ;;  %v3402_v46 = vld [vmem:[#allocation9 + $0xe8] sm:$0xff] }
 0x1b0   :  { %1256 = vmatpush.msra.mxu1 %v3262_v47  ;;  %973 = vmatpush.msra.mxu2 %v3282_v29  ;;  %4240 = vst [vmem:[#allocation57_spill] sm:$0xff] %v3402_v46 }
 0x1b1   :  { %1237 = vmatpush.msra.mxu0 %v3266_v16  ;;  %v3394_v16 = vld [vmem:[#allocation9 + $0xf8] sm:$0xff] }
 0x1b2   :  { %1257 = vmatpush.msra.mxu1 %v3268_v0  ;;  %974 = vmatpush.msra.mxu2 %v3290_v40  ;;  %v3396_v0 = vld [vmem:[#allocation9 + $0x100] sm:$0xff] }
 0x1b3   :  { %1238 = vmatpush.msra.mxu0 %v3274_v10  ;;  %4238 = vst [vmem:[#allocation55_spill] sm:$0xff] %v3396_v0 }
 0x1b4   :  { %1258 = vmatpush.msra.mxu1 %v3276_v49  ;;  %975 = vmatpush.msra.mxu2 %v3298_v61 }
 0x1b5   :  { %1239 = vmatpush.msra.mxu0 %v3282_v29  ;;  %v738_v29 = vpop.f32.mrf.mxu1 }
 0x1b6   :  { %1259 = vmatpush.msra.mxu1 %v3284_v33  ;;  %976 = vmatpush.msra.mxu2 %v3306_v30  ;;  %v739_v33 = vadd.f32 %v738_v29, %v3025_v55  ;;  %v3400_v55 = vld [vmem:[#allocation9 + $0xe0] sm:$0xff] }
 0x1b7   :  { %1240 = vmatpush.msra.mxu0 %v3290_v40  ;;  %v3372_v40 = vld [vmem:[#allocation9 + $0x140] sm:$0xff]  ;;  %4239 = vst [vmem:[#allocation56_spill] sm:$0xff] %v3400_v55 }
 0x1b8   :  { %1260 = vmatpush.msra.mxu1 %v3292_v52  ;;  %977 = vmatpush.msra.mxu2 %v3314_v48  ;;  %v3382_v52 = vld [vmem:[#allocation9 + $0x130] sm:$0xff] }
 0x1b9   :  { %1241 = vmatpush.msra.mxu0 %v3298_v61  ;;  %v3362_v61 = vld [vmem:[#allocation9 + $0x170] sm:$0xff]  ;;  %4236 = vst [vmem:[#allocation53_spill] sm:$0xff] %v3382_v52 }
 0x1ba   :  { %1261 = vmatpush.msra.mxu1 %v3300_v56  ;;  %978 = vmatpush.msra.mxu2 %v3322_v14  ;;  %4233 = vst [vmem:[#allocation50_spill] sm:$0xff] %v3362_v61  ;;  %v3370_v56 = vld [vmem:[#allocation9 + $0x160] sm:$0xff] }
 0x1bb   :  { %1242 = vmatpush.msra.mxu0 %v3306_v30  ;;  %v3332_v30 = vld [vmem:[#allocation8 + $0x50] sm:$0xff] }
 0x1bc   :  { %1262 = vmatpush.msra.mxu1 %v3308_v9  ;;  %4226 = vst [vmem:[#allocation21_spill] sm:$0xff] %v3332_v30  ;;  %979 = vmatpush.msra.mxu2 %v3330_v41  ;;  %v3338_v9 = vld [vmem:[#allocation8 + $0x30] sm:$0xff] }
 0x1bd   :  { %1243 = vmatpush.msra.mxu0 %v3314_v48  ;;  %999 = vmatpush.msra.mxu3 %v3332_v30  ;;  %4227 = vst [vmem:[#allocation22_spill] sm:$0xff] %v3338_v9  ;;  %v3340_v48 = vld [vmem:[#allocation8 + $0x38] sm:$0xff] }
 0x1be   :  { %1263 = vmatpush.msra.mxu1 %v3316_v4  ;;  %4228 = vst [vmem:[#allocation23_spill] sm:$0xff] %v3340_v48  ;;  %980 = vmatpush.msra.mxu2 %v3338_v9  ;;  %v718_v4 = vpop.f32.mrf.mxu0 }
 0x1bf   :  { %1244 = vmatpush.msra.mxu0 %v3322_v14  ;;  %1000 = vmatpush.msra.mxu3 %v3340_v48  ;;  %v3346_v14 = vld [vmem:[#allocation8 + $0x18] sm:$0xff]  ;;  %v719_v47 = vadd.f32 %v718_v4, %v3019_v26 }
 0x1c0   :  { %1264 = vmatpush.msra.mxu1 %v3324_v31  ;;  %4229 = vst [vmem:[#allocation24_spill] sm:$0xff] %v3346_v14  ;;  %v3348_v31 = vld [vmem:[#allocation8 + $0x20] sm:$0xff]  ;;  %981 = vmatpush.msra.mxu2 %v3346_v14  ;;  %v3418_v4 = vld [vmem:[#allocation9 + $0xb8] sm:$0xff] }
 0x1c1   :  { %1245 = vmatpush.msra.mxu0 %v3330_v41  ;;  %4230 = vst [vmem:[#allocation25_spill] sm:$0xff] %v3348_v31  ;;  %1001 = vmatpush.msra.mxu3 %v3348_v31  ;;  %v3354_v41 = vld [vmem:[#allocation8] sm:$0xff] }
 0x1c2   :  { %1265 = vmatpush.msra.mxu1 %v3332_v30  ;;  %4231 = vst [vmem:[#allocation27_spill] sm:$0xff] %v3354_v41  ;;  %v3356_v30 = vld [vmem:[#allocation8 + $0x8] sm:$0xff]  ;;  %982 = vmatpush.msra.mxu2 %v3354_v41 }
 0x1c3   :  { %1246 = vmatpush.msra.mxu0 %v3338_v9  ;;  %4232 = vst [vmem:[#allocation29_spill] sm:$0xff] %v3356_v30  ;;  %1002 = vmatpush.msra.mxu3 %v3356_v30  ;;  %v3364_v9 = vld [vmem:[#allocation9 + $0x178] sm:$0xff] }
 0x1c4   :  { %1266 = vmatpush.msra.mxu1 %v3340_v48  ;;  %1095 = vmatpush.msrb.mxu2 %v3362_v61  ;;  %v3368_v48 = vld [vmem:[#allocation9 + $0x158] sm:$0xff]  ;;  %4242 = vst [vmem:[#allocation59_spill] sm:$0xff] %v3418_v4 }
 0x1c5   :  { %1247 = vmatpush.msra.mxu0 %v3346_v14  ;;  %1115 = vmatpush.msrb.mxu3 %v3364_v9  ;;  %4234 = vst [vmem:[#allocation51_spill] sm:$0xff] %v3368_v48  ;;  %v3378_v14 = vld [vmem:[#allocation9 + $0x148] sm:$0xff] }
 0x1c6   :  { %1267 = vmatpush.msra.mxu1 %v3348_v31  ;;  %1096 = vmatpush.msrb.mxu2 %v3368_v48  ;;  %v3380_v31 = vld [vmem:[#allocation9 + $0x128] sm:$0xff] }
 0x1c7   :  { %1248 = vmatpush.msra.mxu0 %v3354_v41  ;;  %1116 = vmatpush.msrb.mxu3 %v3370_v56  ;;  %4235 = vst [vmem:[#allocation52_spill] sm:$0xff] %v3380_v31  ;;  %v3387_v41 = vld [vmem:[#allocation9 + $0x110] sm:$0xff] }
 0x1c8   :  { %1268 = vmatpush.msra.mxu1 %v3356_v30  ;;  %1097 = vmatpush.msrb.mxu2 %v3372_v40  ;;  %v3389_v30 = vld [vmem:[#allocation9 + $0x118] sm:$0xff] }
 0x1c9   :  { %1117 = vmatpush.msrb.mxu3 %v3378_v14  ;;  %4237 = vst [vmem:[#allocation54_spill] sm:$0xff] %v3389_v30 }
 0x1ca   :  { %1098 = vmatpush.msrb.mxu2 %v3380_v31 }
 0x1cb   :  { %1118 = vmatpush.msrb.mxu3 %v3382_v52  ;;  %v3450_v52 = vld [vmem:[#allocation9 + $0x40] sm:$0xff] }
 0x1cc   :  { %1099 = vmatpush.msrb.mxu2 %v3387_v41 }
 0x1cd   :  { %1119 = vmatpush.msrb.mxu3 %v3389_v30  ;;  %v3410_v30 = vld [vmem:[#allocation9 + $0xc8] sm:$0xff] }
 0x1ce   :  { %1100 = vmatpush.msrb.mxu2 %v3394_v16 }
 0x1cf   :  { %1120 = vmatpush.msrb.mxu3 %v3396_v0  ;;  %v3416_v0 = vld [vmem:[#allocation9 + $0xb0] sm:$0xff] }
 0x1d0   :  { %1101 = vmatpush.msrb.mxu2 %v3400_v55 }
 0x1d1   :  { %1121 = vmatpush.msrb.mxu3 %v3402_v46  ;;  %v3448_v46 = vld [vmem:[#allocation9 + $0x38] sm:$0xff] }
 0x1d2   :  { %1102 = vmatpush.msrb.mxu2 %v3410_v30 }
 0x1d4   :  { %1103 = vmatpush.msrb.mxu2 %v3416_v0 }
 0x225   :  { %v846_v10 = vpop.f32.mrf.mxu0 }
 0x226   :  { %v847_v49 = vadd.f32 %v846_v10, %v3027_v34 }
 0x228   :  { %v889_v29 = vadd.f32 %v847_v49, %v739_v33  ;;  %v3412_v49 = vld [vmem:[#allocation9 + $0xd0] sm:$0xff] }
 0x229   :  { %4241 = vst [vmem:[#allocation58_spill] sm:$0xff] %v3412_v49  ;;  %1122 = vmatpush.msrb.mxu3 %v3412_v49 }
 0x22a   :  { %v2274_v10 = vmul.f32 -1.442695, %v889_v29 }
 0x22b   :  { %v826_v34 = vpop.f32.mrf.mxu3  ;;  %1123 = vmatpush.msrb.mxu3 %v3418_v4  ;;  %v918_v4 = vld [vmem:[#allocation3 + $0x18] sm:$0xff] }
 0x22c   :  { %v827_v45 = vadd.f32 %v826_v34, %v3021_v35  ;;  %2315 = vpow2.f32 %v2274_v10  ;;  %v3422_v34 = vld [vmem:[#allocation9 + $0x98] sm:$0xff]  ;;  %v3424_v35 = vld [vmem:[#allocation9 + $0xa0] sm:$0xff]  ;;  %v3434_v10 = vld [vmem:[#allocation9 + $0x68] sm:$0xff]  ;;  %983 = vmatmul.f32.vlgmr.msra.gmra.mxu2 %v918_v4  ;;  %1003 = vmatmul.f32.vlgmr.msra.gmra.mxu3 %v918_v4 }
 0x22d   :  { %4243 = vst [vmem:[#allocation60_spill] sm:$0xff] %v3424_v35  ;;  %1104 = vmatpush.msrb.mxu2 %v3422_v34  ;;  %1124 = vmatpush.msrb.mxu3 %v3424_v35  ;;  %v3442_v35 = vld [vmem:[#allocation9 + $0x58] sm:$0xff] }
 0x22e   :  { %v869_v33 = vadd.f32 %v827_v45, %v719_v47  ;;  %v3428_v45 = vld [vmem:[#allocation9 + $0x80] sm:$0xff]  ;;  %v3430_v47 = vld [vmem:[#allocation9 + $0x88] sm:$0xff]  ;;  %1023 = vmatmul.f32.vlgmr.msrb.gmra.mxu0 %v918_v4  ;;  %v3464_v4 = vld [vmem:[#allocation9 + $0x10] sm:$0xff] }
 0x22f   :  { %4244 = vst [vmem:[#allocation61_spill] sm:$0xff] %v3430_v47  ;;  %1105 = vmatpush.msrb.mxu2 %v3428_v45  ;;  %1125 = vmatpush.msrb.mxu3 %v3430_v47 }
 0x230   :  { %v2273_v29 = vmul.f32 -1.442695, %v869_v33  ;;  %v3436_v33 = vld [vmem:[#allocation9 + $0x70] sm:$0xff]  ;;  %1361 = vmatpush.msrb.mxu0 %v3362_v61 }
 0x231   :  { %4245 = vst [vmem:[#allocation62_spill] sm:$0xff] %v3436_v33  ;;  %1106 = vmatpush.msrb.mxu2 %v3434_v10  ;;  %1126 = vmatpush.msrb.mxu3 %v3436_v33 }
 0x232   :  { %2317 = vpow2.f32 %v2273_v29  ;;  %v2316_v26 = vpop.eup %2315  ;;  %v3440_v29 = vld [vmem:[#allocation9 + $0x50] sm:$0xff]  ;;  %1362 = vmatpush.msrb.mxu0 %v3368_v48 }
 0x233   :  { %1107 = vmatpush.msrb.mxu2 %v3440_v29  ;;  %1127 = vmatpush.msrb.mxu3 %v3442_v35  ;;  %v3446_v49 = vadd.f32 1.0, %v2316_v26  ;;  %v3462_v26 = vld [vmem:[#allocation9 + $0x8] sm:$0xff] }
 0x234   :  { %1363 = vmatpush.msrb.mxu0 %v3372_v40 }
 0x235   :  { %1108 = vmatpush.msrb.mxu2 %v3448_v46  ;;  %1128 = vmatpush.msrb.mxu3 %v3450_v52  ;;  %vm899_vm5 = vweird.f32 %v3446_v49 }
 0x236   :  { %1364 = vmatpush.msrb.mxu0 %v3380_v31 }
 0x237   :  { %1109 = vmatpush.msrb.mxu2 %v3454_v5  ;;  %1129 = vmatpush.msrb.mxu3 %v3456_v62 }
 0x238   :  { %v2318_v47 = vpop.eup %2317  ;;  %1365 = vmatpush.msrb.mxu0 %v3387_v41 }
 0x239   :  { %v873_v33 = vadd.f32 1.0, %v2318_v47  ;;  %1110 = vmatpush.msrb.mxu2 %v3462_v26  ;;  %1130 = vmatpush.msrb.mxu3 %v3464_v4 }
 0x23a   :  { %1366 = vmatpush.msrb.mxu0 %v3394_v16 }
 0x23b   :  { %2319 = vrcp.f32 %v873_v33  ;;  %1341 = vmatpush.msra.mxu3 %v3076_v25  ;;  %1273 = vmatpush.msra.mxu2 %v3136_v8  ;;  %v885_v8 = vand.u32 2147483648, %v873_v33  ;;  %v883_v31 = vand.u32 2147483647, %v873_v33  ;;  %vm879_vm1 = vweird.f32 %v873_v33 }
 0x23c   :  { %2321 = vrcp.f32 %v3446_v49  ;;  %1367 = vmatpush.msrb.mxu0 %v3400_v55 }
 0x23d   :  { %1342 = vmatpush.msra.mxu3 %v3079_v6  ;;  %1274 = vmatpush.msra.mxu2 %v3138_v11  ;;  %vm884_vm3 = vcmp.eq.f32.partialorder %v883_v31, 8.507059e+37  ;;  %v4262_v31 = vld [vmem:[#allocation42_spill] sm:$0xff] }
 0x23e   :  { %1368 = vmatpush.msrb.mxu0 %v3410_v30 }
 0x23f   :  { %1343 = vmatpush.msra.mxu3 %v3082_v7  ;;  %1275 = vmatpush.msra.mxu2 %v3144_v3  ;;  %v866_v7 = vpop.f32.mrf.mxu1  ;;  %v758_v3 = vpop.f32.mrf.mxu2 }
 0x240   :  { %1369 = vmatpush.msrb.mxu0 %v3416_v0 }
 0x241   :  { %v2320_v47 = vpop.eup %2319  ;;  %1344 = vmatpush.msra.mxu3 %v3085_v13  ;;  %1276 = vmatpush.msra.mxu2 %v3150_v39  ;;  %v886_v39 = vor.u32 1.1754944e-38, %v885_v8  ;;  %v4266_v8 = vld [vmem:[#allocation60_spill] sm:$0xff] }
 0x242   :  { %v3475_v61 = vpop.eup %2321  ;;  %v875_v48 = vmul.f32 %v2320_v47, %v873_v33  ;;  %vm880_vm0 = vweird.f32 %v2320_v47  ;;  %1370 = vmatpush.msrb.mxu0 %v3422_v34 }
 0x243   :  { %v895_v6 = vmul.f32 %v3475_v61, %v3446_v49  ;;  %1345 = vmatpush.msra.mxu3 %v3088_v19  ;;  %1277 = vmatpush.msra.mxu2 %v3155_v23  ;;  %vm881_vm2 = vmor %vm879_vm1, %vm880_vm0  ;;  %v759_v19 = vadd.f32 %v758_v3, %v3040_v12  ;;  %vm900_vm4 = vweird.f32 %v3475_v61  ;;  %v4269_v3 = vld [vmem:[#allocation61_spill] sm:$0xff] }
 0x244   :  { %v876_v25 = vsub.f32 1.0, %v875_v48  ;;  %1371 = vmatpush.msrb.mxu0 %v3428_v45  ;;  %vm901_vm6 = vmor %vm899_vm5, %vm900_vm4 }
 0x245   :  { %1346 = vmatpush.msra.mxu3 %v3091_v32  ;;  %v896_v48 = vsub.f32 1.0, %v895_v6  ;;  %1278 = vmatpush.msra.mxu2 %v3160_v50  ;;  %v4265_v6 = vld [vmem:[#allocation44_spill] sm:$0xff] }
 0x246   :  { %v877_v11 = vmul.f32 %v2320_v47, %v876_v25  ;;  %v867_v25 = vadd.f32 %v866_v7, %v3035_v54  ;;  %1372 = vmatpush.msrb.mxu0 %v3434_v10  ;;  %v4268_v7 = vld [vmem:[#allocation46_spill] sm:$0xff] }
 0x247   :  { %1347 = vmatpush.msra.mxu3 %v3095_v36  ;;  %1279 = vmatpush.msra.mxu2 %v3169_v15  ;;  %v897_v50 = vmul.f32 %v3475_v61, %v896_v48  ;;  %v905_v36 = vand.u32 2147483648, %v3446_v49  ;;  %v4271_v48 = vld [vmem:[#allocation48_spill] sm:$0xff] }
 0x248   :  { %v878_v13 = vadd.f32 %v2320_v47, %v877_v11  ;;  %1373 = vmatpush.msrb.mxu0 %v3440_v29  ;;  %v4267_v11 = vld [vmem:[#allocation33_spill] sm:$0xff] }
 0x249   :  { %1348 = vmatpush.msra.mxu3 %v3099_v44  ;;  %1280 = vmatpush.msra.mxu2 %v3176_v51  ;;  %v903_v44 = vand.u32 2147483647, %v3446_v49  ;;  %v906_v15 = vor.u32 1.1754944e-38, %v905_v36  ;;  %v4263_v49 = vld [vmem:[#allocation59_spill] sm:$0xff]  ;;  %v4280_v36 = vld [vmem:[#allocation25_spill] sm:$0xff] }
 0x24a   :  { %v882_v55 = vsel %vm881_vm2, %v2320_v47, %v878_v13  ;;  %1374 = vmatpush.msrb.mxu0 %v3448_v46  ;;  %v4264_v47 = vld [vmem:[#allocation47_spill] sm:$0xff]  ;;  %v4270_v13 = vld [vmem:[#allocation17_spill] sm:$0xff] }
 0x24b   :  { %v887_v23 = vsel %vm884_vm3, %v886_v39, %v882_v55  ;;  %1349 = vmatpush.msra.mxu3 %v3102_v53  ;;  %1281 = vmatpush.msra.mxu2 %v3181_v37  ;;  %v898_v55 = vadd.f32 %v3475_v61, %v897_v50  ;;  %vm904_vm7 = vcmp.eq.f32.partialorder %v903_v44, 8.507059e+37  ;;  %v4272_v39 = vld [vmem:[#allocation62_spill] sm:$0xff]  ;;  %v4277_v50 = vld [vmem:[#allocation49_spill] sm:$0xff]  ;;  %v4281_v44 = vld [vmem:[#allocation24_spill] sm:$0xff] }
 0x24c   :  { %v909_v32 = vmul.f32 %v887_v23, %v867_v25  ;;  %1375 = vmatpush.msrb.mxu0 %v3454_v5  ;;  %v4273_v25 = vld [vmem:[#allocation18_spill] sm:$0xff]  ;;  %v4275_v23 = vld [vmem:[#allocation19_spill] sm:$0xff] }
 0x24d   :  { %1350 = vmatpush.msra.mxu3 %v3106_v63  ;;  %1282 = vmatpush.msra.mxu2 %v3187_v57  ;;  %v902_v53 = vsel %vm901_vm6, %v3475_v61, %v898_v55  ;;  %v4250_v57 = vld [vmem:[#allocation30_spill] sm:$0xff]  ;;  %v4261_v61 = vld [vmem:[#allocation40_spill] sm:$0xff] }
 0x24e   :  { %v910_v33 = vadd.f32 %v909_v32, %v759_v19  ;;  %v907_v51 = vsel %vm904_vm7, %v906_v15, %v902_v53  ;;  %1376 = vmatpush.msrb.mxu0 %v3462_v26  ;;  %v4274_v19 = vld [vmem:[#allocation20_spill] sm:$0xff]  ;;  %v4276_v32 = vld [vmem:[#allocation21_spill] sm:$0xff]  ;;  %v4279_v55 = vld [vmem:[#allocation22_spill] sm:$0xff] }
 0x24f   :  { %1351 = vmatpush.msra.mxu3 %v3110_v27  ;;  %1283 = vmatpush.msra.mxu2 %v3192_v60  ;;  %v4251_v60 = vld [vmem:[#allocation54_spill] sm:$0xff]  ;;  %v4282_v53 = vld [vmem:[#allocation29_spill] sm:$0xff] }
 0x250   :  { %2323 = vtanh.f32 %v910_v33  ;;  %v4278_v33 = vld [vmem:[#allocation23_spill] sm:$0xff] }
 0x251   :  { %1352 = vmatpush.msra.mxu3 %v3113_v42  ;;  %1284 = vmatpush.msra.mxu2 %v3200_v59  ;;  %v4252_v59 = vld [vmem:[#allocation36_spill] sm:$0xff] }
 0x253   :  { %1353 = vmatpush.msra.mxu3 %v3120_v1  ;;  %1285 = vmatpush.msra.mxu2 %v3207_v58  ;;  %v4246_v1 = vld [vmem:[#allocation35_spill] sm:$0xff]  ;;  %v4253_v58 = vld [vmem:[#allocation38_spill] sm:$0xff] }
 0x255   :  { %1354 = vmatpush.msra.mxu3 %v3124_v18  ;;  %1286 = vmatpush.msra.mxu2 %v3213_v17  ;;  %v4247_v18 = vld [vmem:[#allocation41_spill] sm:$0xff]  ;;  %v4254_v17 = vld [vmem:[#allocation55_spill] sm:$0xff] }
 0x256   :  { %v2324_v63 = vpop.eup %2323 }
 0x257   :  { %v912_v27 = vsub.f32 %v3223_v43, %v2324_v63  ;;  %1355 = vmatpush.msra.mxu3 %v3128_v24  ;;  %1287 = vmatpush.msra.mxu2 %v3218_v21  ;;  %v4248_v24 = vld [vmem:[#allocation53_spill] sm:$0xff]  ;;  %v4255_v21 = vld [vmem:[#allocation43_spill] sm:$0xff] }
 0x258   :  { %v4256_v43 = vld [vmem:[#allocation45_spill] sm:$0xff] }
 0x259   :  { %v913_v42 = vmul.f32 %v912_v27, %v907_v51  ;;  %1356 = vmatpush.msra.mxu3 %v3132_v2  ;;  %1288 = vmatpush.msra.mxu2 %v3226_v28  ;;  %v4249_v2 = vld [vmem:[#allocation28_spill] sm:$0xff]  ;;  %v4257_v28 = vld [vmem:[#allocation57_spill] sm:$0xff] }
 0x25a   :  { %v4284_v27 = vld [vmem:[#allocation37_spill] sm:$0xff] }
 0x25b   :  { %v3526_v37 = vadd.f32 %v2324_v63, %v913_v42  ;;  %v4283_v63 = vld [vmem:[#allocation27_spill] sm:$0xff] }
 0x25d   :  { %916 = vst [vmem:[#allocation12 + $0x10] sm:$0xff] %v3526_v37  ;;  %1091 = vmatmul.f32.vlgmr.msrb.gmra.mxu1 %v3526_v37  ;;  %1111 = vmatmul.f32.vlgmr.msrb.gmra.mxu2 %v3526_v37 }
 0x25e   :  { %1131 = vmatmul.f32.vlgmr.msrb.gmra.mxu3 %v3526_v37  ;;  %1381 = vmatpush.msrb.mxu1 %v3364_v9 }
 0x25f   :  { %1519 = vmatpush.msrb.mxu3 %v3238_v38  ;;  %1499 = vmatpush.msrb.mxu2 %v3236_v22  ;;  %v4258_v22 = vld [vmem:[#allocation31_spill] sm:$0xff]  ;;  %v4259_v38 = vld [vmem:[#allocation32_spill] sm:$0xff] }
 0x260   :  { %1382 = vmatpush.msrb.mxu1 %v3370_v56 }
 0x261   :  { %1520 = vmatpush.msrb.mxu3 %v3244_v20  ;;  %1500 = vmatpush.msrb.mxu2 %v4246_v1  ;;  %v4260_v20 = vld [vmem:[#allocation58_spill] sm:$0xff] }
 0x262   :  { %1383 = vmatpush.msrb.mxu1 %v3378_v14  ;;  %v4285_v1 = vld [vmem:[#allocation34_spill] sm:$0xff] }
 0x263   :  { %1521 = vmatpush.msrb.mxu3 %v4247_v18  ;;  %1501 = vmatpush.msrb.mxu2 %v4249_v2 }
 0x264   :  { %1384 = vmatpush.msrb.mxu1 %v4248_v24 }
 0x265   :  { %1522 = vmatpush.msrb.mxu3 %v4250_v57  ;;  %1502 = vmatpush.msrb.mxu2 %v4252_v59  ;;  %v4286_v59 = vld [vmem:[#allocation26_spill] sm:$0xff] }
 0x266   :  { %1385 = vmatpush.msrb.mxu1 %v4251_v60 }
 0x267   :  { %1523 = vmatpush.msrb.mxu3 %v4253_v58  ;;  %1503 = vmatpush.msrb.mxu2 %v4255_v21 }
 0x268   :  { %1386 = vmatpush.msrb.mxu1 %v4254_v17 }
 0x269   :  { %1524 = vmatpush.msrb.mxu3 %v4256_v43  ;;  %1504 = vmatpush.msrb.mxu2 %v4258_v22  ;;  %v4287_v22 = vld [vmem:[#allocation39_spill] sm:$0xff] }
 0x26a   :  { %1387 = vmatpush.msrb.mxu1 %v4257_v28 }
 0x26b   :  { %1525 = vmatpush.msrb.mxu3 %v4259_v38  ;;  %1505 = vmatpush.msrb.mxu2 %v4261_v61 }
 0x26c   :  { %1388 = vmatpush.msrb.mxu1 %v4260_v20 }
 0x26d   :  { %1526 = vmatpush.msrb.mxu3 %v4262_v31  ;;  %1506 = vmatpush.msrb.mxu2 %v4264_v47  ;;  %v1184_v31 = vld [vmem:[#allocation3 + $0x20] sm:$0xff] }
 0x26e   :  { %1389 = vmatpush.msrb.mxu1 %v4263_v49  ;;  %1249 = vmatmul.f32.vlgmr.msra.gmra.mxu0 %v1184_v31 }
 0x26f   :  { %1527 = vmatpush.msrb.mxu3 %v4265_v6  ;;  %1507 = vmatpush.msrb.mxu2 %v4267_v11  ;;  %v4288_v11 = vld [vmem:[#allocation50_spill] sm:$0xff] }
 0x270   :  { %1390 = vmatpush.msrb.mxu1 %v4266_v8  ;;  %1289 = vmatmul.f32.vlgmr.msra.gmra.mxu2 %v1184_v31 }
 0x271   :  { %1528 = vmatpush.msrb.mxu3 %v4268_v7  ;;  %1508 = vmatpush.msrb.mxu2 %v4270_v13  ;;  %v4289_v13 = vld [vmem:[#allocation51_spill] sm:$0xff] }
 0x272   :  { %1391 = vmatpush.msrb.mxu1 %v4269_v3 }
 0x273   :  { %1529 = vmatpush.msrb.mxu3 %v4271_v48  ;;  %1509 = vmatpush.msrb.mxu2 %v4273_v25  ;;  %v4290_v25 = vld [vmem:[#allocation52_spill] sm:$0xff] }
 0x274   :  { %1392 = vmatpush.msrb.mxu1 %v4272_v39 }
 0x275   :  { %1530 = vmatpush.msrb.mxu3 %v4274_v19  ;;  %1510 = vmatpush.msrb.mxu2 %v4275_v23 }
 0x276   :  { %1393 = vmatpush.msrb.mxu1 %v3442_v35 }
 0x277   :  { %1531 = vmatpush.msrb.mxu3 %v4276_v32  ;;  %1511 = vmatpush.msrb.mxu2 %v4277_v50 }
 0x278   :  { %1394 = vmatpush.msrb.mxu1 %v3450_v52 }
 0x279   :  { %1532 = vmatpush.msrb.mxu3 %v4278_v33  ;;  %1512 = vmatpush.msrb.mxu2 %v4279_v55  ;;  %v4291_v33 = vld [vmem:[#allocation56_spill] sm:$0xff] }
 0x27a   :  { %1395 = vmatpush.msrb.mxu1 %v3456_v62 }
 0x27b   :  { %1533 = vmatpush.msrb.mxu3 %v4280_v36  ;;  %1513 = vmatpush.msrb.mxu2 %v4281_v44 }
 0x27c   :  { %1396 = vmatpush.msrb.mxu1 %v3464_v4 }
 0x27d   :  { %1534 = vmatpush.msrb.mxu3 %v4282_v53  ;;  %1514 = vmatpush.msrb.mxu2 %v4283_v63 }
 0x27e   :  { %1269 = vmatmul.f32.vlgmr.msra.gmra.mxu1 %v1184_v31 }
 0x27f   :  { %1627 = vmatpush.msra.mxu2 %v4288_v11  ;;  %v3659_v11 = vld [vmem:[#allocation9 + $0x90] sm:$0xff] }
 0x281   :  { %1628 = vmatpush.msra.mxu2 %v4289_v13  ;;  %v3665_v13 = vld [vmem:[#allocation9 + $0x60] sm:$0xff] }
 0x283   :  { %1629 = vmatpush.msra.mxu2 %v3372_v40 }
 0x285   :  { %1630 = vmatpush.msra.mxu2 %v4290_v25  ;;  %v3668_v25 = vld [vmem:[#allocation3 + $0x28] sm:$0xff] }
 0x286   :  { %1515 = vmatmul.f32.vlgmr.msrb.gmra.mxu2 %v3668_v25 }
 0x287   :  { %1631 = vmatpush.msra.mxu2 %v3387_v41 }
 0x289   :  { %1632 = vmatpush.msra.mxu2 %v3394_v16 }
 0x28b   :  { %1633 = vmatpush.msra.mxu2 %v4291_v33 }
 0x28d   :  { %1634 = vmatpush.msra.mxu2 %v3410_v30 }
 0x28f   :  { %1635 = vmatpush.msra.mxu2 %v3416_v0 }
 0x291   :  { %1636 = vmatpush.msra.mxu2 %v3422_v34 }
 0x293   :  { %1637 = vmatpush.msra.mxu2 %v3428_v45 }
 0x295   :  { %1638 = vmatpush.msra.mxu2 %v3434_v10 }
 0x297   :  { %1639 = vmatpush.msra.mxu2 %v3440_v29 }
 0x299   :  { %1640 = vmatpush.msra.mxu2 %v3448_v46  ;;  %v3628_v46 = vld [vmem:[#allocation9 + $0x168] sm:$0xff] }
 0x29a   :  { %1607 = vmatpush.msra.mxu1 %v3628_v46 }
 0x29b   :  { %1641 = vmatpush.msra.mxu2 %v3454_v5 }
 0x29d   :  { %1642 = vmatpush.msra.mxu2 %v3462_v26 }
 0x2ab   :  { %v1024_v53 = vpop.f32.mrf.mxu0 }
 0x2ac   :  { %v1025_v16 = vadd.f32 %v1024_v53, %v3040_v12  ;;  %v3693_v53 = vld [vmem:[#allocation8 + $0x160] sm:$0xff] }
 0x2af   :  { %v984_v15 = vpop.f32.mrf.mxu2  ;;  %v1004_v57 = vpop.f32.mrf.mxu3 }
 0x2b0   :  { %v985_v51 = vadd.f32 %v984_v15, %v4284_v27  ;;  %v1005_v58 = vadd.f32 %v1004_v57, %v4286_v59 }
 0x2da   :  { %v1092_v42 = vpop.f32.mrf.mxu1 }
 0x2db   :  { %v1093_v18 = vadd.f32 %v1092_v42, %v4285_v1 }
 0x2dd   :  { %v1135_v2 = vadd.f32 %v1093_v18, %v985_v51 }
 0x2df   :  { %v2275_v21 = vmul.f32 -1.442695, %v1135_v2 }
 0x2e0   :  { %v1112_v43 = vpop.f32.mrf.mxu2 }
 0x2e1   :  { %2325 = vpow2.f32 %v2275_v21  ;;  %v1113_v38 = vadd.f32 %v1112_v43, %v4287_v22  ;;  %v1132_v63 = vpop.f32.mrf.mxu3 }
 0x2e2   :  { %v1133_v18 = vadd.f32 %v1132_v63, %v3035_v54 }
 0x2e3   :  { %v1155_v61 = vadd.f32 %v1113_v38, %v1005_v58 }
 0x2e5   :  { %v2276_v47 = vmul.f32 -1.442695, %v1155_v61 }
 0x2e7   :  { %v2326_v6 = vpop.eup %2325  ;;  %2327 = vpow2.f32 %v2276_v47 }
 0x2e8   :  { %v1139_v7 = vadd.f32 1.0, %v2326_v6 }
 0x2ea   :  { %2329 = vrcp.f32 %v1139_v7  ;;  %v1151_v55 = vand.u32 2147483648, %v1139_v7  ;;  %v1149_v44 = vand.u32 2147483647, %v1139_v7  ;;  %vm1145_vm9 = vweird.f32 %v1139_v7 }
 0x2eb   :  { %v1250_v5 = vpop.f32.mrf.mxu0 }
 0x2ec   :  { %v1152_v41 = vor.u32 1.1754944e-38, %v1151_v55  ;;  %vm1150_vm11 = vcmp.eq.f32.partialorder %v1149_v44, 8.507059e+37  ;;  %v3682_v55 = vld [vmem:[#allocation9 + $0x18] sm:$0xff] }
 0x2ed   :  { %v2328_v48 = vpop.eup %2327  ;;  %v3691_v44 = vld [vmem:[#allocation8 + $0x178] sm:$0xff] }
 0x2ee   :  { %v1159_v19 = vadd.f32 1.0, %v2328_v48  ;;  %1539 = vmatpush.msra.mxu0 %v3691_v44  ;;  %1805 = vmatpush.msrb.mxu2 %v3691_v44 }
 0x2f0   :  { %v2330_v23 = vpop.eup %2329  ;;  %2331 = vrcp.f32 %v1159_v19  ;;  %v1171_v43 = vand.u32 2147483648, %v1159_v19  ;;  %vm1165_vm13 = vweird.f32 %v1159_v19  ;;  %v1169_v38 = vand.u32 2147483647, %v1159_v19  ;;  %1540 = vmatpush.msra.mxu0 %v3693_v53  ;;  %1806 = vmatpush.msrb.mxu2 %v3693_v53 }
 0x2f1   :  { %v1141_v32 = vmul.f32 %v2330_v23, %v1139_v7  ;;  %vm1146_vm8 = vweird.f32 %v2330_v23  ;;  %v3662_v7 = vld [vmem:[#allocation9 + $0x78] sm:$0xff] }
 0x2f2   :  { %vm1147_vm10 = vmor %vm1145_vm9, %vm1146_vm8  ;;  %v1172_v45 = vor.u32 1.1754944e-38, %v1171_v43  ;;  %vm1170_vm15 = vcmp.eq.f32.partialorder %v1169_v38, 8.507059e+37  ;;  %v3722_v43 = vld [vmem:[#allocation8 + $0x140] sm:$0xff] }
 0x2f3   :  { %v1142_v50 = vsub.f32 1.0, %v1141_v32 }
 0x2f5   :  { %v1143_v36 = vmul.f32 %v2330_v23, %v1142_v50  ;;  %v3678_v50 = vld [vmem:[#allocation9 + $0x30] sm:$0xff] }
 0x2f6   :  { %v2332_v40 = vpop.eup %2331 }
 0x2f7   :  { %v1161_v15 = vmul.f32 %v2332_v40, %v1159_v19  ;;  %v1144_v51 = vadd.f32 %v2330_v23, %v1143_v36  ;;  %vm1166_vm12 = vweird.f32 %v2332_v40  ;;  %v3672_v19 = vld [vmem:[#allocation9 + $0x48] sm:$0xff]  ;;  %v3687_v36 = vld [vmem:[#allocation9] sm:$0xff] }
 0x2f8   :  { %vm1167_vm14 = vmor %vm1165_vm13, %vm1166_vm12 }
 0x2f9   :  { %v1162_v42 = vsub.f32 1.0, %v1161_v15  ;;  %v1148_v2 = vsel %vm1147_vm10, %v2330_v23, %v1144_v51 }
 0x2fa   :  { %v1153_v57 = vsel %vm1150_vm11, %v1152_v41, %v1148_v2  ;;  %v3704_v41 = vld [vmem:[#allocation8 + $0x130] sm:$0xff]  ;;  %v3713_v2 = vld [vmem:[#allocation8 + $0x158] sm:$0xff] }
 0x2fb   :  { %v1175_v30 = vmul.f32 %v1153_v57, %v1133_v18  ;;  %v1163_v58 = vmul.f32 %v2332_v40, %v1162_v42  ;;  %v3709_v42 = vld [vmem:[#allocation8 + $0x118] sm:$0xff]  ;;  %v3711_v18 = vld [vmem:[#allocation8 + $0x170] sm:$0xff] }
 0x2fd   :  { %v1176_v21 = vadd.f32 %v1175_v30, %v1025_v16  ;;  %v1164_v0 = vadd.f32 %v2332_v40, %v1163_v58 }
 0x2ff   :  { %2333 = vtanh.f32 %v1176_v21  ;;  %v1168_v34 = vsel %vm1167_vm14, %v2332_v40, %v1164_v0  ;;  %v3697_v40 = vld [vmem:[#allocation8 + $0x148] sm:$0xff]  ;;  %v3720_v0 = vld [vmem:[#allocation8 + $0x100] sm:$0xff] }
 0x300   :  { %v1173_v31 = vsel %vm1170_vm15, %v1172_v45, %v1168_v34  ;;  %1541 = vmatpush.msra.mxu0 %v3697_v40  ;;  %1807 = vmatpush.msrb.mxu2 %v3697_v40  ;;  %v1290_v34 = vpop.f32.mrf.mxu2  ;;  %v3728_v45 = vld [vmem:[#allocation8 + $0xe8] sm:$0xff] }
 0x302   :  { %1542 = vmatpush.msra.mxu0 %v3704_v41  ;;  %1808 = vmatpush.msrb.mxu2 %v3704_v41 }
 0x304   :  { %1543 = vmatpush.msra.mxu0 %v3709_v42  ;;  %1809 = vmatpush.msrb.mxu2 %v3709_v42 }
 0x305   :  { %v2334_v61 = vpop.eup %2333 }
 0x306   :  { %v1178_v10 = vsub.f32 %v3526_v37, %v2334_v61  ;;  %v3644_v37 = vld [vmem:[#allocation9 + $0xf0] sm:$0xff]  ;;  %1544 = vmatpush.msra.mxu0 %v3720_v0  ;;  %1810 = vmatpush.msrb.mxu2 %v3720_v0 }
 0x308   :  { %v1179_v29 = vmul.f32 %v1178_v10, %v1173_v31  ;;  %v3730_v10 = vld [vmem:[#allocation8 + $0x128] sm:$0xff]  ;;  %1545 = vmatpush.msra.mxu0 %v3728_v45  ;;  %1811 = vmatpush.msrb.mxu2 %v3728_v45 }
 0x30a   :  { %v3606_v47 = vadd.f32 %v2334_v61, %v1179_v29 }
 0x30c   :  { %1182 = vst [vmem:[#allocation12 + $0x18] sm:$0xff] %v3606_v47  ;;  %1357 = vmatmul.f32.vlgmr.msra.gmra.mxu3 %v3606_v47  ;;  %1377 = vmatmul.f32.vlgmr.msrb.gmra.mxu0 %v3606_v47 }
 0x30d   :  { %1397 = vmatmul.f32.vlgmr.msrb.gmra.mxu1 %v3606_v47  ;;  %1647 = vmatpush.msra.mxu3 %v3364_v9  ;;  %v3633_v9 = vld [vmem:[#allocation9 + $0x138] sm:$0xff] }
 0x30f   :  { %1648 = vmatpush.msra.mxu3 %v3370_v56  ;;  %v3631_v56 = vld [vmem:[#allocation9 + $0x150] sm:$0xff] }
 0x310   :  { %1608 = vmatpush.msra.mxu1 %v3631_v56 }
 0x311   :  { %1649 = vmatpush.msra.mxu3 %v3378_v14  ;;  %v3636_v14 = vld [vmem:[#allocation9 + $0x120] sm:$0xff] }
 0x312   :  { %1609 = vmatpush.msra.mxu1 %v3633_v9 }
 0x313   :  { %1650 = vmatpush.msra.mxu3 %v4248_v24 }
 0x314   :  { %1610 = vmatpush.msra.mxu1 %v3636_v14  ;;  %1535 = vmatmul.f32.vlgmr.msrb.gmra.mxu3 %v3668_v25 }
 0x315   :  { %1651 = vmatpush.msra.mxu3 %v4251_v60  ;;  %v3647_v60 = vld [vmem:[#allocation9 + $0xd8] sm:$0xff] }
 0x317   :  { %1652 = vmatpush.msra.mxu3 %v4254_v17  ;;  %v1251_v17 = vadd.f32 %v1250_v5, %v4284_v27 }
 0x319   :  { %1653 = vmatpush.msra.mxu3 %v4257_v28 }
 0x31b   :  { %1654 = vmatpush.msra.mxu3 %v4260_v20 }
 0x31d   :  { %1655 = vmatpush.msra.mxu3 %v4263_v49 }
 0x31f   :  { %1656 = vmatpush.msra.mxu3 %v4266_v8  ;;  %v3653_v8 = vld [vmem:[#allocation9 + $0xc0] sm:$0xff] }
 0x321   :  { %1657 = vmatpush.msra.mxu3 %v4269_v3 }
 0x323   :  { %1658 = vmatpush.msra.mxu3 %v4272_v39  ;;  %v3656_v39 = vld [vmem:[#allocation9 + $0xa8] sm:$0xff] }
 0x325   :  { %1659 = vmatpush.msra.mxu3 %v3442_v35  ;;  %v1270_v35 = vpop.f32.mrf.mxu1 }
 0x327   :  { %1660 = vmatpush.msra.mxu3 %v3450_v52  ;;  %v3640_v52 = vld [vmem:[#allocation9 + $0x108] sm:$0xff] }
 0x328   :  { %1611 = vmatpush.msra.mxu1 %v3640_v52 }
 0x329   :  { %1661 = vmatpush.msra.mxu3 %v3456_v62  ;;  %v1271_v62 = vadd.f32 %v1270_v35, %v4286_v59  ;;  %v1291_v35 = vadd.f32 %v1290_v34, %v3040_v12 }
 0x32a   :  { %1612 = vmatpush.msra.mxu1 %v3644_v37 }
 0x32b   :  { %1662 = vmatpush.msra.mxu3 %v3464_v4 }
 0x32c   :  { %1613 = vmatpush.msra.mxu1 %v3647_v60 }
 0x32d   :  { %1873 = vmatpush.msrb.mxu3 %v3628_v46 }
 0x32e   :  { %1614 = vmatpush.msra.mxu1 %v3653_v8 }
 0x32f   :  { %1874 = vmatpush.msrb.mxu3 %v3631_v56 }
 0x330   :  { %1615 = vmatpush.msra.mxu1 %v3656_v39 }
 0x331   :  { %1875 = vmatpush.msrb.mxu3 %v3633_v9 }
 0x332   :  { %1616 = vmatpush.msra.mxu1 %v3659_v11 }
 0x333   :  { %1876 = vmatpush.msrb.mxu3 %v3636_v14 }
 0x334   :  { %1617 = vmatpush.msra.mxu1 %v3662_v7 }
 0x335   :  { %1877 = vmatpush.msrb.mxu3 %v3640_v52 }
 0x336   :  { %1618 = vmatpush.msra.mxu1 %v3665_v13 }
 0x337   :  { %1878 = vmatpush.msrb.mxu3 %v3644_v37 }
 0x338   :  { %1619 = vmatpush.msra.mxu1 %v3672_v19 }
 0x339   :  { %1879 = vmatpush.msrb.mxu3 %v3647_v60 }
 0x33a   :  { %1620 = vmatpush.msra.mxu1 %v3678_v50 }
 0x33b   :  { %1880 = vmatpush.msrb.mxu3 %v3653_v8 }
 0x33c   :  { %1621 = vmatpush.msra.mxu1 %v3682_v55 }
 0x33d   :  { %1881 = vmatpush.msrb.mxu3 %v3656_v39 }
 0x33e   :  { %1622 = vmatpush.msra.mxu1 %v3687_v36 }
 0x33f   :  { %1882 = vmatpush.msrb.mxu3 %v3659_v11 }
 0x340   :  { %1785 = vmatpush.msrb.mxu1 %v3711_v18 }
 0x341   :  { %1883 = vmatpush.msrb.mxu3 %v3662_v7 }
 0x342   :  { %1786 = vmatpush.msrb.mxu1 %v3713_v2 }
 0x343   :  { %1884 = vmatpush.msrb.mxu3 %v3665_v13 }
 0x344   :  { %1787 = vmatpush.msrb.mxu1 %v3722_v43 }
 0x345   :  { %1885 = vmatpush.msrb.mxu3 %v3672_v19 }
 0x346   :  { %1788 = vmatpush.msrb.mxu1 %v3730_v10 }
 0x347   :  { %1886 = vmatpush.msrb.mxu3 %v3678_v50 }
 0x349   :  { %1887 = vmatpush.msrb.mxu3 %v3682_v55 }
 0x34b   :  { %1888 = vmatpush.msrb.mxu3 %v3687_v36 }
 0x389   :  { %v1378_v26 = vpop.f32.mrf.mxu0 }
 0x38a   :  { %v1379_v4 = vadd.f32 %v1378_v26, %v4287_v22  ;;  %v1398_v38 = vpop.f32.mrf.mxu1  ;;  %v3739_v26 = vld [vmem:[#allocation8 + $0xd0] sm:$0xff] }
 0x38b   :  { %v1399_v5 = vadd.f32 %v1398_v38, %v3035_v54  ;;  %1546 = vmatpush.msra.mxu0 %v3739_v26  ;;  %1812 = vmatpush.msrb.mxu2 %v3739_v26  ;;  %v3786_v38 = vld [vmem:[#allocation8 + $0x28] sm:$0xff] }
 0x38c   :  { %v1421_v24 = vadd.f32 %v1379_v4, %v1271_v62  ;;  %v3741_v4 = vld [vmem:[#allocation8 + $0x110] sm:$0xff] }
 0x38d   :  { %1789 = vmatpush.msrb.mxu1 %v3741_v4 }
 0x38e   :  { %v2278_v28 = vmul.f32 -1.442695, %v1421_v24 }
 0x38f   :  { %v1358_v20 = vpop.f32.mrf.mxu3 }
 0x390   :  { %v1359_v49 = vadd.f32 %v1358_v20, %v4285_v1  ;;  %2335 = vpow2.f32 %v2278_v28  ;;  %v3747_v28 = vld [vmem:[#allocation8 + $0xb8] sm:$0xff] }
 0x391   :  { %1547 = vmatpush.msra.mxu0 %v3747_v28  ;;  %1813 = vmatpush.msrb.mxu2 %v3747_v28 }
 0x392   :  { %v1401_v3 = vadd.f32 %v1359_v49, %v1251_v17 }
 0x394   :  { %v2277_v6 = vmul.f32 -1.442695, %v1401_v3  ;;  %v3754_v3 = vld [vmem:[#allocation8 + $0xa0] sm:$0xff] }
 0x395   :  { %1548 = vmatpush.msra.mxu0 %v3754_v3  ;;  %1814 = vmatpush.msrb.mxu2 %v3754_v3 }
 0x396   :  { %2337 = vpow2.f32 %v2277_v6  ;;  %v2336_v48 = vpop.eup %2335  ;;  %v3759_v6 = vld [vmem:[#allocation8 + $0x88] sm:$0xff] }
 0x397   :  { %v3676_v32 = vadd.f32 1.0, %v2336_v48  ;;  %1549 = vmatpush.msra.mxu0 %v3759_v6  ;;  %1815 = vmatpush.msrb.mxu2 %v3759_v6 }
 0x399   :  { %vm1431_vm5 = vweird.f32 %v3676_v32 }
 0x39c   :  { %v2338_v23 = vpop.eup %2337 }
 0x39d   :  { %v1405_v33 = vadd.f32 1.0, %v2338_v23  ;;  %v1437_v23 = vand.u32 2147483648, %v3676_v32 }
 0x39f   :  { %2339 = vrcp.f32 %v1405_v33  ;;  %v1417_v30 = vand.u32 2147483648, %v1405_v33  ;;  %v1415_v21 = vand.u32 2147483647, %v1405_v33  ;;  %vm1411_vm1 = vweird.f32 %v1405_v33 }
 0x3a0   :  { %2341 = vrcp.f32 %v3676_v32 }
 0x3a1   :  { %v1418_v29 = vor.u32 1.1754944e-38, %v1417_v30  ;;  %vm1416_vm3 = vcmp.eq.f32.partialorder %v1415_v21, 8.507059e+37  ;;  %v1438_v30 = vor.u32 1.1754944e-38, %v1437_v23  ;;  %v1729_v23 = vld [vmem:[#allocation8 + $0x60] sm:$0xff] }
 0x3a5   :  { %v2340_v63 = vpop.eup %2339 }
 0x3a6   :  { %v3702_v15 = vpop.eup %2341  ;;  %v1407_v51 = vmul.f32 %v2340_v63, %v1405_v33  ;;  %vm1412_vm0 = vweird.f32 %v2340_v63  ;;  %v3767_v33 = vld [vmem:[#allocation8 + $0x70] sm:$0xff] }
 0x3a7   :  { %v1427_v57 = vmul.f32 %v3702_v15, %v3676_v32  ;;  %vm1413_vm2 = vmor %vm1411_vm1, %vm1412_vm0  ;;  %vm1432_vm4 = vweird.f32 %v3702_v15  ;;  %1550 = vmatpush.msra.mxu0 %v3767_v33  ;;  %1816 = vmatpush.msrb.mxu2 %v3767_v33 }
 0x3a8   :  { %v1408_v16 = vsub.f32 1.0, %v1407_v51  ;;  %vm1433_vm6 = vmor %vm1431_vm5, %vm1432_vm4  ;;  %v3774_v51 = vld [vmem:[#allocation8 + $0x58] sm:$0xff] }
 0x3a9   :  { %v1428_v31 = vsub.f32 1.0, %v1427_v57  ;;  %1551 = vmatpush.msra.mxu0 %v3774_v51  ;;  %1817 = vmatpush.msrb.mxu2 %v3774_v51 }
 0x3aa   :  { %v1409_v58 = vmul.f32 %v2340_v63, %v1408_v16 }
 0x3ab   :  { %v1429_v20 = vmul.f32 %v3702_v15, %v1428_v31  ;;  %v1759_v31 = vld [vmem:[#allocation8 + $0x150] sm:$0xff] }
 0x3ac   :  { %v1410_v61 = vadd.f32 %v2340_v63, %v1409_v58  ;;  %v3780_v58 = vld [vmem:[#allocation8 + $0x40] sm:$0xff] }
 0x3ad   :  { %v1430_v48 = vadd.f32 %v3702_v15, %v1429_v20  ;;  %1552 = vmatpush.msra.mxu0 %v3780_v58  ;;  %1818 = vmatpush.msrb.mxu2 %v3780_v58  ;;  %v1736_v20 = vld [vmem:[#allocation8 + $0x98] sm:$0xff] }
 0x3ae   :  { %v1414_v62 = vsel %vm1413_vm2, %v2340_v63, %v1410_v61  ;;  %v1435_v63 = vand.u32 2147483647, %v3676_v32  ;;  %v3794_v61 = vld [vmem:[#allocation8 + $0x10] sm:$0xff] }
 0x3af   :  { %v1419_v24 = vsel %vm1416_vm3, %v1418_v29, %v1414_v62  ;;  %v1434_v16 = vsel %vm1433_vm6, %v3702_v15, %v1430_v48  ;;  %1553 = vmatpush.msra.mxu0 %v3786_v38  ;;  %1819 = vmatpush.msrb.mxu2 %v3786_v38  ;;  %v1756_v29 = vld [vmem:[#allocation8 + $0x138] sm:$0xff]  ;;  %v1745_v62 = vld [vmem:[#allocation8 + $0xe0] sm:$0xff] }
 0x3b0   :  { %v1441_v17 = vmul.f32 %v1419_v24, %v1399_v5  ;;  %vm1436_vm7 = vcmp.eq.f32.partialorder %v1435_v63, 8.507059e+37  ;;  %v1753_v5 = vld [vmem:[#allocation8 + $0x120] sm:$0xff]  ;;  %v1730_v63 = vld [vmem:[#allocation8 + $0x68] sm:$0xff] }
 0x3b1   :  { %v1439_v21 = vsel %vm1436_vm7, %v1438_v30, %v1434_v16  ;;  %1554 = vmatpush.msra.mxu0 %v3794_v61  ;;  %1820 = vmatpush.msrb.mxu2 %v3794_v61  ;;  %v1741_v24 = vld [vmem:[#allocation8 + $0xc0] sm:$0xff]  ;;  %v1726_v16 = vld [vmem:[#allocation8 + $0x48] sm:$0xff]  ;;  %v1723_v30 = vld [vmem:[#allocation8 + $0x30] sm:$0xff] }
 0x3b2   :  { %v1442_v49 = vadd.f32 %v1441_v17, %v1291_v35  ;;  %1555 = vmatmul.f32.vlgmr.msra.gmra.mxu0 %v3668_v25  ;;  %v1750_v35 = vld [vmem:[#allocation8 + $0x108] sm:$0xff]  ;;  %v1747_v25 = vld [vmem:[#allocation8 + $0xf0] sm:$0xff]  ;;  %v1733_v48 = vld [vmem:[#allocation8 + $0x80] sm:$0xff] }
 0x3b3   :  { %v1739_v17 = vld [vmem:[#allocation8 + $0xb0] sm:$0xff] }
 0x3b4   :  { %2343 = vtanh.f32 %v1442_v49  ;;  %v1732_v49 = vld [vmem:[#allocation8 + $0x78] sm:$0xff] }
 0x3ba   :  { %v2344_v57 = vpop.eup %2343 }
 0x3bb   :  { %v1444_v32 = vsub.f32 %v3606_v47, %v2344_v57  ;;  %v1762_v47 = vld [vmem:[#allocation8 + $0x168] sm:$0xff] }
 0x3bc   :  { %1765 = vmatpush.msrb.mxu0 %v1762_v47 }
 0x3bd   :  { %v1445_v15 = vmul.f32 %v1444_v32, %v1439_v21  ;;  %v1724_v32 = vld [vmem:[#allocation8 + $0x38] sm:$0xff] }
 0x3be   :  { %1766 = vmatpush.msrb.mxu0 %v1759_v31  ;;  %v1720_v21 = vld [vmem:[#allocation8 + $0x18] sm:$0xff] }
 0x3bf   :  { %v3791_v34 = vadd.f32 %v2344_v57, %v1445_v15  ;;  %v1727_v57 = vld [vmem:[#allocation8 + $0x50] sm:$0xff]  ;;  %v1721_v15 = vld [vmem:[#allocation8 + $0x20] sm:$0xff] }
 0x3c0   :  { %1767 = vmatpush.msrb.mxu0 %v1756_v29 }
 0x3c1   :  { %1448 = vst [vmem:[#allocation12 + $0x20] sm:$0xff] %v3791_v34  ;;  %1623 = vmatmul.f32.vlgmr.msra.gmra.mxu1 %v3791_v34  ;;  %1643 = vmatmul.f32.vlgmr.msra.gmra.mxu2 %v3791_v34 }
 0x3c2   :  { %1663 = vmatmul.f32.vlgmr.msra.gmra.mxu3 %v3791_v34  ;;  %2031 = vmatpush.msra.mxu2 %v1762_v47  ;;  %v1717_v47 = vld [vmem:[#allocation8] sm:$0xff] }
 0x3c3   :  { %2051 = vmatpush.msra.mxu3 %v3711_v18  ;;  %1768 = vmatpush.msrb.mxu0 %v1753_v5  ;;  %v1748_v18 = vld [vmem:[#allocation8 + $0xf8] sm:$0xff] }
 0x3c4   :  { %2032 = vmatpush.msra.mxu2 %v1759_v31  ;;  %1790 = vmatpush.msrb.mxu1 %v1748_v18  ;;  %v1718_v31 = vld [vmem:[#allocation8 + $0x8] sm:$0xff] }
 0x3c5   :  { %2052 = vmatpush.msra.mxu3 %v3713_v2  ;;  %1769 = vmatpush.msrb.mxu0 %v1750_v35  ;;  %v1744_v2 = vld [vmem:[#allocation8 + $0xd8] sm:$0xff] }
 0x3c6   :  { %2033 = vmatpush.msra.mxu2 %v1756_v29  ;;  %1791 = vmatpush.msrb.mxu1 %v1745_v62  ;;  %v3809_v29 = vld [vmem:[#allocation9 + $0x170] sm:$0xff] }
 0x3c7   :  { %2053 = vmatpush.msra.mxu3 %v3722_v43  ;;  %1770 = vmatpush.msrb.mxu0 %v1747_v25  ;;  %v1742_v43 = vld [vmem:[#allocation8 + $0xc8] sm:$0xff] }
 0x3c8   :  { %2034 = vmatpush.msra.mxu2 %v1753_v5  ;;  %1792 = vmatpush.msrb.mxu1 %v1742_v43  ;;  %v3811_v5 = vld [vmem:[#allocation9 + $0x178] sm:$0xff] }
 0x3c9   :  { %2054 = vmatpush.msra.mxu3 %v3730_v10  ;;  %1771 = vmatpush.msrb.mxu0 %v1744_v2  ;;  %v1738_v10 = vld [vmem:[#allocation8 + $0xa8] sm:$0xff] }
 0x3ca   :  { %2035 = vmatpush.msra.mxu2 %v1750_v35  ;;  %1793 = vmatpush.msrb.mxu1 %v1739_v17  ;;  %v3815_v35 = vld [vmem:[#allocation9 + $0x158] sm:$0xff] }
 0x3cb   :  { %2055 = vmatpush.msra.mxu3 %v3741_v4  ;;  %1772 = vmatpush.msrb.mxu0 %v1741_v24  ;;  %v1735_v4 = vld [vmem:[#allocation8 + $0x90] sm:$0xff] }
 0x3cc   :  { %2036 = vmatpush.msra.mxu2 %v1747_v25  ;;  %1794 = vmatpush.msrb.mxu1 %v1736_v20  ;;  %v3817_v25 = vld [vmem:[#allocation9 + $0x160] sm:$0xff] }
 0x3cd   :  { %2056 = vmatpush.msra.mxu3 %v1748_v18  ;;  %1773 = vmatpush.msrb.mxu0 %v1738_v10  ;;  %v3821_v18 = vld [vmem:[#allocation9 + $0x140] sm:$0xff] }
 0x3ce   :  { %2037 = vmatpush.msra.mxu2 %v1744_v2  ;;  %1795 = vmatpush.msrb.mxu1 %v1733_v48  ;;  %v3823_v2 = vld [vmem:[#allocation9 + $0x148] sm:$0xff] }
 0x3cf   :  { %2057 = vmatpush.msra.mxu3 %v1745_v62  ;;  %1774 = vmatpush.msrb.mxu0 %v1735_v4  ;;  %v3827_v62 = vld [vmem:[#allocation9 + $0x128] sm:$0xff] }
 0x3d0   :  { %2038 = vmatpush.msra.mxu2 %v1741_v24  ;;  %1796 = vmatpush.msrb.mxu1 %v1730_v63  ;;  %v3829_v24 = vld [vmem:[#allocation9 + $0x130] sm:$0xff] }
 0x3d1   :  { %2058 = vmatpush.msra.mxu3 %v1742_v43  ;;  %1775 = vmatpush.msrb.mxu0 %v1732_v49  ;;  %v3833_v43 = vld [vmem:[#allocation9 + $0x110] sm:$0xff] }
 0x3d2   :  { %2039 = vmatpush.msra.mxu2 %v1738_v10  ;;  %1797 = vmatpush.msrb.mxu1 %v1727_v57  ;;  %v3835_v10 = vld [vmem:[#allocation9 + $0x118] sm:$0xff] }
 0x3d3   :  { %2059 = vmatpush.msra.mxu3 %v1739_v17  ;;  %1776 = vmatpush.msrb.mxu0 %v1729_v23  ;;  %v1516_v17 = vpop.f32.mrf.mxu2 }
 0x3d4   :  { %2040 = vmatpush.msra.mxu2 %v1735_v4  ;;  %1798 = vmatpush.msrb.mxu1 %v1724_v32  ;;  %v3839_v4 = vld [vmem:[#allocation9 + $0xf8] sm:$0xff] }
 0x3d5   :  { %2060 = vmatpush.msra.mxu3 %v1736_v20  ;;  %1777 = vmatpush.msrb.mxu0 %v1726_v16  ;;  %v3841_v20 = vld [vmem:[#allocation9 + $0x100] sm:$0xff] }
 0x3d6   :  { %2041 = vmatpush.msra.mxu2 %v1732_v49  ;;  %1799 = vmatpush.msrb.mxu1 %v1721_v15  ;;  %v1517_v49 = vadd.f32 %v1516_v17, %v4284_v27 }
 0x3d7   :  { %2061 = vmatpush.msra.mxu3 %v1733_v48  ;;  %1778 = vmatpush.msrb.mxu0 %v1723_v30  ;;  %v3846_v48 = vld [vmem:[#allocation9 + $0xe0] sm:$0xff] }
 0x3d8   :  { %2042 = vmatpush.msra.mxu2 %v1729_v23  ;;  %1800 = vmatpush.msrb.mxu1 %v1718_v31  ;;  %v3848_v23 = vld [vmem:[#allocation9 + $0xe8] sm:$0xff] }
 0x3d9   :  { %2062 = vmatpush.msra.mxu3 %v1730_v63  ;;  %1779 = vmatpush.msrb.mxu0 %v1720_v21 }
 0x3da   :  { %2043 = vmatpush.msra.mxu2 %v1726_v16  ;;  %1913 = vmatpush.msra.mxu1 %v3811_v5 }
 0x3db   :  { %2063 = vmatpush.msra.mxu3 %v1727_v57  ;;  %1780 = vmatpush.msrb.mxu0 %v1717_v47  ;;  %v3853_v57 = vld [vmem:[#allocation9 + $0xc8] sm:$0xff] }
 0x3dc   :  { %2044 = vmatpush.msra.mxu2 %v1723_v30  ;;  %1914 = vmatpush.msra.mxu1 %v3817_v25  ;;  %v3855_v30 = vld [vmem:[#allocation9 + $0xd0] sm:$0xff] }
 0x3dd   :  { %2064 = vmatpush.msra.mxu3 %v1724_v32  ;;  %1893 = vmatpush.msra.mxu0 %v3809_v29  ;;  %4292 = vst [vmem:[#allocation35_spill] sm:$0xff] %v3855_v30 }
 0x3de   :  { %2045 = vmatpush.msra.mxu2 %v1720_v21  ;;  %1915 = vmatpush.msra.mxu1 %v3823_v2  ;;  %v3859_v21 = vld [vmem:[#allocation9 + $0xb0] sm:$0xff] }
 0x3df   :  { %2065 = vmatpush.msra.mxu3 %v1721_v15  ;;  %1894 = vmatpush.msra.mxu0 %v3815_v35  ;;  %v3861_v15 = vld [vmem:[#allocation9 + $0xb8] sm:$0xff] }
 0x3e0   :  { %2046 = vmatpush.msra.mxu2 %v1717_v47  ;;  %1916 = vmatpush.msra.mxu1 %v3829_v24  ;;  %4293 = vst [vmem:[#allocation41_spill] sm:$0xff] %v3861_v15  ;;  %v1536_v47 = vpop.f32.mrf.mxu3 }
 0x3e1   :  { %2066 = vmatpush.msra.mxu3 %v1718_v31  ;;  %1895 = vmatpush.msra.mxu0 %v3821_v18  ;;  %v1537_v31 = vadd.f32 %v1536_v47, %v4286_v59  ;;  %v3879_v47 = vld [vmem:[#allocation9 + $0x68] sm:$0xff]  ;;  %v3881_v59 = vld [vmem:[#allocation9 + $0x70] sm:$0xff] }
 0x3e2   :  { %1917 = vmatpush.msra.mxu1 %v3835_v10  ;;  %4296 = vst [vmem:[#allocation30_spill] sm:$0xff] %v3881_v59 }
 0x3e3   :  { %1896 = vmatpush.msra.mxu0 %v3827_v62 }
 0x3e4   :  { %1918 = vmatpush.msra.mxu1 %v3841_v20 }
 0x3e5   :  { %1897 = vmatpush.msra.mxu0 %v3833_v43 }
 0x3e6   :  { %1919 = vmatpush.msra.mxu1 %v3848_v23 }
 0x3e7   :  { %1898 = vmatpush.msra.mxu0 %v3839_v4 }
 0x3e8   :  { %1920 = vmatpush.msra.mxu1 %v3855_v30  ;;  %v3875_v30 = vld [vmem:[#allocation9 + $0x88] sm:$0xff] }
 0x3e9   :  { %1899 = vmatpush.msra.mxu0 %v3846_v48  ;;  %4295 = vst [vmem:[#allocation28_spill] sm:$0xff] %v3875_v30 }
 0x3ea   :  { %1921 = vmatpush.msra.mxu1 %v3861_v15  ;;  %v3899_v15 = vld [vmem:[#allocation9 + $0x28] sm:$0xff] }
 0x3eb   :  { %1900 = vmatpush.msra.mxu0 %v3853_v57 }
 0x3ed   :  { %1901 = vmatpush.msra.mxu0 %v3859_v21 }
 0x43e   :  { %v1624_v63 = vpop.f32.mrf.mxu1 }
 0x43f   :  { %v1625_v16 = vadd.f32 %v1624_v63, %v4285_v1  ;;  %v3866_v63 = vld [vmem:[#allocation9 + $0x98] sm:$0xff]  ;;  %v3868_v1 = vld [vmem:[#allocation9 + $0xa0] sm:$0xff] }
 0x440   :  { %4294 = vst [vmem:[#allocation53_spill] sm:$0xff] %v3868_v1  ;;  %1902 = vmatpush.msra.mxu0 %v3866_v63  ;;  %1922 = vmatpush.msra.mxu1 %v3868_v1 }
 0x441   :  { %v1667_v32 = vadd.f32 %v1625_v16, %v1517_v49  ;;  %v3873_v16 = vld [vmem:[#allocation9 + $0x80] sm:$0xff] }
 0x442   :  { %1903 = vmatpush.msra.mxu0 %v3873_v16  ;;  %1923 = vmatpush.msra.mxu1 %v3875_v30  ;;  %v3893_v30 = vld [vmem:[#allocation9 + $0x40] sm:$0xff] }
 0x443   :  { %v2279_v17 = vmul.f32 -1.442695, %v1667_v32 }
 0x444   :  { %v1644_v27 = vpop.f32.mrf.mxu2  ;;  %1904 = vmatpush.msra.mxu0 %v3879_v47  ;;  %1924 = vmatpush.msra.mxu1 %v3881_v59 }
 0x445   :  { %2345 = vpow2.f32 %v2279_v17  ;;  %v1645_v49 = vadd.f32 %v1644_v27, %v4287_v22  ;;  %v1716_v17 = vld [vmem:[#allocation3 + $0x30] sm:$0xff]  ;;  %v3885_v27 = vld [vmem:[#allocation9 + $0x50] sm:$0xff]  ;;  %v3887_v22 = vld [vmem:[#allocation9 + $0x58] sm:$0xff] }
 0x446   :  { %1781 = vmatmul.f32.vlgmr.msrb.gmra.mxu0 %v1716_v17  ;;  %1801 = vmatmul.f32.vlgmr.msrb.gmra.mxu1 %v1716_v17  ;;  %4297 = vst [vmem:[#allocation54_spill] sm:$0xff] %v3887_v22 }
 0x447   :  { %v1687_v32 = vadd.f32 %v1645_v49, %v1537_v31  ;;  %1905 = vmatpush.msra.mxu0 %v3885_v27  ;;  %1925 = vmatpush.msra.mxu1 %v3887_v22  ;;  %v3891_v49 = vld [vmem:[#allocation9 + $0x38] sm:$0xff]  ;;  %v3906_v22 = vld [vmem:[#allocation9 + $0x10] sm:$0xff] }
 0x448   :  { %1821 = vmatmul.f32.vlgmr.msrb.gmra.mxu2 %v1716_v17 }
 0x449   :  { %v2280_v1 = vmul.f32 -1.442695, %v1687_v32  ;;  %1906 = vmatpush.msra.mxu0 %v3891_v49  ;;  %1926 = vmatpush.msra.mxu1 %v3893_v30  ;;  %v3897_v32 = vld [vmem:[#allocation9 + $0x20] sm:$0xff] }
 0x44a   :  { %2159 = vmatpush.msrb.mxu2 %v3809_v29 }
 0x44b   :  { %v2346_v31 = vpop.eup %2345  ;;  %2347 = vpow2.f32 %v2280_v1  ;;  %1907 = vmatpush.msra.mxu0 %v3897_v32  ;;  %1927 = vmatpush.msra.mxu1 %v3899_v15  ;;  %v3904_v1 = vld [vmem:[#allocation9 + $0x8] sm:$0xff] }
 0x44c   :  { %v1671_v59 = vadd.f32 1.0, %v2346_v31  ;;  %2160 = vmatpush.msrb.mxu2 %v3815_v35 }
 0x44d   :  { %1908 = vmatpush.msra.mxu0 %v3904_v1  ;;  %1928 = vmatpush.msra.mxu1 %v3906_v22 }
 0x44e   :  { %2349 = vrcp.f32 %v1671_v59  ;;  %2161 = vmatpush.msrb.mxu2 %v3821_v18  ;;  %v1681_v18 = vand.u32 2147483647, %v1671_v59  ;;  %vm1677_vm9 = vweird.f32 %v1671_v59 }
 0x44f   :  { %2139 = vmatpush.msrb.mxu1 %v3628_v46  ;;  %2071 = vmatpush.msrb.mxu0 %v3691_v44 }
 0x450   :  { %2162 = vmatpush.msrb.mxu2 %v3827_v62  ;;  %v1556_v62 = vpop.f32.mrf.mxu0  ;;  %vm1682_vm11 = vcmp.eq.f32.partialorder %v1681_v18, 8.507059e+37 }
 0x451   :  { %v2348_v17 = vpop.eup %2347  ;;  %2140 = vmatpush.msrb.mxu1 %v3631_v56  ;;  %2072 = vmatpush.msrb.mxu0 %v3693_v53  ;;  %v1683_v56 = vand.u32 2147483648, %v1671_v59  ;;  %v1664_v53 = vpop.f32.mrf.mxu3 }
 0x452   :  { %v3913_v29 = vadd.f32 1.0, %v2348_v17  ;;  %2163 = vmatpush.msrb.mxu2 %v3833_v43  ;;  %v1557_v43 = vadd.f32 %v1556_v62, %v3040_v12 }
 0x453   :  { %2141 = vmatpush.msrb.mxu1 %v3633_v9  ;;  %2073 = vmatpush.msrb.mxu0 %v3697_v40 }
 0x454   :  { %v2350_v31 = vpop.eup %2349  ;;  %2351 = vrcp.f32 %v3913_v29  ;;  %2164 = vmatpush.msrb.mxu2 %v3839_v4  ;;  %v1665_v4 = vadd.f32 %v1664_v53, %v3035_v54  ;;  %vm1697_vm13 = vweird.f32 %v3913_v29 }
 0x455   :  { %v1673_v35 = vmul.f32 %v2350_v31, %v1671_v59  ;;  %2142 = vmatpush.msrb.mxu1 %v3636_v14  ;;  %2074 = vmatpush.msrb.mxu0 %v3704_v41  ;;  %vm1678_vm8 = vweird.f32 %v2350_v31  ;;  %v1684_v41 = vor.u32 1.1754944e-38, %v1683_v56 }
 0x456   :  { %2165 = vmatpush.msrb.mxu2 %v3846_v48  ;;  %vm1679_vm10 = vmor %vm1677_vm9, %vm1678_vm8 }
 0x457   :  { %v1674_v46 = vsub.f32 1.0, %v1673_v35  ;;  %2143 = vmatpush.msrb.mxu1 %v3640_v52  ;;  %2075 = vmatpush.msrb.mxu0 %v3709_v42 }
 0x458   :  { %2166 = vmatpush.msrb.mxu2 %v3853_v57  ;;  %v4307_v57 = vld [vmem:[#allocation34_spill] sm:$0xff] }
 0x459   :  { %v1675_v44 = vmul.f32 %v2350_v31, %v1674_v46  ;;  %2144 = vmatpush.msrb.mxu1 %v3644_v37  ;;  %2076 = vmatpush.msrb.mxu0 %v3720_v0 }
 0x45a   :  { %v2352_v9 = vpop.eup %2351  ;;  %2167 = vmatpush.msrb.mxu2 %v3859_v21 }
 0x45b   :  { %v1693_v40 = vmul.f32 %v2352_v9, %v3913_v29  ;;  %v1676_v14 = vadd.f32 %v2350_v31, %v1675_v44  ;;  %2145 = vmatpush.msrb.mxu1 %v3647_v60  ;;  %2077 = vmatpush.msrb.mxu0 %v3728_v45  ;;  %vm1698_vm12 = vweird.f32 %v2352_v9 }
 0x45c   :  { %2168 = vmatpush.msrb.mxu2 %v3866_v63  ;;  %vm1699_vm14 = vmor %vm1697_vm13, %vm1698_vm12 }
 0x45d   :  { %v1694_v52 = vsub.f32 1.0, %v1693_v40  ;;  %v1680_v48 = vsel %vm1679_vm10, %v2350_v31, %v1676_v14  ;;  %2146 = vmatpush.msrb.mxu1 %v3653_v8  ;;  %2078 = vmatpush.msrb.mxu0 %v3739_v26  ;;  %v1703_v8 = vand.u32 2147483648, %v3913_v29 }
 0x45e   :  { %v1685_v59 = vsel %vm1682_vm11, %v1684_v41, %v1680_v48  ;;  %2169 = vmatpush.msrb.mxu2 %v3873_v16 }
 0x45f   :  { %v1707_v37 = vmul.f32 %v1685_v59, %v1665_v4  ;;  %v1695_v42 = vmul.f32 %v2352_v9, %v1694_v52  ;;  %2147 = vmatpush.msrb.mxu1 %v3656_v39  ;;  %2079 = vmatpush.msrb.mxu0 %v3747_v28  ;;  %v1701_v39 = vand.u32 2147483647, %v3913_v29  ;;  %v1704_v26 = vor.u32 1.1754944e-38, %v1703_v8 }
 0x460   :  { %2170 = vmatpush.msrb.mxu2 %v3879_v47 }
 0x461   :  { %v1708_v0 = vadd.f32 %v1707_v37, %v1557_v43  ;;  %2148 = vmatpush.msrb.mxu1 %v3659_v11  ;;  %v1696_v60 = vadd.f32 %v2352_v9, %v1695_v42  ;;  %2080 = vmatpush.msrb.mxu0 %v3754_v3  ;;  %vm1702_vm15 = vcmp.eq.f32.partialorder %v1701_v39, 8.507059e+37 }
 0x462   :  { %2171 = vmatpush.msrb.mxu2 %v3885_v27 }
 0x463   :  { %2353 = vtanh.f32 %v1708_v0  ;;  %2149 = vmatpush.msrb.mxu1 %v3662_v7  ;;  %2081 = vmatpush.msrb.mxu0 %v3759_v6  ;;  %v1700_v11 = vsel %vm1699_vm14, %v2352_v9, %v1696_v60  ;;  %v4302_v6 = vld [vmem:[#allocation30_spill] sm:$0xff] }
 0x464   :  { %2172 = vmatpush.msrb.mxu2 %v3891_v49  ;;  %v1705_v28 = vsel %vm1702_vm15, %v1704_v26, %v1700_v11 }
 0x465   :  { %2150 = vmatpush.msrb.mxu1 %v3665_v13  ;;  %2082 = vmatpush.msrb.mxu0 %v3767_v33  ;;  %v4303_v33 = vld [vmem:[#allocation54_spill] sm:$0xff] }
 0x466   :  { %2173 = vmatpush.msrb.mxu2 %v3897_v32 }
 0x467   :  { %2151 = vmatpush.msrb.mxu1 %v3672_v19  ;;  %2083 = vmatpush.msrb.mxu0 %v3774_v51  ;;  %v4298_v19 = vld [vmem:[#allocation35_spill] sm:$0xff] }
 0x468   :  { %2174 = vmatpush.msrb.mxu2 %v3904_v1 }
 0x469   :  { %v2354_v45 = vpop.eup %2353  ;;  %2152 = vmatpush.msrb.mxu1 %v3678_v50  ;;  %2084 = vmatpush.msrb.mxu0 %v3780_v58  ;;  %v4299_v50 = vld [vmem:[#allocation41_spill] sm:$0xff] }
 0x46a   :  { %v1710_v7 = vsub.f32 %v3791_v34, %v2354_v45 }
 0x46b   :  { %2153 = vmatpush.msrb.mxu1 %v3682_v55  ;;  %2085 = vmatpush.msrb.mxu0 %v3786_v38  ;;  %v4300_v55 = vld [vmem:[#allocation53_spill] sm:$0xff]  ;;  %v4304_v38 = vld [vmem:[#allocation26_spill] sm:$0xff] }
 0x46c   :  { %v1711_v13 = vmul.f32 %v1710_v7, %v1705_v28 }
 0x46d   :  { %2154 = vmatpush.msrb.mxu1 %v3687_v36  ;;  %2086 = vmatpush.msrb.mxu0 %v3794_v61  ;;  %v4301_v36 = vld [vmem:[#allocation28_spill] sm:$0xff] }
 0x46e   :  { %v3964_v3 = vadd.f32 %v2354_v45, %v1711_v13 }
 0x470   :  { %1714 = vst [vmem:[#allocation12 + $0x28] sm:$0xff] %v3964_v3  ;;  %1889 = vmatmul.f32.vlgmr.msrb.gmra.mxu3 %v3964_v3  ;;  %1909 = vmatmul.f32.vlgmr.msra.gmra.mxu0 %v3964_v3 }
 0x471   :  { %1929 = vmatmul.f32.vlgmr.msra.gmra.mxu1 %v3964_v3  ;;  %2179 = vmatpush.msrb.mxu3 %v3811_v5  ;;  %v4305_v5 = vld [vmem:[#allocation39_spill] sm:$0xff] }
 0x473   :  { %2180 = vmatpush.msrb.mxu3 %v3817_v25 }
 0x475   :  { %2181 = vmatpush.msrb.mxu3 %v3823_v2 }
 0x477   :  { %2182 = vmatpush.msrb.mxu3 %v3829_v24  ;;  %v4306_v24 = vld [vmem:[#allocation37_spill] sm:$0xff] }
 0x479   :  { %2183 = vmatpush.msrb.mxu3 %v3835_v10 }
 0x47b   :  { %2184 = vmatpush.msrb.mxu3 %v3841_v20 }
 0x47d   :  { %2185 = vmatpush.msrb.mxu3 %v3848_v23 }
 0x47f   :  { %2186 = vmatpush.msrb.mxu3 %v4298_v19 }
 0x481   :  { %2187 = vmatpush.msrb.mxu3 %v4299_v50 }
 0x483   :  { %2188 = vmatpush.msrb.mxu3 %v4300_v55 }
 0x485   :  { %2189 = vmatpush.msrb.mxu3 %v4301_v36 }
 0x487   :  { %2190 = vmatpush.msrb.mxu3 %v4302_v6 }
 0x489   :  { %2191 = vmatpush.msrb.mxu3 %v4303_v33 }
 0x48b   :  { %2192 = vmatpush.msrb.mxu3 %v3893_v30 }
 0x48d   :  { %2193 = vmatpush.msrb.mxu3 %v3899_v15 }
 0x48f   :  { %2194 = vmatpush.msrb.mxu3 %v3906_v22  ;;  %v1982_v22 = vld [vmem:[#allocation3 + $0x38] sm:$0xff] }
 0x490   :  { %2047 = vmatmul.f32.vlgmr.msra.gmra.mxu2 %v1982_v22  ;;  %2067 = vmatmul.f32.vlgmr.msra.gmra.mxu3 %v1982_v22 }
 0x491   :  { %2087 = vmatmul.f32.vlgmr.msrb.gmra.mxu0 %v1982_v22 }
 0x4c3   :  { %v1782_v51 = vpop.f32.mrf.mxu0  ;;  %v1802_v58 = vpop.f32.mrf.mxu1 }
 0x4c4   :  { %v1803_v34 = vadd.f32 %v1802_v58, %v4304_v38  ;;  %v1783_v10 = vadd.f32 %v1782_v51, %v4306_v24 }
 0x4cb   :  { %v1822_v44 = vpop.f32.mrf.mxu2 }
 0x4cc   :  { %v1823_v40 = vadd.f32 %v1822_v44, %v3040_v12 }
 0x4ed   :  { %v1910_v61 = vpop.f32.mrf.mxu0 }
 0x4ee   :  { %v1911_v25 = vadd.f32 %v1910_v61, %v4305_v5  ;;  %v1930_v56 = vpop.f32.mrf.mxu1 }
 0x4ef   :  { %v1931_v53 = vadd.f32 %v1930_v56, %v3035_v54 }
 0x4f0   :  { %v1953_v2 = vadd.f32 %v1911_v25, %v1803_v34 }
 0x4f2   :  { %v2282_v20 = vmul.f32 -1.442695, %v1953_v2 }
 0x4f3   :  { %v1890_v23 = vpop.f32.mrf.mxu3 }
 0x4f4   :  { %v1891_v21 = vadd.f32 %v1890_v23, %v4307_v57  ;;  %2355 = vpow2.f32 %v2282_v20 }
 0x4f6   :  { %v1933_v63 = vadd.f32 %v1891_v21, %v1783_v10 }
 0x4f8   :  { %v2281_v30 = vmul.f32 -1.442695, %v1933_v63 }
 0x4fa   :  { %2357 = vpow2.f32 %v2281_v30  ;;  %v2356_v15 = vpop.eup %2355 }
 0x4fb   :  { %v1957_v47 = vadd.f32 1.0, %v2356_v15 }
 0x4fd   :  { %v1969_v59 = vand.u32 2147483648, %v1957_v47  ;;  %vm1963_vm5 = vweird.f32 %v1957_v47  ;;  %v1967_v37 = vand.u32 2147483647, %v1957_v47 }
 0x4ff   :  { %v1970_v60 = vor.u32 1.1754944e-38, %v1969_v59  ;;  %vm1968_vm7 = vcmp.eq.f32.partialorder %v1967_v37, 8.507059e+37 }
 0x500   :  { %v2358_v16 = vpop.eup %2357 }
 0x501   :  { %v1937_v27 = vadd.f32 1.0, %v2358_v16 }
 0x503   :  { %2359 = vrcp.f32 %v1937_v27  ;;  %v1949_v31 = vand.u32 2147483648, %v1937_v27  ;;  %v1947_v46 = vand.u32 2147483647, %v1937_v27  ;;  %vm1943_vm1 = vweird.f32 %v1937_v27 }
 0x504   :  { %2361 = vrcp.f32 %v1957_v47 }
 0x505   :  { %v1950_v9 = vor.u32 1.1754944e-38, %v1949_v31  ;;  %vm1948_vm3 = vcmp.eq.f32.partialorder %v1947_v46, 8.507059e+37 }
 0x509   :  { %v2360_v49 = vpop.eup %2359 }
 0x50a   :  { %v2362_v32 = vpop.eup %2361  ;;  %v1939_v1 = vmul.f32 %v2360_v49, %v1937_v27  ;;  %vm1944_vm0 = vweird.f32 %v2360_v49 }
 0x50b   :  { %v1959_v29 = vmul.f32 %v2362_v32, %v1957_v47  ;;  %vm1945_vm2 = vmor %vm1943_vm1, %vm1944_vm0  ;;  %vm1964_vm4 = vweird.f32 %v2362_v32 }
 0x50c   :  { %v1940_v17 = vsub.f32 1.0, %v1939_v1  ;;  %vm1965_vm6 = vmor %vm1963_vm5, %vm1964_vm4 }
 0x50d   :  { %v1960_v62 = vsub.f32 1.0, %v1959_v29 }
 0x50e   :  { %v1941_v35 = vmul.f32 %v2360_v49, %v1940_v17 }
 0x50f   :  { %v1961_v52 = vmul.f32 %v2362_v32, %v1960_v62 }
 0x510   :  { %v1942_v18 = vadd.f32 %v2360_v49, %v1941_v35 }
 0x511   :  { %v1962_v48 = vadd.f32 %v2362_v32, %v1961_v52 }
 0x512   :  { %v1946_v14 = vsel %vm1945_vm2, %v2360_v49, %v1942_v18 }
 0x513   :  { %v1951_v41 = vsel %vm1948_vm3, %v1950_v9, %v1946_v14  ;;  %v1966_v42 = vsel %vm1965_vm6, %v2362_v32, %v1962_v48  ;;  %v2048_v26 = vpop.f32.mrf.mxu2 }
 0x514   :  { %v1973_v43 = vmul.f32 %v1951_v41, %v1931_v53  ;;  %v1971_v39 = vsel %vm1968_vm7, %v1970_v60, %v1966_v42  ;;  %v2049_v7 = vadd.f32 %v2048_v26, %v4306_v24 }
 0x516   :  { %v1974_v4 = vadd.f32 %v1973_v43, %v1823_v40 }
 0x518   :  { %2363 = vtanh.f32 %v1974_v4 }
 0x51e   :  { %v2364_v0 = vpop.eup %2363 }
 0x51f   :  { %v1976_v8 = vsub.f32 %v3964_v3, %v2364_v0  ;;  %v2068_v3 = vpop.f32.mrf.mxu3 }
 0x520   :  { %v2069_v50 = vadd.f32 %v2068_v3, %v4304_v38 }
 0x521   :  { %v1977_v11 = vmul.f32 %v1976_v8, %v1971_v39 }
 0x523   :  { %v3996_v45 = vadd.f32 %v2364_v0, %v1977_v11 }
 0x525   :  { %1980 = vst [vmem:[#allocation12 + $0x30] sm:$0xff] %v3996_v45  ;;  %2155 = vmatmul.f32.vlgmr.msrb.gmra.mxu1 %v3996_v45  ;;  %2175 = vmatmul.f32.vlgmr.msrb.gmra.mxu2 %v3996_v45 }
 0x526   :  { %2195 = vmatmul.f32.vlgmr.msrb.gmra.mxu3 %v3996_v45 }
 0x5a2   :  { %v2156_v28 = vpop.f32.mrf.mxu1 }
 0x5a3   :  { %v2157_v13 = vadd.f32 %v2156_v28, %v4307_v57  ;;  %v2088_v57 = vpop.f32.mrf.mxu0 }
 0x5a4   :  { %v2089_v22 = vadd.f32 %v2088_v57, %v3040_v12 }
 0x5a5   :  { %v2199_v19 = vadd.f32 %v2157_v13, %v2049_v7 }
 0x5a7   :  { %v2283_v55 = vmul.f32 -1.442695, %v2199_v19 }
 0x5a8   :  { %v2176_v36 = vpop.f32.mrf.mxu2 }
 0x5a9   :  { %2365 = vpow2.f32 %v2283_v55  ;;  %v2177_v6 = vadd.f32 %v2176_v36, %v4305_v5  ;;  %v2196_v63 = vpop.f32.mrf.mxu3 }
 0x5aa   :  { %v2197_v47 = vadd.f32 %v2196_v63, %v3035_v54 }
 0x5ab   :  { %v2219_v33 = vadd.f32 %v2177_v6, %v2069_v50 }
 0x5ad   :  { %v2284_v51 = vmul.f32 -1.442695, %v2219_v33 }
 0x5af   :  { %v2366_v58 = vpop.eup %2365  ;;  %2367 = vpow2.f32 %v2284_v51 }
 0x5b0   :  { %v2203_v34 = vadd.f32 1.0, %v2366_v58 }
 0x5b2   :  { %2369 = vrcp.f32 %v2203_v34  ;;  %v2215_v20 = vand.u32 2147483648, %v2203_v34  ;;  %v2213_v38 = vand.u32 2147483647, %v2203_v34  ;;  %vm2209_vm9 = vweird.f32 %v2203_v34 }
 0x5b4   :  { %v2216_v15 = vor.u32 1.1754944e-38, %v2215_v20  ;;  %vm2214_vm11 = vcmp.eq.f32.partialorder %v2213_v38, 8.507059e+37 }
 0x5b5   :  { %v2368_v61 = vpop.eup %2367 }
 0x5b6   :  { %v2223_v25 = vadd.f32 1.0, %v2368_v61 }
 0x5b8   :  { %v2370_v2 = vpop.eup %2369  ;;  %2371 = vrcp.f32 %v2223_v25  ;;  %v2235_v31 = vand.u32 2147483648, %v2223_v25  ;;  %vm2229_vm13 = vweird.f32 %v2223_v25  ;;  %v2233_v35 = vand.u32 2147483647, %v2223_v25 }
 0x5b9   :  { %v2205_v24 = vmul.f32 %v2370_v2, %v2203_v34  ;;  %vm2210_vm8 = vweird.f32 %v2370_v2 }
 0x5ba   :  { %vm2211_vm10 = vmor %vm2209_vm9, %vm2210_vm8  ;;  %v2236_v44 = vor.u32 1.1754944e-38, %v2235_v31  ;;  %vm2234_vm15 = vcmp.eq.f32.partialorder %v2233_v35, 8.507059e+37 }
 0x5bb   :  { %v2206_v10 = vsub.f32 1.0, %v2205_v24 }
 0x5bd   :  { %v2207_v23 = vmul.f32 %v2370_v2, %v2206_v10 }
 0x5be   :  { %v2372_v21 = vpop.eup %2371 }
 0x5bf   :  { %v2225_v5 = vmul.f32 %v2372_v21, %v2223_v25  ;;  %v2208_v30 = vadd.f32 %v2370_v2, %v2207_v23  ;;  %vm2230_vm12 = vweird.f32 %v2372_v21 }
 0x5c0   :  { %vm2231_vm14 = vmor %vm2229_vm13, %vm2230_vm12 }
 0x5c1   :  { %v2226_v16 = vsub.f32 1.0, %v2225_v5  ;;  %v2212_v27 = vsel %vm2211_vm10, %v2370_v2, %v2208_v30 }
 0x5c2   :  { %v2217_v49 = vsel %vm2214_vm11, %v2216_v15, %v2212_v27 }
 0x5c3   :  { %v2239_v32 = vmul.f32 %v2217_v49, %v2197_v47  ;;  %v2227_v1 = vmul.f32 %v2372_v21, %v2226_v16 }
 0x5c5   :  { %v2240_v17 = vadd.f32 %v2239_v32, %v2089_v22  ;;  %v2228_v29 = vadd.f32 %v2372_v21, %v2227_v1 }
 0x5c7   :  { %2373 = vtanh.f32 %v2240_v17  ;;  %v2232_v46 = vsel %vm2231_vm14, %v2372_v21, %v2228_v29 }
 0x5c8   :  { %v2237_v54 = vsel %vm2234_vm15, %v2236_v44, %v2232_v46 }
 0x5cd   :  { %v2374_v56 = vpop.eup %2373 }
 0x5ce   :  { %v2242_v12 = vsub.f32 %v3996_v45, %v2374_v56 }
 0x5d0   :  { %v2243_v18 = vmul.f32 %v2242_v12, %v2237_v54 }
 0x5d2   :  { %v2244_v62 = vadd.f32 %v2374_v56, %v2243_v18 }
 0x5d4   :  { %2246 = vst [vmem:[#allocation12 + $0x38] sm:$0xff] %v2244_v62 }
 0x5d5   :  { %2260 = dma.vmem_to_hbm [thread:$0]  %s2253_s23, 1024, %s2255_s26, [#allocation5], %s2532_s3, %s2532_s3, %s2533_s16  }
 0x5d6   :  { %2525 = dma.done.wait [#allocation5], 1024  }
 0x5d7   :  { %2526 = vsyncadd [#allocation5], 4294966272 }
 0x5d8   :  { %2265 = vsyncpa [#allocation4], 1 }
 0x5d9   :  { %2266 = vsyncpa [#allocation7], 1 }
 0x5da   :  { %2267 = vsyncpa [#allocation10], 1 }
 0x5db   :  { %2268 = vsyncpa [#allocation5], 1 }

</bundles_post_ra>
